<compile_context>
chip_gen: v7x
topology: tpu7x:2x2x1
jax: 0.10.0
libtpu: 0.0.40
codegen_flags: <defaults>
</compile_context>

<pallas_src>
import functools

import jax
import jax.numpy as jnp
from jax.experimental import pallas as pl
from jax.experimental.pallas import tpu as pltpu


def _expand_norm_kernel(x_ref, wt_ref, wm_ref, bg_ref, bd_ref, beta_ref, o_ref,
                        *, dim, p, eps):
    # x_ref   : (dim, ntok)      NCHW input tile (channels in sublanes); the
    #                            NHWC transpose is fused into the matmul below.
    # wt_ref  : (dim, 16*dim)    transposed Linear weight W^T (original dtype)
    # wm_ref  : (dim, 16)        (W^T @ block_diag_ones) / dim  -> group-mean weights
    # bg_ref  : (16*dim, 16)     block-diagonal GAMMA matrix (broadcast-back + scale)
    # bd_ref  : (16*dim, 16)     block-diagonal ones (group-sum matrix, f32)
    # beta_ref: (1, 16*dim)      LayerNorm beta tiled 16x (f32)
    # o_ref   : (th, p, W, p*dim) output block of (B, H, p, W, p*dim)
    th = o_ref.shape[0]
    W = o_ref.shape[2]
    pdim = p * dim

    c_lead = (((0,), (0,)), ((), ()))   # contract leading dims: x^T @ rhs (fused transpose)
    c_last = (((1,), (1,)), ((), ()))   # contract trailing dims: lhs @ rhs^T

    x = x_ref[...]                                                    # (dim, ntok)

    # Linear expansion on the MXU, f32 accumulate, transpose fused into the
    # contraction (no operand up-cast, no separate NHWC tensor in HBM).
    y = jax.lax.dot_general(x, wt_ref[...], c_lead,
                            preferred_element_type=jnp.float32)       # (ntok, 16*dim)
    # Group mean folded into the weight: mean = x @ ((W^T @ bd)/dim).
    mean = jax.lax.dot_general(x, wm_ref[...], c_lead,
                               preferred_element_type=jnp.float32)    # (ntok, 16)

    # --- LayerNorm over each dim-sized (p1,p2) group, fully lane-dense. ---
    bd = bd_ref[...]                                                  # (16*dim, 16)
    mean_f = jax.lax.dot_general(mean, bd, c_last,
                                 preferred_element_type=jnp.float32)  # (ntok, 16*dim)
    yc = y - mean_f
    var = jnp.dot(yc * yc, bd,
                  preferred_element_type=jnp.float32) * (1.0 / dim)   # (ntok, 16)
    inv = jax.lax.rsqrt(var + eps)                                    # (ntok, 16)
    # gamma fused into the broadcast-back matrix -> no extra full-width VPU mul.
    inv_g = jax.lax.dot_general(inv, bg_ref[...], c_last,
                                preferred_element_type=jnp.float32)   # (ntok, 16*dim)
    out = yc * inv_g + beta_ref[...]                                  # f32

    # --- Fused rearrange 'h w (p1 p2 c) -> h p1 w (p2 c)' folded into the store:
    # one 128-lane-aligned slice + store per p1 (XLU slack absorbs the shuffle).
    # TODO(synk): when dim % 32 != 0 these slices are not 128-lane aligned; pad
    # the out-block last dim to a multiple of 128 and trim in the wrapper.
    for p1 in range(p):
        part = out[:, p1 * pdim:(p1 + 1) * pdim]                      # (ntok, p*dim)
        o_ref[:, p1:p1 + 1, :, :] = (
            part.reshape(th, 1, W, pdim).astype(o_ref.dtype))


def _vmem_config():
    """(per-step VMEM budget, vmem_limit_bytes) sized to the chip generation."""
    try:
        cap = pltpu.get_tpu_info().vmem_capacity_bytes
    except Exception:  # pragma: no cover - conservative default (v7x-safe)
        cap = 64 * 1024 * 1024
    if cap >= 96 * 1024 * 1024:
        # v5e / v6e: 128 MiB physical VMEM -> allow big row tiles.
        return 52 * 1024 * 1024, 80 * 1024 * 1024
    # v7x: 64 MiB per TensorCore -> stay conservative.
    return 24 * 1024 * 1024, 40 * 1024 * 1024


def _pick_row_tile(B, H, W, dim, p2, in_itemsize, out_itemsize, w_itemsize,
                   vmem_budget):
    """Largest row tile th (divisor of H, preferring multiples of 8) whose
    input block is lane-legal, that fits the per-step VMEM budget, and that
    keeps >= 2 grid steps (so both v7x TensorCores get work)."""
    pdim2 = p2 * dim
    cands = sorted({d for d in range(8, H + 1, 8) if H % d == 0} | {H})

    def valid(th):
        # Input block is (dim, th*W): last dim must be a multiple of 128 or the
        # full extent H*W (Mosaic (8,128) block constraint).
        return th == H or (th * W) % 128 == 0

    def fits(th):
        ntok = th * W
        out_b = 2 * ntok * pdim2 * out_itemsize       # double-buffered output block
        in_b = 2 * ntok * dim * in_itemsize           # double-buffered input block
        w_b = dim * pdim2 * w_itemsize                # resident weight (constant index map)
        consts = (2 * pdim2 * p2 + pdim2 + dim * p2) * 4
        interm = 3 * ntok * pdim2 * 4                 # ~3 live full-width f32 temps
        return out_b + in_b + w_b + consts + interm <= vmem_budget

    fitting = [th for th in cands if valid(th) and fits(th)]
    if fitting:
        multi = [th for th in fitting if B * (H // th) >= 2]
        return max(multi) if multi else max(fitting)
    # Nothing fits the budget: take the smallest lane-legal tile.
    # TODO(synk): also split along W (extra parallel grid axis) instead of
    # collapsing to the smallest row tile when nothing fits / grid has 1 step.
    valid_c = [th for th in cands if valid(th)]
    return min(valid_c) if valid_c else H


def final_patch_expand_x4(x_nchw, w, gamma, beta, *, dim_scale=4, eps=1e-5,
                          out_dtype=None):
    """x_nchw: (B, dim, H, W). w: (dim*dim_scale**2, dim) PyTorch Linear weight.
    Returns (B, H*dim_scale, W*dim_scale, dim), matching the PyTorch module.
    out_dtype: optionally emit bf16 to halve the dominant 16x output HBM write."""
    B, dim, H, W = x_nchw.shape
    p = dim_scale
    p2 = p * p
    pdim = p * dim
    out_dtype = x_nchw.dtype if out_dtype is None else jnp.dtype(out_dtype)

    # Keep NCHW; flatten spatial dims (free metadata reshape). The NHWC
    # transpose is fused into the kernel's first matmul.
    x_flat = x_nchw.reshape(B, dim, H * W)

    wt = w.T                                                          # (dim, 16*dim)
    bd = jnp.repeat(jnp.eye(p2, dtype=jnp.float32), dim, axis=0)      # (16*dim, 16)
    bd_gamma = bd * jnp.tile(gamma.astype(jnp.float32), p2)[:, None]  # (16*dim, 16)
    beta_t = jnp.tile(beta.astype(jnp.float32), p2).reshape(1, p2 * dim)
    # Group mean folded into the weight: (dim, 16) in the weight's dtype.
    wm = ((wt.astype(jnp.float32) @ bd) * (1.0 / dim)).astype(wt.dtype)

    budget, vmem_limit = _vmem_config()
    th = _pick_row_tile(B, H, W, dim, p2,
                        in_itemsize=x_nchw.dtype.itemsize,
                        out_itemsize=jnp.dtype(out_dtype).itemsize,
                        w_itemsize=w.dtype.itemsize,
                        vmem_budget=budget)
    ntok = th * W
    grid = (B, H // th)

    kernel = functools.partial(_expand_norm_kernel, dim=dim, p=p, eps=eps)

    N = B * H * W
    cost = pl.CostEstimate(
        flops=2 * N * dim * (p2 * dim + p2) + 6 * N * p2 * p2 * dim,
        bytes_accessed=(N * dim * x_nchw.dtype.itemsize
                        + dim * p2 * dim * w.dtype.itemsize
                        + N * p2 * dim * jnp.dtype(out_dtype).itemsize),
        transcendentals=N * p2)

    # TODO(synk): for very large dim (>= ~384 f32) on v7x, block the 16*dim
    # output-column axis of wt/bd/out with a third grid axis (or cast wt to bf16)
    # so the resident weight block stays well under the 64 MiB VMEM.
    y5 = pl.pallas_call(
        kernel,
        out_shape=jax.ShapeDtypeStruct((B, H, p, W, pdim), out_dtype),
        grid_spec=pltpu.PrefetchScalarGridSpec(
            num_scalar_prefetch=0,
            grid=grid,
            in_specs=[
                pl.BlockSpec((pl.Squeezed(), dim, ntok),
                             lambda b, hi: (b, 0, hi)),
                pl.BlockSpec((dim, p2 * dim), lambda b, hi: (0, 0)),
                pl.BlockSpec((dim, p2), lambda b, hi: (0, 0)),
                pl.BlockSpec((p2 * dim, p2), lambda b, hi: (0, 0)),
                pl.BlockSpec((p2 * dim, p2), lambda b, hi: (0, 0)),
                pl.BlockSpec((1, p2 * dim), lambda b, hi: (0, 0)),
            ],
            out_specs=pl.BlockSpec((pl.Squeezed(), th, p, W, pdim),
                                   lambda b, hi: (b, hi, 0, 0, 0)),
        ),
        compiler_params=pltpu.CompilerParams(
            dimension_semantics=("parallel", "parallel"),
            vmem_limit_bytes=vmem_limit),
        cost_estimate=cost,
    )(x_flat, wt, wm, bd_gamma, bd, beta_t)

    # (B, H, p, W, p*dim) -> (B, H*p, W*p, dim): pure row-major reshape, no copy.
    return y5.reshape(B, H * p, W * p, dim)


def _reference(x_nchw, w, gamma, beta, dim_scale=4, eps=1e-5):
    B, C, H, W = x_nchw.shape
    dim = C
    x = jnp.transpose(x_nchw, (0, 2, 3, 1)).astype(jnp.float32)
    y = x @ w.T.astype(jnp.float32)                       # (B,H,W,16*dim)
    y = y.reshape(B, H, W, dim_scale, dim_scale, dim)
    y = jnp.transpose(y, (0, 1, 3, 2, 4, 5)).reshape(
        B, H * dim_scale, W * dim_scale, dim)
    mean = y.mean(-1, keepdims=True)
    var = ((y - mean) ** 2).mean(-1, keepdims=True)
    return (y - mean) * jax.lax.rsqrt(var + eps) * gamma + beta


if __name__ == "__main__":
    key = jax.random.PRNGKey(0)
    B, dim, H, W = 2, 32, 16, 16
    dim_scale = 4

    k1, k2, k3, k4 = jax.random.split(key, 4)
    x = jax.random.normal(k1, (B, dim, H, W), dtype=jnp.float32)
    # nn.Linear(dim, dim*16, bias=False) weight: (16*dim, dim)
    w = jax.random.normal(k2, (dim * dim_scale ** 2, dim),
                          dtype=jnp.float32) * 0.05
    gamma = jnp.ones((dim,), jnp.float32) + 0.01 * jax.random.normal(
        k3, (dim,), dtype=jnp.float32)
    beta = 0.01 * jax.random.normal(k4, (dim,), dtype=jnp.float32)

    out = final_patch_expand_x4(x, w, gamma, beta, dim_scale=dim_scale)
    out = jax.block_until_ready(out)

    ref = _reference(x, w, gamma, beta, dim_scale=dim_scale)
    assert out.shape == (B, H * dim_scale, W * dim_scale, dim), out.shape
    err = float(jnp.max(jnp.abs(out - ref)))
    assert err < 1e-3, err
    print("KERNEL_OK")
</pallas_src>

<mosaic_0001>
module attributes {stable_mosaic.version = 11 : i64} {
  func.func @_expand_norm_kernel(%arg0: i32, %arg1: i32, %arg2: memref<1x32x256xf32, #tpu.memory_space<vmem>>, %arg3: memref<32x512xf32, #tpu.memory_space<vmem>>, %arg4: memref<32x16xf32, #tpu.memory_space<vmem>>, %arg5: memref<512x16xf32, #tpu.memory_space<vmem>>, %arg6: memref<512x16xf32, #tpu.memory_space<vmem>>, %arg7: memref<1x512xf32, #tpu.memory_space<vmem>>, %arg8: memref<1x16x4x16x128xf32, #tpu.memory_space<vmem>>) attributes {dimension_semantics = [#tpu.dimension_semantics<parallel>, #tpu.dimension_semantics<parallel>], iteration_bounds = array<i64: 2, 1>, scalar_prefetch = 0 : i64, scratch_operands = 0 : i64, tpu.core_type = #tpu.core_type<tc>, window_params = [{transform_indices = @transform_0, window_bounds = array<i64: 1, 32, 256>}, {pipeline_mode = #tpu.pipeline_mode<synchronous>, transform_indices = @transform_1, window_bounds = array<i64: 32, 512>}, {pipeline_mode = #tpu.pipeline_mode<synchronous>, transform_indices = @transform_2, window_bounds = array<i64: 32, 16>}, {pipeline_mode = #tpu.pipeline_mode<synchronous>, transform_indices = @transform_3, window_bounds = array<i64: 512, 16>}, {pipeline_mode = #tpu.pipeline_mode<synchronous>, transform_indices = @transform_4, window_bounds = array<i64: 512, 16>}, {pipeline_mode = #tpu.pipeline_mode<synchronous>, transform_indices = @transform_5, window_bounds = array<i64: 1, 512>}, {transform_indices = @transform_6, window_bounds = array<i64: 1, 16, 4, 16, 128>}]} {
    %c0 = arith.constant 0 : index
    %c0_0 = arith.constant 0 : index
    %c0_1 = arith.constant 0 : index
    %0 = vector.load %arg2[%c0, %c0_0, %c0_1] : memref<1x32x256xf32, #tpu.memory_space<vmem>>, vector<1x32x256xf32>
    %1 = vector.shape_cast %0 : vector<1x32x256xf32> to vector<32x256xf32>
    %c0_2 = arith.constant 0 : index
    %c0_3 = arith.constant 0 : index
    %2 = vector.load %arg3[%c0_2, %c0_3] : memref<32x512xf32, #tpu.memory_space<vmem>>, vector<32x512xf32>
    %cst = arith.constant dense<0.000000e+00> : vector<256x512xf32>
    %3 = tpu.matmul %1, %2, %cst {dimension_numbers = #tpu.dot_dimension_numbers<[0], [0], [1], [1], [0, 1, 1, 1], [], []>} : vector<32x256xf32>, vector<32x512xf32>, vector<256x512xf32> -> vector<256x512xf32>
    %c0_4 = arith.constant 0 : index
    %c0_5 = arith.constant 0 : index
    %4 = vector.load %arg4[%c0_4, %c0_5] : memref<32x16xf32, #tpu.memory_space<vmem>>, vector<32x16xf32>
    %cst_6 = arith.constant dense<0.000000e+00> : vector<256x16xf32>
    %5 = tpu.matmul %1, %4, %cst_6 {dimension_numbers = #tpu.dot_dimension_numbers<[0], [0], [1], [1], [0, 1, 1, 1], [], []>} : vector<32x256xf32>, vector<32x16xf32>, vector<256x16xf32> -> vector<256x16xf32>
    %c0_7 = arith.constant 0 : index
    %c0_8 = arith.constant 0 : index
    %6 = vector.load %arg6[%c0_7, %c0_8] : memref<512x16xf32, #tpu.memory_space<vmem>>, vector<512x16xf32>
    %cst_9 = arith.constant dense<0.000000e+00> : vector<256x512xf32>
    %7 = tpu.matmul %5, %6, %cst_9 {dimension_numbers = #tpu.dot_dimension_numbers<[1], [1], [0], [0], [0, 0, 1, 0], [], []>} : vector<256x16xf32>, vector<512x16xf32>, vector<256x512xf32> -> vector<256x512xf32>
    %8 = arith.subf %3, %7 : vector<256x512xf32>
    %9 = arith.mulf %8, %8 : vector<256x512xf32>
    %cst_10 = arith.constant dense<0.000000e+00> : vector<256x16xf32>
    %10 = tpu.matmul %9, %6, %cst_10 {dimension_numbers = #tpu.dot_dimension_numbers<[1], [0], [0], [1], [0, 0, 1, 1], [], []>} : vector<256x512xf32>, vector<512x16xf32>, vector<256x16xf32> -> vector<256x16xf32>
    %cst_11 = arith.constant 3.125000e-02 : f32
    %11 = vector.broadcast %cst_11 : f32 to vector<256x16xf32>
    %12 = arith.mulf %10, %11 : vector<256x16xf32>
    %cst_12 = arith.constant 9.99999974E-6 : f32
    %13 = vector.broadcast %cst_12 : f32 to vector<256x16xf32>
    %14 = arith.addf %12, %13 : vector<256x16xf32>
    %15 = math.rsqrt %14 : vector<256x16xf32>
    %c0_13 = arith.constant 0 : index
    %c0_14 = arith.constant 0 : index
    %16 = vector.load %arg5[%c0_13, %c0_14] : memref<512x16xf32, #tpu.memory_space<vmem>>, vector<512x16xf32>
    %cst_15 = arith.constant dense<0.000000e+00> : vector<256x512xf32>
    %17 = tpu.matmul %15, %16, %cst_15 {dimension_numbers = #tpu.dot_dimension_numbers<[1], [1], [0], [0], [0, 0, 1, 0], [], []>} : vector<256x16xf32>, vector<512x16xf32>, vector<256x512xf32> -> vector<256x512xf32>
    %18 = arith.mulf %8, %17 : vector<256x512xf32>
    %c0_16 = arith.constant 0 : index
    %c0_17 = arith.constant 0 : index
    %19 = vector.load %arg7[%c0_16, %c0_17] : memref<1x512xf32, #tpu.memory_space<vmem>>, vector<1x512xf32>
    %20 = vector.broadcast %19 : vector<1x512xf32> to vector<256x512xf32>
    %21 = arith.addf %18, %20 : vector<256x512xf32>
    %22 = vector.extract_strided_slice %21 {offsets = [0, 0], sizes = [256, 128], strides = [1, 1]} : vector<256x512xf32> to vector<256x128xf32>
    %23 = vector.shape_cast %22 : vector<256x128xf32> to vector<16x1x16x128xf32>
    %c0_18 = arith.constant 0 : index
    %c0_19 = arith.constant 0 : index
    %c0_20 = arith.constant 0 : index
    %c0_21 = arith.constant 0 : index
    %c0_22 = arith.constant 0 : index
    %24 = vector.load %arg8[%c0_18, %c0_19, %c0_20, %c0_21, %c0_22] : memref<1x16x4x16x128xf32, #tpu.memory_space<vmem>>, vector<1x16x1x16x128xf32>
    %25 = vector.shape_cast %24 : vector<1x16x1x16x128xf32> to vector<16x1x16x128xf32>
    %26 = vector.shape_cast %23 : vector<16x1x16x128xf32> to vector<1x16x1x16x128xf32>
    tpu.vector_store %arg8[%c0_18, %c0_19, %c0_20, %c0_21, %c0_22], %26 {strides = array<i32>} : memref<1x16x4x16x128xf32, #tpu.memory_space<vmem>>, vector<1x16x1x16x128xf32>,
    %27 = vector.extract_strided_slice %21 {offsets = [0, 128], sizes = [256, 128], strides = [1, 1]} : vector<256x512xf32> to vector<256x128xf32>
    %28 = vector.shape_cast %27 : vector<256x128xf32> to vector<16x1x16x128xf32>
    %c0_23 = arith.constant 0 : index
    %c0_24 = arith.constant 0 : index
    %c1 = arith.constant 1 : index
    %c0_25 = arith.constant 0 : index
    %c0_26 = arith.constant 0 : index
    %29 = vector.load %arg8[%c0_23, %c0_24, %c1, %c0_25, %c0_26] : memref<1x16x4x16x128xf32, #tpu.memory_space<vmem>>, vector<1x16x1x16x128xf32>
    %30 = vector.shape_cast %29 : vector<1x16x1x16x128xf32> to vector<16x1x16x128xf32>
    %31 = vector.shape_cast %28 : vector<16x1x16x128xf32> to vector<1x16x1x16x128xf32>
    tpu.vector_store %arg8[%c0_23, %c0_24, %c1, %c0_25, %c0_26], %31 {strides = array<i32>} : memref<1x16x4x16x128xf32, #tpu.memory_space<vmem>>, vector<1x16x1x16x128xf32>,
    %32 = vector.extract_strided_slice %21 {offsets = [0, 256], sizes = [256, 128], strides = [1, 1]} : vector<256x512xf32> to vector<256x128xf32>
    %33 = vector.shape_cast %32 : vector<256x128xf32> to vector<16x1x16x128xf32>
    %c0_27 = arith.constant 0 : index
    %c0_28 = arith.constant 0 : index
    %c2 = arith.constant 2 : index
    %c0_29 = arith.constant 0 : index
    %c0_30 = arith.constant 0 : index
    %34 = vector.load %arg8[%c0_27, %c0_28, %c2, %c0_29, %c0_30] : memref<1x16x4x16x128xf32, #tpu.memory_space<vmem>>, vector<1x16x1x16x128xf32>
    %35 = vector.shape_cast %34 : vector<1x16x1x16x128xf32> to vector<16x1x16x128xf32>
    %36 = vector.shape_cast %33 : vector<16x1x16x128xf32> to vector<1x16x1x16x128xf32>
    tpu.vector_store %arg8[%c0_27, %c0_28, %c2, %c0_29, %c0_30], %36 {strides = array<i32>} : memref<1x16x4x16x128xf32, #tpu.memory_space<vmem>>, vector<1x16x1x16x128xf32>,
    %37 = vector.extract_strided_slice %21 {offsets = [0, 384], sizes = [256, 128], strides = [1, 1]} : vector<256x512xf32> to vector<256x128xf32>
    %38 = vector.shape_cast %37 : vector<256x128xf32> to vector<16x1x16x128xf32>
    %c0_31 = arith.constant 0 : index
    %c0_32 = arith.constant 0 : index
    %c3 = arith.constant 3 : index
    %c0_33 = arith.constant 0 : index
    %c0_34 = arith.constant 0 : index
    %39 = vector.load %arg8[%c0_31, %c0_32, %c3, %c0_33, %c0_34] : memref<1x16x4x16x128xf32, #tpu.memory_space<vmem>>, vector<1x16x1x16x128xf32>
    %40 = vector.shape_cast %39 : vector<1x16x1x16x128xf32> to vector<16x1x16x128xf32>
    %41 = vector.shape_cast %38 : vector<16x1x16x128xf32> to vector<1x16x1x16x128xf32>
    tpu.vector_store %arg8[%c0_31, %c0_32, %c3, %c0_33, %c0_34], %41 {strides = array<i32>} : memref<1x16x4x16x128xf32, #tpu.memory_space<vmem>>, vector<1x16x1x16x128xf32>,
    return
  }
  func.func @transform_0(%arg0: i32, %arg1: i32) -> (i32, i32, i32) {
    %c0_i32 = arith.constant 0 : i32
    %c0_i32_0 = arith.constant 0 : i32
    return %arg0, %c0_i32, %arg1 : i32, i32, i32
  }
  func.func @transform_1(%arg0: i32, %arg1: i32) -> (i32, i32) {
    %c0_i32 = arith.constant 0 : i32
    %c0_i32_0 = arith.constant 0 : i32
    %c0_i32_1 = arith.constant 0 : i32
    return %c0_i32, %c0_i32_0 : i32, i32
  }
  func.func @transform_2(%arg0: i32, %arg1: i32) -> (i32, i32) {
    %c0_i32 = arith.constant 0 : i32
    %c0_i32_0 = arith.constant 0 : i32
    %c0_i32_1 = arith.constant 0 : i32
    return %c0_i32, %c0_i32_0 : i32, i32
  }
  func.func @transform_3(%arg0: i32, %arg1: i32) -> (i32, i32) {
    %c0_i32 = arith.constant 0 : i32
    %c0_i32_0 = arith.constant 0 : i32
    %c0_i32_1 = arith.constant 0 : i32
    return %c0_i32, %c0_i32_0 : i32, i32
  }
  func.func @transform_4(%arg0: i32, %arg1: i32) -> (i32, i32) {
    %c0_i32 = arith.constant 0 : i32
    %c0_i32_0 = arith.constant 0 : i32
    %c0_i32_1 = arith.constant 0 : i32
    return %c0_i32, %c0_i32_0 : i32, i32
  }
  func.func @transform_5(%arg0: i32, %arg1: i32) -> (i32, i32) {
    %c0_i32 = arith.constant 0 : i32
    %c0_i32_0 = arith.constant 0 : i32
    %c0_i32_1 = arith.constant 0 : i32
    return %c0_i32, %c0_i32_0 : i32, i32
  }
  func.func @transform_6(%arg0: i32, %arg1: i32) -> (i32, i32, i32, i32, i32) {
    %c0_i32 = arith.constant 0 : i32
    %c0_i32_0 = arith.constant 0 : i32
    %c0_i32_1 = arith.constant 0 : i32
    %c0_i32_2 = arith.constant 0 : i32
    return %arg0, %arg1, %c0_i32, %c0_i32_0, %c0_i32_1 : i32, i32, i32, i32, i32
  }
}

</mosaic_0001>

<bundles_post_ra>
// kernel: tpu_custom_call.1
= control target key start
LH: loop header
LB: loop body
LE: loop exit
PB: predicated region body
PF: predicated region fallthrough
CT: control target
= control target key end

     0   :  { %11 = vsyncpa [#allocation3], 0  ;;  %s8868_s0 = inlined_call_operand.vmem [shape: f32[2,32,256], index: 0, kind: input, shape index: {}]   ;;  %s8869_s1 = inlined_call_operand.vmem [shape: f32[32,512], index: 1, kind: input, shape index: {}]   ;;  %s8870_s2 = inlined_call_operand.vmem [shape: f32[32,16], index: 2, kind: input, shape index: {}]   ;;  %s8871_s3 = inlined_call_operand.vmem [shape: f32[512,16], index: 3, kind: input, shape index: {}]   ;;  %s8872_s4 = inlined_call_operand.vmem [shape: f32[512,16], index: 4, kind: input, shape index: {}]   ;;  %s8873_s5 = inlined_call_operand.vmem [shape: f32[1,512], index: 5, kind: input, shape index: {}]   ;;  %s8874_s6 = inlined_call_operand.hbm [shape: f32[2,16,4,16,128], index: 6, kind: output, shape index: {}]  }
   0x1   :  { %13 = vsyncpa [#allocation3 + $0x1], 0  ;;  %s5811_s21 = smov 0   ;;  %s5813_s22 = smov 0  }
   0x2   :  { %s5815_s23 = smov 0   ;;  %s5817_s24 = smov 0  }
   0x3   :  { %s5819_s25 = smov 0   ;;  %s5821_s26 = smov 0  }
   0x4 LB: > { %s4249_s27 = sadd.s32 4294967295, %s5769_s26   ;;  %s4250_s28 = sadd.s32 4294967294, %s5769_s26   ;;  %s5769_s26 = sphi %s5821_s26, %s19_s26   ;;  %s5765_s25 = sphi %s5819_s25, %s9404_s25   ;;  %s5761_s24 = sphi %s5817_s24, %s9403_s24   ;;  %s5757_s23 = sphi %s5815_s23, %s9402_s23   ;;  %s5753_s22 = sphi %s5813_s22, %s9401_s22   ;;  %s5749_s21 = sphi %s5811_s21, %s9400_s21  }
   0x5   : > { %s31_s29 = sadd.s32 1, %s5765_s25  ;;  %s173_s30 = sadd.s32 1, %s5757_s23 }
   0x6   : > { %p33_p0 = scmp.ge.s32.totalorder %s31_s29, 2  ;;  %p183_p1 = scmp.ne.s32.totalorder %s5757_s23, %s5753_s22 }
   0x7   : > { %p184_p2 = scmp.eq.s32.totalorder %s4249_s27, 1  ;;  %p189_p3 = scmp.ne.s32.totalorder %s5753_s22, %s5749_s21 }
   0x8   : > { %s9406_s29 = smov (%p33_p0, %s31_s29), 0  ;;  %p190_p5 = scmp.eq.s32.totalorder %s4250_s28, 1 }
   0x9   : > { %p5851_p4 = por %p184_p2, %p183_p1  ;;  %s168_s8 = ssub.s32 %s5765_s25, %s9406_s29 }
   0xa   : > { %p4253_p6 = scmp.ge.s32.totalorder %s5769_s26, 1  ;;  %p171_p7 = scmp.eq.s32.totalorder %s168_s8, 0 }
   0xb   : > { %p5858_p8 = por %p190_p5, %p189_p3  ;;  %p236_p9 = scmp.lt.s32.totalorder %s5769_s26, 3 }
   0xc   : > { %s5864_s10 = scalar_select %p171_p7, %s5757_s23, %s173_s30  }
   0xd   : > { %p237_p10 = pnand %p4253_p6, %p236_p9 }
   0xf   : > { %240 = sbr.rel (%p237_p10) target bundleno = 1526 (0x5f6), region = 44 }
  0x16   : > { %p271_p11 = scmp.lt.s32.totalorder %s5761_s24, 1  ;;  %v290_v0 = vld [vmem:[%s8869_s1 + $0x8] sm:$0xff]  ;;  %v289_v2 = vld [vmem:[%s8869_s1] sm:$0xff]  ;;  %v5771_v7 = vmov 0.0   ;;  %v292_v24 = vld [vmem:[%s8869_s1 + $0x18] sm:$0xff]  ;;  %vm369_vm0 = vcmask 261120  }
  0x17   : > { %v294_v1 = vld [vmem:[%s8869_s1 + $0x28] sm:$0xff]  ;;  %v293_v4 = vld [vmem:[%s8869_s1 + $0x20] sm:$0xff]  ;;  %530 = vmatprep.mubr.f32.mxu0 %v5771_v7  ;;  %674 = vmatprep.mubr.f32.mxu1 %v5771_v7  ;;  %v296_v25 = vld [vmem:[%s8869_s1 + $0x38] sm:$0xff]  ;;  %vm1273_vm1 = vcmask 130048   ;;  %s5773_s15 = smov [#allocation2]  }
  0x18   : > { %v5188_v3 = vpack.c.bf16 %v294_v1, %v290_v0  ;;  %v298_v5 = vld [vmem:[%s8869_s1 + $0x48] sm:$0xff]  ;;  %s272_s30 = scalar_select %p271_p11, %s5761_s24, 1  ;;  %v5190_v8 = vpack.c.bf16 %v293_v4, %v289_v2  ;;  %v297_v10 = vld [vmem:[%s8869_s1 + $0x40] sm:$0xff]  ;;  %v5196_v26 = vpack.c.bf16 %v296_v25, %v292_v24  ;;  %v982_v27 = vld [vmem:[%s8870_s2 + $0x10] sm:$0xff] }
  0x19   : > { %v302_v6 = vld [vmem:[%s8869_s1 + $0x68] sm:$0xff]  ;;  %v301_v11 = vld [vmem:[%s8869_s1 + $0x60] sm:$0xff]  ;;  %v983_v28 = vld [vmem:[%s8870_s2 + $0x18] sm:$0xff]  ;;  %s5695_s16 = sshll.u32 %s5773_s15, 4  ;;  %s5696_s16 = int_to_ptr.vmem [resolvable:$false] %s5695_s16 }
  0x1a   : > { %v5192_v9 = vpack.c.bf16 %v302_v6, %v298_v5  ;;  %v980_v12 = vld [vmem:[%s8870_s2] sm:$0xff]  ;;  %5189 = vmatprep.subr.bf16.mxu0 %v5188_v3  ;;  %v981_v13 = vld [vmem:[%s8870_s2 + $0x8] sm:$0xff]  ;;  %5500 = vmatprep.subr.bf16.mxu1 %v5188_v3  ;;  %s4710_s18 = sshll.u32 %s272_s30, 6  ;;  %v5194_v14 = vpack.c.bf16 %v301_v11, %v297_v10  ;;  %v5208_v29 = vpack.c.bf16 %v983_v28, %v982_v27  ;;  %v291_v46 = vld [vmem:[%s8869_s1 + $0x10] sm:$0xff]  ;;  %v8991_v6 = vmov 0  ;;  %s4711_s30 = sshll.u32 %s5761_s24, 14 }
  0x1b   : > { %5191 = vmatpush1.bf16.msra.mxu0 %v5190_v8  ;;  %5502 = vmatpush1.bf16.msra.mxu1 %v5190_v8  ;;  %s278_s27 = scalar_lea.vmem %s8868_s0, %s4710_s18  ;;  %v5204_v15 = vpack.c.bf16 %v981_v13, %v980_v12  ;;  %v295_v47 = vld [vmem:[%s8869_s1 + $0x30] sm:$0xff]  ;;  %v300_v48 = vld [vmem:[%s8869_s1 + $0x58] sm:$0xff]  ;;  %v1225_v3 = vld [vmem:[%s8872_s4 + $0x80] sm:$0xff]  ;;  %s267_s18 = sand.u32 1, %s5753_s22  }
  0x1c   : > { %5193 = vmatprep.subr.bf16.mxu0 %v5192_v9  ;;  %5501 = vmatprep.subr.bf16.mxu1 %v5192_v9  ;;  %v282_v16 = vld [vmem:[%s278_s27 + $0x8] sm:$0xff]  ;;  %v281_v17 = vld [vmem:[%s278_s27] sm:$0xff]  ;;  %v284_v18 = vld [vmem:[%s278_s27 + $0x18] sm:$0xff]  ;;  %v5198_v50 = vpack.c.bf16 %v295_v47, %v291_v46  ;;  %s8813_s13 = scalar_lea.hbm %s8874_s6, %s4711_s30  ;;  %s8822_s24 = scalar_lea.sflag [#allocation3], %s267_s18 }
  0x1d   : > { %337 = vxpose.xlu1.b32.start [1/4] (short) %v282_v16, 128  ;;  %305 = vxpose.xlu0.b32.start [1/4] (short) %v281_v17, 128  ;;  %v283_v19 = vld [vmem:[%s278_s27 + $0x10] sm:$0xff]  ;;  %v286_v20 = vld [vmem:[%s278_s27 + $0x28] sm:$0xff]  ;;  %v285_v21 = vld [vmem:[%s278_s27 + $0x20] sm:$0xff]  ;;  %s5697_s17 = scalar_lea.vmem %s5696_s16, 32768 }
  0x1e   : > { %v288_v22 = vld [vmem:[%s278_s27 + $0x38] sm:$0xff]  ;;  %v287_v23 = vld [vmem:[%s278_s27 + $0x30] sm:$0xff]  ;;  %v1226_v4 = vld [vmem:[%s8872_s4 + $0x88] sm:$0xff]  ;;  %s4254_s27 = sshll.u32 %s267_s18, 10 }
  0x1f   : > { %5195 = vmatpush1.bf16.msra.mxu0 %v5194_v14  ;;  %5503 = vmatpush1.bf16.msra.mxu1 %v5194_v14  ;;  %v304_v49 = vld [vmem:[%s8869_s1 + $0x78] sm:$0xff]  ;;  %v299_v54 = vld [vmem:[%s8869_s1 + $0x50] sm:$0xff]  ;;  %v6055_v5 = vpack.c.bf16 %v1226_v4, %v1225_v3  ;;  %vm6059_vm2 = vmpackc.low %vm1273_vm1, %vm1273_vm1  ;;  %s8383_s28 = scalar_lea.vmem [#allocation2], %s4254_s27 }
  0x20   : > { %5205 = vmatprep.subr.bf16.mxu0 %v5204_v15  ;;  %5197 = vmatprep.subr.bf16.mxu1 %v5196_v26  ;;  %v5200_v53 = vpack.c.bf16 %v304_v49, %v300_v48  ;;  %v303_v55 = vld [vmem:[%s8869_s1 + $0x70] sm:$0xff]  ;;  %v8992_v6 = vsel %vm6059_vm2, 4294967295, %v8991_v6  ;;  %v1209_v12 = vld [vmem:[%s8872_s4] sm:$0xff]  ;;  %v1210_v13 = vld [vmem:[%s8872_s4 + $0x8] sm:$0xff]  ;;  %s4170_s8 = sshll.u32 %s8383_s28, 4  ;;  %s8815_s8 = int_to_ptr.vmem [resolvable:$true] %s4170_s8 }
  0x21   : > { %338 = vxpose.xlu1.b32.cont [2/4] (short) %v284_v18, 128  ;;  %306 = vxpose.xlu0.b32.cont [2/4] (short) %v283_v19, 128  ;;  %v5202_v56 = vpack.c.bf16 %v303_v55, %v299_v54  ;;  %8993 = vst [vmem:[#allocation5_spill] sm:$0xff] %v8992_v6  ;;  %v1227_v14 = vld [vmem:[%s8872_s4 + $0x90] sm:$0xff]  ;;  %v6098_v16 = vpack.c.bf16 %v1210_v13, %v1209_v12  ;;  %v1212_v19 = vld [vmem:[%s8872_s4 + $0x18] sm:$0xff]  ;;  %v1214_v25 = vld [vmem:[%s8872_s4 + $0x28] sm:$0xff]  ;;  %s5691_s14 = scalar_lea.vmem %s8815_s8, 16384  ;;  %p5698_p1 = scmp.lt.s32.totalorder %s8815_s8, %s5696_s16 }
  0x22   : > { %v1211_v18 = vld [vmem:[%s8872_s4 + $0x10] sm:$0xff]  ;;  %v1232_v28 = vld [vmem:[%s8872_s4 + $0xb8] sm:$0xff]  ;;  %v1218_v48 = vld [vmem:[%s8872_s4 + $0x48] sm:$0xff]  ;;  %p5692_p12 = scmp.ne.s32.totalorder %s8815_s8, %s5691_s14  ;;  %p5699_p2 = scmp.lt.s32.totalorder %s5697_s17, %s5691_s14 }
  0x23   : > { %v1231_v27 = vld [vmem:[%s8872_s4 + $0xb0] sm:$0xff]  ;;  %v1241_v49 = vld [vmem:[%s8872_s4 + $0x100] sm:$0xff]  ;;  %v1260_v55 = vld [vmem:[%s8872_s4 + $0x198] sm:$0xff] }
  0x24   : > { %v1259_v54 = vld [vmem:[%s8872_s4 + $0x190] sm:$0xff]  ;;  %v1236_v3 = vld [vmem:[%s8872_s4 + $0xd8] sm:$0xff]  ;;  %v1245_v12 = vld [vmem:[%s8872_s4 + $0x120] sm:$0xff]  ;;  %p5693_p13 = pnand %p5692_p12, %p5851_p4  ;;  %p5700_p3 = por %p5699_p2, %p5698_p1 }
  0x25   : > { %339 = vxpose.xlu1.b32.cont [3/4] (short) %v286_v20, 128  ;;  %307 = vxpose.xlu0.b32.cont [3/4] (short) %v285_v21, 128  ;;  %v6126_v20 = vpack.c.bf16 %v1212_v19, %v1211_v18  ;;  %v1229_v21 = vld [vmem:[%s8872_s4 + $0xa0] sm:$0xff]  ;;  %v1219_v4 = vld [vmem:[%s8872_s4 + $0x50] sm:$0xff]  ;;  %v1246_v13 = vld [vmem:[%s8872_s4 + $0x128] sm:$0xff] }
  0x26   : > { %v1264_v18 = vld [vmem:[%s8872_s4 + $0x1b8] sm:$0xff]  ;;  %p5694_p0 = pneg %p5693_p13 }
  0x28   : > { %p5701_p5 = pnand %p5700_p3, %p5694_p0 }
  0x29   : > { %340 = vxpose.xlu1.b32.end [4/4] (short) %v288_v22, 128  ;;  %308 = vxpose.xlu0.b32.end [4/4] (short) %v287_v23, 128  ;;  %v1230_v22 = vld [vmem:[%s8872_s4 + $0xa8] sm:$0xff]  ;;  %v1213_v23 = vld [vmem:[%s8872_s4 + $0x20] sm:$0xff] }
  0x2a   : > { %v6164_v24 = vpack.c.bf16 %v1230_v22, %v1229_v21  ;;  %v6169_v26 = vpack.c.bf16 %v1214_v25, %v1213_v23  ;;  %v1247_v21 = vld [vmem:[%s8872_s4 + $0x130] sm:$0xff]  ;;  %v1248_v22 = vld [vmem:[%s8872_s4 + $0x138] sm:$0xff]  ;;  %v1265_v23 = vld [vmem:[%s8872_s4 + $0x1c0] sm:$0xff] }
  0x2b   : > { %v1237_v25 = vld [vmem:[%s8872_s4 + $0xe0] sm:$0xff] }
  0x9d   : > { %v5915_v30 = vpop.trf.xlu1  ;;  %v5917_v31 = vpop.trf.xlu0 }
  0x9e   : > { %4257 = vmatmul.mubr.msk.f32.vlgmr.msra.gmra.mrb[0].mxu0 %vm369_vm0, %v5917_v31 }
  0x9f   : > { %5207 = vmatpush3.bf16.msra.mxu0 %v5204_v15  ;;  %536 = vmatprep.mubr.f32.mxu0 %v5771_v7  ;;  %v1228_v15 = vld [vmem:[%s8872_s4 + $0x98] sm:$0xff] }
  0xa0   : > { %5209 = vmatprep.subr.bf16.mxu0 %v5208_v29  ;;  %v6100_v17 = vpack.c.bf16 %v1228_v15, %v1227_v14  ;;  %v6381_v15 = vpack.c.bf16 %v1246_v13, %v1245_v12  ;;  %v1271_v12 = vld [vmem:[%s8872_s4 + $0x1f0] sm:$0xff]  ;;  %v1272_v13 = vld [vmem:[%s8872_s4 + $0x1f8] sm:$0xff] }
  0xa1   : > { %v5922_v32 = vpop.trf.xlu1  ;;  %v5924_v33 = vpop.trf.xlu0 }
  0xa2   : > { %4258 = vmatmul.mubr.msk.f32.gmra.mrb[2].mxu0 %vm369_vm0, %v5924_v33 }
  0xa3   : > { %542 = vmatprep.mubr.f32.mxu0 %v5771_v7  ;;  %5211 = vmatpush3.bf16.msra.mxu0 %v5208_v29  ;;  %v1215_v29 = vld [vmem:[%s8872_s4 + $0x30] sm:$0xff] }
  0xa5   : > { %v5929_v34 = vpop.trf.xlu1  ;;  %v5931_v35 = vpop.trf.xlu0 }
  0xa6   : > { %4259 = vmatmul.mubr.msk.f32.gmra.mrb[4].mxu0 %vm369_vm0, %v5931_v35 }
  0xa7   : > { %548 = vmatprep.mubr.f32.mxu0 %v5771_v7 }
  0xa9   : > { %v5936_v36 = vpop.trf.xlu1  ;;  %v5938_v37 = vpop.trf.xlu0 }
  0xaa   : > { %4260 = vmatmul.mubr.msk.f32.gmra.mrb[6].mxu0 %vm369_vm0, %v5938_v37 }
  0xab   : > { %554 = vmatprep.mubr.f32.mxu0 %v5771_v7 }
  0xad   : > { %v5943_v38 = vpop.trf.xlu1  ;;  %v5945_v39 = vpop.trf.xlu0 }
  0xae   : > { %4261 = vmatmul.mubr.msk.f32.gmra.mrb[8].mxu0 %vm369_vm0, %v5945_v39 }
  0xaf   : > { %560 = vmatprep.mubr.f32.mxu0 %v5771_v7 }
  0xb1   : > { %v5950_v40 = vpop.trf.xlu1  ;;  %v5952_v41 = vpop.trf.xlu0 }
  0xb2   : > { %4262 = vmatmul.mubr.msk.f32.gmra.mrb[10].mxu0 %vm369_vm0, %v5952_v41 }
  0xb3   : > { %566 = vmatprep.mubr.f32.mxu0 %v5771_v7 }
  0xb5   : > { %v5957_v42 = vpop.trf.xlu1  ;;  %v5959_v43 = vpop.trf.xlu0 }
  0xb6   : > { %4263 = vmatmul.mubr.msk.f32.gmra.mrb[12].mxu0 %vm369_vm0, %v5959_v43 }
  0xb7   : > { %572 = vmatprep.mubr.f32.mxu0 %v5771_v7 }
  0xb9   : > { %v5964_v44 = vpop.trf.xlu1  ;;  %v5966_v45 = vpop.trf.xlu0 }
  0xba   : > { %4264 = vmatmul.mubr.msk.f32.gmra.mrb[14].mxu0 %vm369_vm0, %v5966_v45 }
  0xbb   : > { %578 = vmatprep.mubr.f32.mxu0 %v5771_v7 }
  0xbd   : > { %v5983_v51 = vpop.trf.xlu1  ;;  %v5985_v52 = vpop.trf.xlu0 }
  0xbe   : > { %4265 = vmatmul.mubr.msk.f32.gmra.mrb[16].mxu0 %vm369_vm0, %v5985_v52  ;;  %4281 = vmatmul.mubr.msk.f32.vlgmr.msra.gmra.mrb[0].mxu1 %vm369_vm0, %v5983_v51 }
  0xbf   : > { %680 = vmatprep.mubr.f32.mxu1 %v5771_v7  ;;  %584 = vmatprep.mubr.f32.mxu0 %v5771_v7 }
  0xc0   : > { %5199 = vmatpush1.bf16.msra.mxu1 %v5198_v50  ;;  %v1242_v50 = vld [vmem:[%s8872_s4 + $0x108] sm:$0xff] }
  0xc1   : > { %v5999_v57 = vpop.trf.xlu1  ;;  %v6001_v58 = vpop.trf.xlu0  ;;  %5201 = vmatprep.subr.bf16.mxu1 %v5200_v53  ;;  %v6287_v53 = vpack.c.bf16 %v1242_v50, %v1241_v49  ;;  %v1251_v49 = vld [vmem:[%s8872_s4 + $0x150] sm:$0xff]  ;;  %v1252_v50 = vld [vmem:[%s8872_s4 + $0x158] sm:$0xff] }
  0xc2   : > { %4266 = vmatmul.mubr.msk.f32.gmra.mrb[18].mxu0 %vm369_vm0, %v6001_v58  ;;  %4282 = vmatmul.mubr.msk.f32.gmra.mrb[2].mxu1 %vm369_vm0, %v5999_v57 }
  0xc3   : > { %686 = vmatprep.mubr.f32.mxu1 %v5771_v7  ;;  %590 = vmatprep.mubr.f32.mxu0 %v5771_v7 }
  0xc4   : > { %5203 = vmatpush1.bf16.msra.mxu1 %v5202_v56  ;;  %v6315_v56 = vpack.c.bf16 %v1260_v55, %v1259_v54  ;;  %v1269_v54 = vld [vmem:[%s8872_s4 + $0x1e0] sm:$0xff]  ;;  %v1270_v55 = vld [vmem:[%s8872_s4 + $0x1e8] sm:$0xff] }
  0xc5   : > { %v6009_v59 = vpop.trf.xlu1  ;;  %v6011_v60 = vpop.trf.xlu0  ;;  %5214 = vmatprep.subr.msk.bf16.mxu1 %vm6059_vm2, %v6055_v5 }
  0xc6   : > { %4267 = vmatmul.mubr.msk.f32.gmra.mrb[20].mxu0 %vm369_vm0, %v6011_v60  ;;  %4283 = vmatmul.mubr.msk.f32.gmra.mrb[4].mxu1 %vm369_vm0, %v6009_v59  ;;  %8995 = vst [vmem:[#allocation7_spill] sm:$0xff] %v6315_v56 }
  0xc7   : > { %692 = vmatprep.mubr.f32.mxu1 %v5771_v7  ;;  %596 = vmatprep.mubr.f32.mxu0 %v5771_v7 }
  0xc9   : > { %v6019_v61 = vpop.trf.xlu1  ;;  %v6021_v62 = vpop.trf.xlu0 }
  0xca   : > { %4268 = vmatmul.mubr.msk.f32.gmra.mrb[22].mxu0 %vm369_vm0, %v6021_v62  ;;  %4284 = vmatmul.mubr.msk.f32.gmra.mrb[6].mxu1 %vm369_vm0, %v6019_v61 }
  0xcb   : > { %698 = vmatprep.mubr.f32.mxu1 %v5771_v7  ;;  %602 = vmatprep.mubr.f32.mxu0 %v5771_v7 }
  0xcd   : > { %v6029_v63 = vpop.trf.xlu1  ;;  %v6031_v0 = vpop.trf.xlu0 }
  0xce   : > { %4269 = vmatmul.mubr.msk.f32.gmra.mrb[24].mxu0 %vm369_vm0, %v6031_v0  ;;  %4285 = vmatmul.mubr.msk.f32.gmra.mrb[8].mxu1 %vm369_vm0, %v6029_v63 }
  0xcf   : > { %704 = vmatprep.mubr.f32.mxu1 %v5771_v7  ;;  %608 = vmatprep.mubr.f32.mxu0 %v5771_v7 }
  0xd1   : > { %v6039_v1 = vpop.trf.xlu1  ;;  %v6041_v2 = vpop.trf.xlu0 }
  0xd2   : > { %4270 = vmatmul.mubr.msk.f32.gmra.mrb[26].mxu0 %vm369_vm0, %v6041_v2  ;;  %4286 = vmatmul.mubr.msk.f32.gmra.mrb[10].mxu1 %vm369_vm0, %v6039_v1 }
  0xd3   : > { %710 = vmatprep.mubr.f32.mxu1 %v5771_v7  ;;  %614 = vmatprep.mubr.f32.mxu0 %v5771_v7 }
  0xd5   : > { %v6063_v8 = vpop.trf.xlu1  ;;  %v6065_v9 = vpop.trf.xlu0 }
  0xd6   : > { %4271 = vmatmul.mubr.msk.f32.gmra.mrb[28].mxu0 %vm369_vm0, %v6065_v9  ;;  %4287 = vmatmul.mubr.msk.f32.gmra.mrb[12].mxu1 %vm369_vm0, %v6063_v8 }
  0xd7   : > { %716 = vmatprep.mubr.f32.mxu1 %v5771_v7  ;;  %620 = vmatprep.mubr.f32.mxu0 %v5771_v7 }
  0xd9   : > { %v6076_v10 = vpop.trf.xlu1  ;;  %v6078_v11 = vpop.trf.xlu0 }
  0xda   : > { %4272 = vmatmul.mubr.msk.f32.gmra.mrb[30].mxu0 %vm369_vm0, %v6078_v11  ;;  %4288 = vmatmul.mubr.msk.f32.gmra.mrb[14].mxu1 %vm369_vm0, %v6076_v10 }
  0xdb   : > { %626 = vmatprep.mubr.f32.mxu0 %v5771_v7  ;;  %787 = vmatprep.mubr.f32.mxu1 %v5771_v7 }
  0xde   : > { %4273 = vmatmul.mubr.msk.f32.gmra.mrb[32].mxu0 %vm369_vm0, %v5915_v30  ;;  %4289 = vmatmul.mubr.msk.f32.vlgmr.msra.gmra.mrb[16].mxu1 %vm369_vm0, %v5917_v31 }
  0xdf   : > { %632 = vmatprep.mubr.f32.mxu0 %v5771_v7  ;;  %793 = vmatprep.mubr.f32.mxu1 %v5771_v7 }
  0xe0   : > { %5217 = vmatpush3.bf16.xpose.msk.msra.mxu1 %vm6059_vm2, %v6098_v16 }
  0xe1   : > { %5220 = vmatprep.subr.msk.bf16.mxu1 %vm6059_vm2, %v6100_v17 }
  0xe2   : > { %4274 = vmatmul.mubr.msk.f32.gmra.mrb[34].mxu0 %vm369_vm0, %v5922_v32  ;;  %4290 = vmatmul.mubr.msk.f32.gmra.mrb[18].mxu1 %vm369_vm0, %v5924_v33 }
  0xe3   : > { %638 = vmatprep.mubr.f32.mxu0 %v5771_v7  ;;  %799 = vmatprep.mubr.f32.mxu1 %v5771_v7 }
  0xe6   : > { %4275 = vmatmul.mubr.msk.f32.gmra.mrb[36].mxu0 %vm369_vm0, %v5929_v34  ;;  %4291 = vmatmul.mubr.msk.f32.gmra.mrb[20].mxu1 %vm369_vm0, %v5931_v35 }
  0xe7   : > { %644 = vmatprep.mubr.f32.mxu0 %v5771_v7  ;;  %805 = vmatprep.mubr.f32.mxu1 %v5771_v7 }
  0xe8   : > { %5223 = vmatpush3.bf16.xpose.msk.msra.mxu1 %vm6059_vm2, %v6126_v20 }
  0xe9   : > { %5226 = vmatprep.subr.msk.bf16.mxu1 %vm6059_vm2, %v6164_v24 }
  0xea   : > { %4276 = vmatmul.mubr.msk.f32.gmra.mrb[38].mxu0 %vm369_vm0, %v5936_v36  ;;  %4292 = vmatmul.mubr.msk.f32.gmra.mrb[22].mxu1 %vm369_vm0, %v5938_v37 }
  0xeb   : > { %650 = vmatprep.mubr.f32.mxu0 %v5771_v7  ;;  %811 = vmatprep.mubr.f32.mxu1 %v5771_v7 }
  0xee   : > { %4277 = vmatmul.mubr.msk.f32.gmra.mrb[40].mxu0 %vm369_vm0, %v5943_v38  ;;  %4293 = vmatmul.mubr.msk.f32.gmra.mrb[24].mxu1 %vm369_vm0, %v5945_v39 }
  0xef   : > { %656 = vmatprep.mubr.f32.mxu0 %v5771_v7  ;;  %817 = vmatprep.mubr.f32.mxu1 %v5771_v7 }
  0xf0   : > { %5229 = vmatpush3.bf16.xpose.msk.msra.mxu1 %vm6059_vm2, %v6169_v26 }
  0xf2   : > { %4278 = vmatmul.mubr.msk.f32.gmra.mrb[42].mxu0 %vm369_vm0, %v5950_v40  ;;  %4294 = vmatmul.mubr.msk.f32.gmra.mrb[26].mxu1 %vm369_vm0, %v5952_v41 }
  0xf3   : > { %662 = vmatprep.mubr.f32.mxu0 %v5771_v7  ;;  %823 = vmatprep.mubr.f32.mxu1 %v5771_v7 }
  0xf6   : > { %4279 = vmatmul.mubr.msk.f32.gmra.mrb[44].mxu0 %vm369_vm0, %v5957_v42  ;;  %4295 = vmatmul.mubr.msk.f32.gmra.mrb[28].mxu1 %vm369_vm0, %v5959_v43 }
  0xf7   : > { %668 = vmatprep.mubr.f32.mxu0 %v5771_v7  ;;  %829 = vmatprep.mubr.f32.mxu1 %v5771_v7 }
  0xfa   : > { %4280 = vmatmul.mubr.msk.f32.gmra.mrb[46].mxu0 %vm369_vm0, %v5964_v44  ;;  %4296 = vmatmul.mubr.msk.f32.gmra.mrb[30].mxu1 %vm369_vm0, %v5966_v45 }
  0xfb   : > { %5140 = vmatprep.mubr.msk.f32.mxu0 %vm369_vm0, %v5917_v31  ;;  %835 = vmatprep.mubr.f32.mxu1 %v5771_v7  ;;  %v6213_v31 = vpack.c.bf16 %v1232_v28, %v1231_v27  ;;  %v1238_v27 = vld [vmem:[%s8872_s4 + $0xe8] sm:$0xff]  ;;  %v1221_v28 = vld [vmem:[%s8872_s4 + $0x60] sm:$0xff] }
  0xfd   : > { %5232 = vmatprep.subr.msk.bf16.mxu1 %vm6059_vm2, %v6213_v31 }
  0xfe   : > { %4297 = vmatmul.mubr.msk.f32.gmra.mrb[32].mxu1 %vm369_vm0, %v5985_v52  ;;  %5141 = vmatmul.mubr.msk.f32.vlgmr.msra.gmra.mrb[48].mxu0 %vm369_vm0, %v5924_v33  ;;  %v1216_v33 = vld [vmem:[%s8872_s4 + $0x38] sm:$0xff] }
  0xff   : > { %5143 = vmatprep.mubr.msk.f32.mxu0 %vm369_vm0, %v5931_v35  ;;  %841 = vmatprep.mubr.f32.mxu1 %v5771_v7  ;;  %v6218_v35 = vpack.c.bf16 %v1216_v33, %v1215_v29  ;;  %v1222_v33 = vld [vmem:[%s8872_s4 + $0x68] sm:$0xff] }
 0x101   : > { %5235 = vmatpush3.bf16.xpose.msk.msra.mxu1 %vm6059_vm2, %v6218_v35 }
 0x102   : > { %4298 = vmatmul.mubr.msk.f32.gmra.mrb[34].mxu1 %vm369_vm0, %v6001_v58  ;;  %5144 = vmatmul.mubr.msk.f32.gmra.mrb[50].mxu0 %vm369_vm0, %v5938_v37  ;;  %v1257_v37 = vld [vmem:[%s8872_s4 + $0x180] sm:$0xff] }
 0x103   : > { %5146 = vmatprep.mubr.msk.f32.mxu0 %vm369_vm0, %v5945_v39  ;;  %847 = vmatprep.mubr.f32.mxu1 %v5771_v7  ;;  %v1258_v39 = vld [vmem:[%s8872_s4 + $0x188] sm:$0xff] }
 0x104   : > { %v6266_v46 = vpack.c.bf16 %v1258_v39, %v1257_v37  ;;  %v1249_v37 = vld [vmem:[%s8872_s4 + $0x140] sm:$0xff]  ;;  %v1250_v39 = vld [vmem:[%s8872_s4 + $0x148] sm:$0xff] }
 0x106   : > { %4299 = vmatmul.mubr.msk.f32.gmra.mrb[36].mxu1 %vm369_vm0, %v6011_v60  ;;  %5147 = vmatmul.mubr.msk.f32.gmra.mrb[52].mxu0 %vm369_vm0, %v5952_v41  ;;  %v1233_v41 = vld [vmem:[%s8872_s4 + $0xc0] sm:$0xff]  ;;  %8994 = vst [vmem:[#allocation6_spill] sm:$0xff] %v6266_v46 }
 0x107   : > { %5149 = vmatprep.mubr.msk.f32.mxu0 %vm369_vm0, %v5959_v43  ;;  %853 = vmatprep.mubr.f32.mxu1 %v5771_v7  ;;  %v1234_v43 = vld [vmem:[%s8872_s4 + $0xc8] sm:$0xff] }
 0x108   : > { %v6271_v47 = vpack.c.bf16 %v1234_v43, %v1233_v41  ;;  %5262 = vmatprep.subr.msk.bf16.mxu0 %vm6059_vm2, %v6266_v46  ;;  %v6470_v41 = vpack.c.bf16 %v1222_v33, %v1221_v28  ;;  %v6475_v43 = vpack.c.bf16 %v1250_v39, %v1249_v37 }
 0x109   : > { %5265 = vmatpush3.bf16.xpose.msk.msra.mxu0 %vm6059_vm2, %v6287_v53 }
 0x10a   : > { %4300 = vmatmul.mubr.msk.f32.gmra.mrb[38].mxu1 %vm369_vm0, %v6021_v62  ;;  %5150 = vmatmul.mubr.msk.f32.gmra.mrb[54].mxu0 %vm369_vm0, %v5966_v45  ;;  %v1217_v45 = vld [vmem:[%s8872_s4 + $0x40] sm:$0xff] }
 0x10b   : > { %5152 = vmatprep.mubr.msk.f32.mxu0 %vm369_vm0, %v5985_v52  ;;  %859 = vmatprep.mubr.f32.mxu1 %v5771_v7  ;;  %v6282_v52 = vpack.c.bf16 %v1218_v48, %v1217_v45  ;;  %v1268_v45 = vld [vmem:[%s8872_s4 + $0x1d8] sm:$0xff] }
 0x10c   : > { %5238 = vmatprep.subr.msk.bf16.mxu1 %vm6059_vm2, %v6271_v47  ;;  %5268 = vmatprep.subr.msk.bf16.mxu0 %vm6059_vm2, %v6315_v56 }
 0x10d   : > { %5241 = vmatpush3.bf16.xpose.msk.msra.mxu1 %vm6059_vm2, %v6282_v52 }
 0x10e   : > { %4301 = vmatmul.mubr.msk.f32.gmra.mrb[40].mxu1 %vm369_vm0, %v6031_v0  ;;  %5153 = vmatmul.mubr.msk.f32.gmra.mrb[56].mxu0 %vm369_vm0, %v6001_v58  ;;  %v1243_v58 = vld [vmem:[%s8872_s4 + $0x110] sm:$0xff] }
 0x10f   : > { %5155 = vmatprep.mubr.msk.f32.mxu0 %vm369_vm0, %v6011_v60  ;;  %865 = vmatprep.mubr.f32.mxu1 %v5771_v7  ;;  %v1244_v60 = vld [vmem:[%s8872_s4 + $0x118] sm:$0xff] }
 0x112   : > { %4302 = vmatmul.mubr.msk.f32.gmra.mrb[42].mxu1 %vm369_vm0, %v6041_v2  ;;  %5156 = vmatmul.mubr.msk.f32.gmra.mrb[58].mxu0 %vm369_vm0, %v6021_v62  ;;  %v6329_v62 = vpack.c.bf16 %v1244_v60, %v1243_v58  ;;  %v1240_v58 = vld [vmem:[%s8872_s4 + $0xf8] sm:$0xff]  ;;  %v1223_v60 = vld [vmem:[%s8872_s4 + $0x70] sm:$0xff] }
 0x113   : > { %5158 = vmatprep.mubr.msk.f32.mxu0 %vm369_vm0, %v6031_v0  ;;  %871 = vmatprep.mubr.f32.mxu1 %v5771_v7  ;;  %v1261_v0 = vld [vmem:[%s8872_s4 + $0x1a0] sm:$0xff] }
 0x114   : > { %5271 = vmatpush3.bf16.xpose.msk.msra.mxu0 %vm6059_vm2, %v6329_v62 }
 0x116   : > { %4303 = vmatmul.mubr.msk.f32.gmra.mrb[44].mxu1 %vm369_vm0, %v6065_v9  ;;  %5159 = vmatmul.mubr.msk.f32.gmra.mrb[60].mxu0 %vm369_vm0, %v6041_v2  ;;  %v1235_v2 = vld [vmem:[%s8872_s4 + $0xd0] sm:$0xff] }
 0x117   : > { %5161 = vmatprep.mubr.msk.f32.mxu0 %vm369_vm0, %v6065_v9  ;;  %877 = vmatprep.mubr.f32.mxu1 %v5771_v7 }
 0x11a   : > { %4304 = vmatmul.mubr.msk.f32.gmra.mrb[46].mxu1 %vm369_vm0, %v6078_v11  ;;  %5162 = vmatmul.mubr.msk.f32.gmra.mrb[62].mxu0 %vm369_vm0, %v6078_v11  ;;  %v1220_v11 = vld [vmem:[%s8872_s4 + $0x58] sm:$0xff] }
 0x11b   : > { %5164 = vmatprep.mubr.msk.f32.mxu0 %vm369_vm0, %v5915_v30  ;;  %883 = vmatprep.mubr.f32.mxu1 %v5771_v7  ;;  %v6376_v14 = vpack.c.bf16 %v1220_v11, %v1219_v4 }
 0x11e   : > { %4305 = vmatmul.mubr.msk.f32.gmra.mrb[48].mxu1 %vm369_vm0, %v5915_v30  ;;  %5165 = vmatmul.mubr.msk.f32.gmra.mrb[64].mxu0 %vm369_vm0, %v5922_v32  ;;  %v1262_v30 = vld [vmem:[%s8872_s4 + $0x1a8] sm:$0xff] }
 0x11f   : > { %5167 = vmatprep.mubr.msk.f32.mxu0 %vm369_vm0, %v5929_v34  ;;  %889 = vmatprep.mubr.f32.mxu1 %v5771_v7  ;;  %v6360_v9 = vpack.c.bf16 %v1262_v30, %v1261_v0  ;;  %v6540_v0 = vpack.c.bf16 %v1270_v55, %v1269_v54 }
 0x121   : > { %8996 = vst [vmem:[#allocation8_spill] sm:$0xff] %v6360_v9  ;;  %5274 = vmatprep.subr.msk.bf16.mxu0 %vm6059_vm2, %v6360_v9  ;;  %9000 = vst [vmem:[#allocation12_spill] sm:$0xff] %v6540_v0 }
 0x122   : > { %4306 = vmatmul.mubr.msk.f32.gmra.mrb[50].mxu1 %vm369_vm0, %v5922_v32  ;;  %5168 = vmatmul.mubr.msk.f32.gmra.mrb[66].mxu0 %vm369_vm0, %v5936_v36  ;;  %v6365_v32 = vpack.c.bf16 %v1236_v3, %v1235_v2  ;;  %v1253_v2 = vld [vmem:[%s8872_s4 + $0x160] sm:$0xff]  ;;  %v1254_v3 = vld [vmem:[%s8872_s4 + $0x168] sm:$0xff] }
 0x123   : > { %5170 = vmatprep.mubr.msk.f32.mxu0 %vm369_vm0, %v5943_v38  ;;  %895 = vmatprep.mubr.f32.mxu1 %v5771_v7  ;;  %v6559_v11 = vpack.c.bf16 %v1254_v3, %v1253_v2 }
 0x124   : > { %5244 = vmatprep.subr.msk.bf16.mxu1 %vm6059_vm2, %v6365_v32  ;;  %5277 = vmatpush3.bf16.xpose.msk.msra.mxu0 %vm6059_vm2, %v6381_v15 }
 0x125   : > { %5247 = vmatpush3.bf16.xpose.msk.msra.mxu1 %vm6059_vm2, %v6376_v14 }
 0x126   : > { %4307 = vmatmul.mubr.msk.f32.gmra.mrb[52].mxu1 %vm369_vm0, %v5929_v34  ;;  %5171 = vmatmul.mubr.msk.f32.gmra.mrb[68].mxu0 %vm369_vm0, %v5950_v40  ;;  %v1263_v34 = vld [vmem:[%s8872_s4 + $0x1b0] sm:$0xff] }
 0x127   : > { %5173 = vmatprep.mubr.msk.f32.mxu0 %vm369_vm0, %v5957_v42  ;;  %901 = vmatprep.mubr.f32.mxu1 %v5771_v7  ;;  %v6409_v19 = vpack.c.bf16 %v1264_v18, %v1263_v34  ;;  %v1255_v34 = vld [vmem:[%s8872_s4 + $0x170] sm:$0xff]  ;;  %v1256_v18 = vld [vmem:[%s8872_s4 + $0x178] sm:$0xff] }
 0x129   : > { %8997 = vst [vmem:[#allocation9_spill] sm:$0xff] %v6409_v19  ;;  %5280 = vmatprep.subr.msk.bf16.mxu0 %vm6059_vm2, %v6409_v19 }
 0x12a   : > { %4308 = vmatmul.mubr.msk.f32.gmra.mrb[54].mxu1 %vm369_vm0, %v5936_v36  ;;  %5174 = vmatmul.mubr.msk.f32.gmra.mrb[70].mxu0 %vm369_vm0, %v5964_v44  ;;  %v6423_v36 = vpack.c.bf16 %v1248_v22, %v1247_v21  ;;  %v6593_v21 = vpack.c.bf16 %v1256_v18, %v1255_v34 }
 0x12b   : > { %907 = vmatprep.mubr.f32.mxu1 %v5771_v7  ;;  %5176 = vmatprep.mubr.msk.f32.mxu0 %vm369_vm0, %v5983_v51 }
 0x12c   : > { %5283 = vmatpush3.bf16.xpose.msk.msra.mxu0 %vm6059_vm2, %v6423_v36  ;;  %9002 = vst [vmem:[#allocation14_spill] sm:$0xff] %v6593_v21 }
 0x12e   : > { %4309 = vmatmul.mubr.msk.f32.gmra.mrb[56].mxu1 %vm369_vm0, %v5943_v38  ;;  %5177 = vmatmul.mubr.msk.f32.gmra.mrb[72].mxu0 %vm369_vm0, %v5999_v57  ;;  %v1266_v38 = vld [vmem:[%s8872_s4 + $0x1c8] sm:$0xff] }
 0x12f   : > { %913 = vmatprep.mubr.f32.mxu1 %v5771_v7  ;;  %5179 = vmatprep.mubr.msk.f32.mxu0 %vm369_vm0, %v6009_v59  ;;  %v6454_v29 = vpack.c.bf16 %v1266_v38, %v1265_v23 }
 0x131   : > { %8998 = vst [vmem:[#allocation10_spill] sm:$0xff] %v6454_v29  ;;  %5286 = vmatprep.subr.msk.bf16.mxu0 %vm6059_vm2, %v6454_v29 }
 0x132   : > { %4310 = vmatmul.mubr.msk.f32.gmra.mrb[58].mxu1 %vm369_vm0, %v5950_v40  ;;  %5180 = vmatmul.mubr.msk.f32.gmra.mrb[74].mxu0 %vm369_vm0, %v6019_v61  ;;  %v6459_v40 = vpack.c.bf16 %v1238_v27, %v1237_v25 }
 0x133   : > { %919 = vmatprep.mubr.f32.mxu1 %v5771_v7  ;;  %5182 = vmatprep.mubr.msk.f32.mxu0 %vm369_vm0, %v6029_v63 }
 0x134   : > { %5250 = vmatprep.subr.msk.bf16.mxu1 %vm6059_vm2, %v6459_v40  ;;  %5289 = vmatpush3.bf16.xpose.msk.msra.mxu0 %vm6059_vm2, %v6475_v43 }
 0x135   : > { %5253 = vmatpush3.bf16.xpose.msk.msra.mxu1 %vm6059_vm2, %v6470_v41 }
 0x136   : > { %4311 = vmatmul.mubr.msk.f32.gmra.mrb[60].mxu1 %vm369_vm0, %v5957_v42  ;;  %5183 = vmatmul.mubr.msk.f32.gmra.mrb[76].mxu0 %vm369_vm0, %v6039_v1  ;;  %v1267_v42 = vld [vmem:[%s8872_s4 + $0x1d0] sm:$0xff] }
 0x137   : > { %925 = vmatprep.mubr.f32.mxu1 %v5771_v7  ;;  %5185 = vmatprep.mubr.msk.f32.mxu0 %vm369_vm0, %v6063_v8  ;;  %v6503_v48 = vpack.c.bf16 %v1268_v45, %v1267_v42 }
 0x139   : > { %8999 = vst [vmem:[#allocation11_spill] sm:$0xff] %v6503_v48  ;;  %5292 = vmatprep.subr.msk.bf16.mxu0 %vm6059_vm2, %v6503_v48 }
 0x13a   : > { %4312 = vmatmul.mubr.msk.f32.gmra.mrb[62].mxu1 %vm369_vm0, %v5964_v44  ;;  %5186 = vmatmul.mubr.msk.f32.gmra.mrb[78].mxu0 %vm369_vm0, %v6076_v10  ;;  %v6515_v44 = vpack.c.bf16 %v1252_v50, %v1251_v49 }
 0x13b   : > { %931 = vmatprep.mubr.f32.mxu1 %v5771_v7 }
 0x13c   : > { %5295 = vmatpush3.bf16.xpose.msk.msra.mxu0 %vm6059_vm2, %v6515_v44 }
 0x13d   : > { %5298 = vmatprep.subr.msk.bf16.mxu0 %vm6059_vm2, %v6540_v0 }
 0x13e   : > { %4313 = vmatmul.mubr.msk.f32.gmra.mrb[64].mxu1 %vm369_vm0, %v5983_v51  ;;  %v1239_v51 = vld [vmem:[%s8872_s4 + $0xf0] sm:$0xff] }
 0x13f   : > { %937 = vmatprep.mubr.f32.mxu1 %v5771_v7  ;;  %v6543_v30 = vpack.c.bf16 %v1240_v58, %v1239_v51 }
 0x141   : > { %5256 = vmatprep.subr.msk.bf16.mxu1 %vm6059_vm2, %v6543_v30 }
 0x142   : > { %4314 = vmatmul.mubr.msk.f32.gmra.mrb[66].mxu1 %vm369_vm0, %v5999_v57  ;;  %v1224_v57 = vld [vmem:[%s8872_s4 + $0x78] sm:$0xff] }
 0x143   : > { %943 = vmatprep.mubr.f32.mxu1 %v5771_v7  ;;  %v6554_v4 = vpack.c.bf16 %v1224_v57, %v1223_v60 }
 0x144   : > { %5301 = vmatpush3.bf16.xpose.msk.msra.mxu0 %vm6059_vm2, %v6559_v11 }
 0x145   : > { %5259 = vmatpush3.bf16.xpose.msk.msra.mxu1 %vm6059_vm2, %v6554_v4 }
 0x146   : > { %4315 = vmatmul.mubr.msk.f32.gmra.mrb[68].mxu1 %vm369_vm0, %v6009_v59  ;;  %v6581_v59 = vpack.c.bf16 %v1272_v13, %v1271_v12 }
 0x147   : > { %949 = vmatprep.mubr.f32.mxu1 %v5771_v7 }
 0x148   : > { %9001 = vst [vmem:[#allocation13_spill] sm:$0xff] %v6581_v59  ;;  %5304 = vmatprep.subr.msk.bf16.mxu0 %vm6059_vm2, %v6581_v59 }
 0x14a   : > { %4316 = vmatmul.mubr.msk.f32.gmra.mrb[70].mxu1 %vm369_vm0, %v6019_v61 }
 0x14b   : > { %955 = vmatprep.mubr.f32.mxu1 %v5771_v7 }
 0x14c   : > { %5307 = vmatpush3.bf16.xpose.msk.msra.mxu0 %vm6059_vm2, %v6593_v21 }
 0x14e   : > { %4317 = vmatmul.mubr.msk.f32.gmra.mrb[72].mxu1 %vm369_vm0, %v6029_v63 }
 0x14f   : > { %961 = vmatprep.mubr.f32.mxu1 %v5771_v7 }
 0x152   : > { %4318 = vmatmul.mubr.msk.f32.gmra.mrb[74].mxu1 %vm369_vm0, %v6039_v1 }
 0x153   : > { %967 = vmatprep.mubr.f32.mxu1 %v5771_v7 }
 0x156   : > { %4319 = vmatmul.mubr.msk.f32.gmra.mrb[76].mxu1 %vm369_vm0, %v6063_v8 }
 0x157   : > { %973 = vmatprep.mubr.f32.mxu1 %v5771_v7 }
 0x15a   : > { %4320 = vmatmul.mubr.msk.f32.gmra.mrb[78].mxu1 %vm369_vm0, %v6076_v10 }
 0x171   : > { %v6609_v61 = vpop.f32.mrb[0].mxu0 }
 0x172   : > { %v6611_v63 = vpop.f32.mrb[1].mxu0 }
 0x175   : > { %v6613_v22 = vpop.f32.mrb[2].mxu0 }
 0x176   : > { %v6615_v23 = vpop.f32.mrb[3].mxu0 }
 0x179   : > { %v6617_v38 = vpop.f32.mrb[4].mxu0 }
 0x17a   : > { %v6619_v1 = vpop.f32.mrb[5].mxu0 }
 0x17d   : > { %v6621_v25 = vpop.f32.mrb[6].mxu0 }
 0x17e   : > { %v6623_v8 = vpop.f32.mrb[7].mxu0 }
 0x181   : > { %v6625_v7 = vpop.f32.mrb[8].mxu0 }
 0x182   : > { %v6627_v27 = vpop.f32.mrb[9].mxu0 }
 0x185   : > { %v6629_v10 = vpop.f32.mrb[10].mxu0 }
 0x186   : > { %v6631_v28 = vpop.f32.mrb[11].mxu0 }
 0x189   : > { %v6633_v33 = vpop.f32.mrb[12].mxu0 }
 0x18a   : > { %v6635_v37 = vpop.f32.mrb[13].mxu0 }
 0x18d   : > { %v6637_v39 = vpop.f32.mrb[14].mxu0 }
 0x18e   : > { %v6639_v42 = vpop.f32.mrb[15].mxu0 }
 0x191   : > { %v6641_v45 = vpop.f32.mrb[16].mxu0  ;;  %v6643_v49 = vpop.f32.mrb[0].mxu1 }
 0x192   : > { %9003 = vst [vmem:[#allocation15_spill] sm:$0xff] %v6641_v45  ;;  %9004 = vst [vmem:[#allocation16_spill] sm:$0xff] %v6643_v49  ;;  %v6645_v50 = vpop.f32.mrb[17].mxu0  ;;  %v6647_v54 = vpop.f32.mrb[1].mxu1 }
 0x193   : > { %9005 = vst [vmem:[#allocation17_spill] sm:$0xff] %v6645_v50  ;;  %9006 = vst [vmem:[#allocation18_spill] sm:$0xff] %v6647_v54 }
 0x195   : > { %v6649_v55 = vpop.f32.mrb[18].mxu0  ;;  %v6651_v51 = vpop.f32.mrb[2].mxu1 }
 0x196   : > { %9007 = vst [vmem:[#allocation19_spill] sm:$0xff] %v6649_v55  ;;  %9008 = vst [vmem:[#allocation20_spill] sm:$0xff] %v6651_v51  ;;  %v6653_v58 = vpop.f32.mrb[19].mxu0  ;;  %v6655_v60 = vpop.f32.mrb[3].mxu1 }
 0x197   : > { %9009 = vst [vmem:[#allocation21_spill] sm:$0xff] %v6653_v58  ;;  %9010 = vst [vmem:[#allocation22_spill] sm:$0xff] %v6655_v60 }
 0x199   : > { %v6657_v57 = vpop.f32.mrb[20].mxu0  ;;  %v6659_v2 = vpop.f32.mrb[4].mxu1 }
 0x19a   : > { %9011 = vst [vmem:[#allocation23_spill] sm:$0xff] %v6657_v57  ;;  %9012 = vst [vmem:[#allocation24_spill] sm:$0xff] %v6659_v2  ;;  %v6661_v3 = vpop.f32.mrb[21].mxu0  ;;  %v6663_v12 = vpop.f32.mrb[5].mxu1 }
 0x19b   : > { %9013 = vst [vmem:[#allocation25_spill] sm:$0xff] %v6661_v3  ;;  %9014 = vst [vmem:[#allocation26_spill] sm:$0xff] %v6663_v12 }
 0x19d   : > { %v6665_v13 = vpop.f32.mrb[22].mxu0  ;;  %v6667_v34 = vpop.f32.mrb[6].mxu1 }
 0x19e   : > { %9015 = vst [vmem:[#allocation27_spill] sm:$0xff] %v6665_v13  ;;  %9016 = vst [vmem:[#allocation28_spill] sm:$0xff] %v6667_v34  ;;  %v6669_v18 = vpop.f32.mrb[23].mxu0  ;;  %v6671_v6 = vpop.f32.mrb[7].mxu1 }
 0x19f   : > { %9017 = vst [vmem:[#allocation29_spill] sm:$0xff] %v6669_v18  ;;  %9018 = vst [vmem:[#allocation30_spill] sm:$0xff] %v6671_v6 }
 0x1a1   : > { %v6673_v51 = vpop.f32.mrb[24].mxu0  ;;  %v6675_v54 = vpop.f32.mrb[8].mxu1 }
 0x1a2   : > { %9019 = vst [vmem:[#allocation31_spill] sm:$0xff] %v6673_v51  ;;  %9020 = vst [vmem:[#allocation32_spill] sm:$0xff] %v6675_v54  ;;  %v6677_v60 = vpop.f32.mrb[25].mxu0  ;;  %v6679_v49 = vpop.f32.mrb[9].mxu1 }
 0x1a3   : > { %9021 = vst [vmem:[#allocation33_spill] sm:$0xff] %v6677_v60  ;;  %9022 = vst [vmem:[#allocation34_spill] sm:$0xff] %v6679_v49 }
 0x1a5   : > { %v6681_v2 = vpop.f32.mrb[26].mxu0  ;;  %v6683_v59 = vpop.f32.mrb[10].mxu1 }
 0x1a6   : > { %9023 = vst [vmem:[#allocation35_spill] sm:$0xff] %v6681_v2  ;;  %9024 = vst [vmem:[#allocation36_spill] sm:$0xff] %v6683_v59  ;;  %v6685_v12 = vpop.f32.mrb[27].mxu0  ;;  %v6687_v0 = vpop.f32.mrb[11].mxu1  ;;  %v8882_v59 = vmov 0.0|0.0  }
 0x1a7   : > { %9025 = vst [vmem:[#allocation37_spill] sm:$0xff] %v6685_v12  ;;  %9026 = vst [vmem:[#allocation38_spill] sm:$0xff] %v6687_v0  ;;  %5308 = vmatprep.subr.bf16.mxu1 %v8882_v59 }
 0x1a9   : > { %v6689_v34 = vpop.f32.mrb[28].mxu0  ;;  %v6691_v48 = vpop.f32.mrb[12].mxu1 }
 0x1aa   : > { %9027 = vst [vmem:[#allocation39_spill] sm:$0xff] %v6689_v34  ;;  %9028 = vst [vmem:[#allocation40_spill] sm:$0xff] %v6691_v48  ;;  %v6693_v6 = vpop.f32.mrb[29].mxu0  ;;  %v6695_v29 = vpop.f32.mrb[13].mxu1 }
 0x1ab   : > { %9029 = vst [vmem:[#allocation41_spill] sm:$0xff] %v6693_v6  ;;  %9030 = vst [vmem:[#allocation42_spill] sm:$0xff] %v6695_v29 }
 0x1ad   : > { %v6697_v54 = vpop.f32.mrb[30].mxu0  ;;  %v6699_v19 = vpop.f32.mrb[14].mxu1 }
 0x1ae   : > { %9031 = vst [vmem:[#allocation43_spill] sm:$0xff] %v6697_v54  ;;  %9032 = vst [vmem:[#allocation44_spill] sm:$0xff] %v6699_v19  ;;  %v6701_v49 = vpop.f32.mrb[31].mxu0  ;;  %v6703_v2 = vpop.f32.mrb[15].mxu1 }
 0x1af   : > { %9033 = vst [vmem:[#allocation45_spill] sm:$0xff] %v6701_v49  ;;  %9034 = vst [vmem:[#allocation46_spill] sm:$0xff] %v6703_v2 }
 0x1b1   : > { %v6706_v0 = vpop.f32.mrb[32].mxu0  ;;  %v6708_v34 = vpop.f32.mrb[16].mxu1 }
 0x1b2   : > { %9035 = vst [vmem:[#allocation47_spill] sm:$0xff] %v6706_v0  ;;  %v6710_v48 = vpop.f32.mrb[33].mxu0  ;;  %v6712_v6 = vpop.f32.mrb[17].mxu1 }
 0x1b3   : > { %9036 = vst [vmem:[#allocation48_spill] sm:$0xff] %v6710_v48 }
 0x1b5   : > { %v6714_v29 = vpop.f32.mrb[34].mxu0  ;;  %v6716_v54 = vpop.f32.mrb[18].mxu1 }
 0x1b6   : > { %9037 = vst [vmem:[#allocation49_spill] sm:$0xff] %v6714_v29  ;;  %v6718_v19 = vpop.f32.mrb[35].mxu0  ;;  %v6720_v49 = vpop.f32.mrb[19].mxu1 }
 0x1b7   : > { %9038 = vst [vmem:[#allocation50_spill] sm:$0xff] %v6718_v19 }
 0x1b9   : > { %v6722_v2 = vpop.f32.mrb[36].mxu0  ;;  %v6724_v12 = vpop.f32.mrb[20].mxu1 }
 0x1ba   : > { %9039 = vst [vmem:[#allocation51_spill] sm:$0xff] %v6722_v2  ;;  %v6726_v59 = vpop.f32.mrb[37].mxu0  ;;  %v6728_v0 = vpop.f32.mrb[21].mxu1 }
 0x1bb   : > { %9040 = vst [vmem:[#allocation52_spill] sm:$0xff] %v6726_v59 }
 0x1bd   : > { %v6730_v60 = vpop.f32.mrb[38].mxu0  ;;  %v6732_v48 = vpop.f32.mrb[22].mxu1 }
 0x1be   : > { %9041 = vst [vmem:[#allocation53_spill] sm:$0xff] %v6730_v60  ;;  %v6734_v51 = vpop.f32.mrb[39].mxu0  ;;  %v6736_v29 = vpop.f32.mrb[23].mxu1 }
 0x1bf   : > { %9042 = vst [vmem:[#allocation54_spill] sm:$0xff] %v6734_v51 }
 0x1c1   : > { %v6738_v9 = vpop.f32.mrb[40].mxu0  ;;  %v6740_v19 = vpop.f32.mrb[24].mxu1 }
 0x1c2   : > { %9043 = vst [vmem:[#allocation55_spill] sm:$0xff] %v6738_v9  ;;  %v6742_v18 = vpop.f32.mrb[41].mxu0  ;;  %v6744_v2 = vpop.f32.mrb[25].mxu1 }
 0x1c3   : > { %9044 = vst [vmem:[#allocation56_spill] sm:$0xff] %v6742_v18 }
 0x1c5   : > { %v6746_v13 = vpop.f32.mrb[42].mxu0  ;;  %v6748_v59 = vpop.f32.mrb[26].mxu1 }
 0x1c6   : > { %9045 = vst [vmem:[#allocation57_spill] sm:$0xff] %v6746_v13  ;;  %v6750_v56 = vpop.f32.mrb[43].mxu0  ;;  %v6752_v60 = vpop.f32.mrb[27].mxu1 }
 0x1c7   : > { %9046 = vst [vmem:[#allocation58_spill] sm:$0xff] %v6750_v56 }
 0x1c9   : > { %v6754_v3 = vpop.f32.mrb[44].mxu0  ;;  %v6756_v51 = vpop.f32.mrb[28].mxu1 }
 0x1ca   : > { %9047 = vst [vmem:[#allocation59_spill] sm:$0xff] %v6754_v3  ;;  %v6758_v57 = vpop.f32.mrb[45].mxu0  ;;  %v6760_v9 = vpop.f32.mrb[29].mxu1 }
 0x1cb   : > { %9048 = vst [vmem:[#allocation60_spill] sm:$0xff] %v6758_v57 }
 0x1cd   : > { %v6762_v46 = vpop.f32.mrb[46].mxu0  ;;  %v6764_v18 = vpop.f32.mrb[30].mxu1 }
 0x1ce   : > { %9049 = vst [vmem:[#allocation61_spill] sm:$0xff] %v6762_v46  ;;  %v6766_v58 = vpop.f32.mrb[47].mxu0  ;;  %v6768_v13 = vpop.f32.mrb[31].mxu1 }
 0x1cf   : > { %9050 = vst [vmem:[#allocation62_spill] sm:$0xff] %v6766_v58 }
 0x1d1   : > { %v6770_v55 = vpop.f32.mrb[32].mxu1  ;;  %v5142_v56 = vpop.f32.mrb[48].mxu0 }
 0x1d2   : > { %9051 = vst [vmem:[#allocation63_spill] sm:$0xff] %v6770_v55  ;;  %v6772_v21 = vpop.f32.mrb[33].mxu1  ;;  %v1050_v3 = vpop.f32.mrb[49].mxu0 }
 0x1d3   : > { %9052 = vst [vmem:[#allocation64_spill] sm:$0xff] %v6772_v21  ;;  %4780 = vmatprep.mubr.msk.f32.mxu1 %vm1273_vm1, %v1050_v3  ;;  %4876 = vmatprep.mubr.msk.f32.mxu0 %vm1273_vm1, %v1050_v3  ;;  %v9055_v21 = vmov 0.0|0.0  }
 0x1d4   : > { %4781 = vmatmul.mubr.msk.f32.vlgmr.msra.gmra.mrb[80].mxu1 %vm1273_vm1, %v1050_v3  ;;  %4877 = vmatmul.mubr.msk.f32.vlgmr.msra.gmra.mrb[80].mxu0 %vm1273_vm1, %v1050_v3 }
 0x1d5   : > { %v6778_v46 = vpop.f32.mrb[34].mxu1  ;;  %v5145_v57 = vpop.f32.mrb[50].mxu0  ;;  %4782 = vmatprep.mubr.msk.f32.mxu1 %vm1273_vm1, %v5142_v56  ;;  %4878 = vmatprep.mubr.msk.f32.mxu0 %vm1273_vm1, %v5142_v56 }
 0x1d6   : > { %9053 = vst [vmem:[#allocation65_spill] sm:$0xff] %v6778_v46  ;;  %v6782_v58 = vpop.f32.mrb[35].mxu1  ;;  %v1060_v50 = vpop.f32.mrb[51].mxu0  ;;  %5310 = vmatpush1.bf16.msra.mxu1 %v6098_v16 }
 0x1d7   : > { %9054 = vst [vmem:[#allocation66_spill] sm:$0xff] %v6782_v58  ;;  %5311 = vmatprep.subr.bf16.mxu1 %v9055_v21 }
 0x1d8   : > { %4783 = vmatmul.mubr.msk.f32.gmra.mrb[82].mxu1 %vm1273_vm1, %v5142_v56  ;;  %4879 = vmatmul.mubr.msk.f32.gmra.mrb[82].mxu0 %vm1273_vm1, %v5142_v56 }
 0x1d9   : > { %v6788_v55 = vpop.f32.mrb[36].mxu1  ;;  %v5148_v3 = vpop.f32.mrb[52].mxu0  ;;  %4784 = vmatprep.mubr.msk.f32.mxu1 %vm1273_vm1, %v1060_v50  ;;  %4880 = vmatprep.mubr.msk.f32.mxu0 %vm1273_vm1, %v1060_v50 }
 0x1da   : > { %9056 = vst [vmem:[#allocation67_spill] sm:$0xff] %v6788_v55  ;;  %v6792_v46 = vpop.f32.mrb[37].mxu1  ;;  %v1070_v45 = vpop.f32.mrb[53].mxu0  ;;  %5313 = vmatpush1.bf16.msra.mxu1 %v6126_v20 }
 0x1db   : > { %9057 = vst [vmem:[#allocation68_spill] sm:$0xff] %v6792_v46  ;;  %5314 = vmatprep.subr.bf16.mxu1 %v9055_v21 }
 0x1dc   : > { %4785 = vmatmul.mubr.msk.f32.gmra.mrb[84].mxu1 %vm1273_vm1, %v1060_v50  ;;  %4881 = vmatmul.mubr.msk.f32.gmra.mrb[84].mxu0 %vm1273_vm1, %v1060_v50 }
 0x1dd   : > { %v6798_v16 = vpop.f32.mrb[38].mxu1  ;;  %v5151_v56 = vpop.f32.mrb[54].mxu0  ;;  %4786 = vmatprep.mubr.msk.f32.mxu1 %vm1273_vm1, %v5145_v57  ;;  %4882 = vmatprep.mubr.msk.f32.mxu0 %vm1273_vm1, %v5145_v57 }
 0x1de   : > { %9058 = vst [vmem:[#allocation69_spill] sm:$0xff] %v6798_v16  ;;  %v6802_v55 = vpop.f32.mrb[39].mxu1  ;;  %v1080_v58 = vpop.f32.mrb[55].mxu0  ;;  %5316 = vmatpush1.bf16.msra.mxu1 %v6169_v26 }
 0x1df   : > { %5317 = vmatprep.subr.bf16.mxu1 %v9055_v21 }
 0x1e0   : > { %4787 = vmatmul.mubr.msk.f32.gmra.mrb[86].mxu1 %vm1273_vm1, %v5145_v57  ;;  %4883 = vmatmul.mubr.msk.f32.gmra.mrb[86].mxu0 %vm1273_vm1, %v5145_v57 }
 0x1e1   : > { %v6808_v20 = vpop.f32.mrb[40].mxu1  ;;  %v5154_v50 = vpop.f32.mrb[56].mxu0  ;;  %4788 = vmatprep.mubr.msk.f32.mxu1 %vm1273_vm1, %v1070_v45  ;;  %4884 = vmatprep.mubr.msk.f32.mxu0 %vm1273_vm1, %v1070_v45 }
 0x1e2   : > { %9059 = vst [vmem:[#allocation70_spill] sm:$0xff] %v6808_v20  ;;  %v6812_v16 = vpop.f32.mrb[41].mxu1  ;;  %v1090_v46 = vpop.f32.mrb[57].mxu0  ;;  %5319 = vmatpush1.bf16.msra.mxu1 %v6218_v35 }
 0x1e3   : > { %9060 = vst [vmem:[#allocation71_spill] sm:$0xff] %v6812_v16  ;;  %5320 = vmatprep.subr.bf16.mxu1 %v9055_v21 }
 0x1e4   : > { %4789 = vmatmul.mubr.msk.f32.gmra.mrb[88].mxu1 %vm1273_vm1, %v1070_v45  ;;  %4885 = vmatmul.mubr.msk.f32.gmra.mrb[88].mxu0 %vm1273_vm1, %v1070_v45 }
 0x1e5   : > { %v6818_v26 = vpop.f32.mrb[42].mxu1  ;;  %v6820_v57 = vpop.f32.mrb[58].mxu0  ;;  %4790 = vmatprep.mubr.msk.f32.mxu1 %vm1273_vm1, %v5148_v3  ;;  %4886 = vmatprep.mubr.msk.f32.mxu0 %vm1273_vm1, %v5148_v3 }
 0x1e6   : > { %9061 = vst [vmem:[#allocation72_spill] sm:$0xff] %v6818_v26  ;;  %v6824_v20 = vpop.f32.mrb[43].mxu1  ;;  %v1100_v16 = vpop.f32.mrb[59].mxu0  ;;  %5322 = vmatpush1.bf16.msra.mxu1 %v6282_v52 }
 0x1e7   : > { %9062 = vst [vmem:[#allocation73_spill] sm:$0xff] %v6824_v20  ;;  %5323 = vmatprep.subr.bf16.mxu1 %v9055_v21 }
 0x1e8   : > { %4791 = vmatmul.mubr.msk.f32.gmra.mrb[90].mxu1 %vm1273_vm1, %v5148_v3  ;;  %4887 = vmatmul.mubr.msk.f32.gmra.mrb[90].mxu0 %vm1273_vm1, %v5148_v3 }
 0x1e9   : > { %v6830_v35 = vpop.f32.mrb[44].mxu1  ;;  %v6832_v45 = vpop.f32.mrb[60].mxu0  ;;  %4792 = vmatprep.mubr.msk.f32.mxu1 %vm1273_vm1, %v1080_v58  ;;  %4888 = vmatprep.mubr.msk.f32.mxu0 %vm1273_vm1, %v1080_v58 }
 0x1ea   : > { %9063 = vst [vmem:[#allocation74_spill] sm:$0xff] %v6830_v35  ;;  %v6836_v26 = vpop.f32.mrb[45].mxu1  ;;  %v6838_v20 = vpop.f32.mrb[61].mxu0  ;;  %5325 = vmatpush1.bf16.msra.mxu1 %v6376_v14 }
 0x1eb   : > { %9064 = vst [vmem:[#allocation75_spill] sm:$0xff] %v6836_v26  ;;  %5326 = vmatprep.subr.bf16.mxu1 %v9055_v21 }
 0x1ec   : > { %4793 = vmatmul.mubr.msk.f32.gmra.mrb[92].mxu1 %vm1273_vm1, %v1080_v58  ;;  %4889 = vmatmul.mubr.msk.f32.gmra.mrb[92].mxu0 %vm1273_vm1, %v1080_v58 }
 0x1ed   : > { %v6844_v52 = vpop.f32.mrb[46].mxu1  ;;  %v6846_v3 = vpop.f32.mrb[62].mxu0  ;;  %4794 = vmatprep.mubr.msk.f32.mxu1 %vm1273_vm1, %v5151_v56  ;;  %4890 = vmatprep.mubr.msk.f32.mxu0 %vm1273_vm1, %v5151_v56 }
 0x1ee   : > { %9065 = vst [vmem:[#allocation76_spill] sm:$0xff] %v6844_v52  ;;  %v6850_v35 = vpop.f32.mrb[47].mxu1  ;;  %v6852_v26 = vpop.f32.mrb[63].mxu0  ;;  %5328 = vmatpush1.bf16.msra.mxu1 %v6470_v41 }
 0x1ef   : > { %9066 = vst [vmem:[#allocation77_spill] sm:$0xff] %v6850_v35  ;;  %5329 = vmatprep.subr.bf16.mxu1 %v9055_v21 }
 0x1f0   : > { %4795 = vmatmul.mubr.msk.f32.gmra.mrb[94].mxu1 %vm1273_vm1, %v5151_v56  ;;  %4891 = vmatmul.mubr.msk.f32.gmra.mrb[94].mxu0 %vm1273_vm1, %v5151_v56 }
 0x1f1   : > { %v6858_v14 = vpop.f32.mrb[48].mxu1  ;;  %v6860_v58 = vpop.f32.mrb[64].mxu0  ;;  %4796 = vmatprep.mubr.msk.f32.mxu1 %vm1273_vm1, %v1090_v46  ;;  %4892 = vmatprep.mubr.msk.f32.mxu0 %vm1273_vm1, %v1090_v46 }
 0x1f2   : > { %9067 = vst [vmem:[#allocation78_spill] sm:$0xff] %v6858_v14  ;;  %v6864_v52 = vpop.f32.mrb[49].mxu1  ;;  %v6866_v35 = vpop.f32.mrb[65].mxu0  ;;  %5331 = vmatpush1.bf16.msra.mxu1 %v6554_v4 }
 0x1f3   : > { %9068 = vst [vmem:[#allocation79_spill] sm:$0xff] %v6864_v52  ;;  %5332 = vmatprep.subr.bf16.mxu1 %v9055_v21 }
 0x1f4   : > { %4797 = vmatmul.mubr.msk.f32.gmra.mrb[96].mxu1 %vm1273_vm1, %v1090_v46  ;;  %4893 = vmatmul.mubr.msk.f32.gmra.mrb[96].mxu0 %vm1273_vm1, %v1090_v46 }
 0x1f5   : > { %v6872_v41 = vpop.f32.mrb[50].mxu1  ;;  %v6874_v56 = vpop.f32.mrb[66].mxu0  ;;  %4798 = vmatprep.mubr.msk.f32.mxu1 %vm1273_vm1, %v5154_v50  ;;  %4894 = vmatprep.mubr.msk.f32.mxu0 %vm1273_vm1, %v5154_v50 }
 0x1f6   : > { %9069 = vst [vmem:[#allocation80_spill] sm:$0xff] %v6872_v41  ;;  %v6878_v14 = vpop.f32.mrb[51].mxu1  ;;  %v6880_v52 = vpop.f32.mrb[67].mxu0  ;;  %5334 = vmatpush1.bf16.msra.mxu1 %v6055_v5 }
 0x1f7   : > { %9070 = vst [vmem:[#allocation81_spill] sm:$0xff] %v6878_v14  ;;  %5335 = vmatprep.subr.bf16.mxu1 %v9055_v21 }
 0x1f8   : > { %4799 = vmatmul.mubr.msk.f32.gmra.mrb[98].mxu1 %vm1273_vm1, %v5154_v50  ;;  %4895 = vmatmul.mubr.msk.f32.gmra.mrb[98].mxu0 %vm1273_vm1, %v5154_v50 }
 0x1f9   : > { %v6886_v46 = vpop.f32.mrb[52].mxu1  ;;  %v6888_v4 = vpop.f32.mrb[68].mxu0  ;;  %4800 = vmatprep.mubr.msk.f32.mxu1 %vm1273_vm1, %v1100_v16  ;;  %4896 = vmatprep.mubr.msk.f32.mxu0 %vm1273_vm1, %v1100_v16 }
 0x1fa   : > { %9071 = vst [vmem:[#allocation82_spill] sm:$0xff] %v6886_v46  ;;  %v6892_v41 = vpop.f32.mrb[53].mxu1  ;;  %v6894_v14 = vpop.f32.mrb[69].mxu0  ;;  %5337 = vmatpush1.bf16.msra.mxu1 %v6100_v17 }
 0x1fb   : > { %9072 = vst [vmem:[#allocation83_spill] sm:$0xff] %v6892_v41  ;;  %5338 = vmatprep.subr.bf16.mxu1 %v9055_v21 }
 0x1fc   : > { %4801 = vmatmul.mubr.msk.f32.gmra.mrb[100].mxu1 %vm1273_vm1, %v1100_v16  ;;  %4897 = vmatmul.mubr.msk.f32.gmra.mrb[100].mxu0 %vm1273_vm1, %v1100_v16 }
 0x1fd   : > { %v6900_v5 = vpop.f32.mrb[54].mxu1  ;;  %v6902_v50 = vpop.f32.mrb[70].mxu0  ;;  %4802 = vmatprep.mubr.msk.f32.mxu1 %vm1273_vm1, %v6820_v57  ;;  %4898 = vmatprep.mubr.msk.f32.mxu0 %vm1273_vm1, %v6820_v57 }
 0x1fe   : > { %v6908_v41 = vpop.f32.mrb[55].mxu1  ;;  %v6910_v46 = vpop.f32.mrb[71].mxu0  ;;  %5340 = vmatpush1.bf16.msra.mxu1 %v6164_v24 }
 0x1ff   : > { %9073 = vst [vmem:[#allocation84_spill] sm:$0xff] %v6908_v41  ;;  %5341 = vmatprep.subr.bf16.mxu1 %v9055_v21 }
 0x200   : > { %4803 = vmatmul.mubr.msk.f32.gmra.mrb[102].mxu1 %vm1273_vm1, %v6820_v57  ;;  %4899 = vmatmul.mubr.msk.f32.gmra.mrb[102].mxu0 %vm1273_vm1, %v6820_v57 }
 0x201   : > { %v6918_v17 = vpop.f32.mrb[56].mxu1  ;;  %4804 = vmatprep.mubr.msk.f32.mxu1 %vm1273_vm1, %v6838_v20  ;;  %4900 = vmatprep.mubr.msk.f32.mxu0 %vm1273_vm1, %v6838_v20  ;;  %v6924_v16 = vpop.f32.mrb[72].mxu0 }
 0x202   : > { %9074 = vst [vmem:[#allocation85_spill] sm:$0xff] %v6918_v17  ;;  %v6926_v41 = vpop.f32.mrb[57].mxu1  ;;  %v6928_v24 = vpop.f32.mrb[73].mxu0  ;;  %5343 = vmatpush1.bf16.msra.mxu1 %v6213_v31 }
 0x203   : > { %9075 = vst [vmem:[#allocation86_spill] sm:$0xff] %v6926_v41  ;;  %5344 = vmatprep.subr.bf16.mxu1 %v9055_v21 }
 0x204   : > { %4805 = vmatmul.mubr.msk.f32.gmra.mrb[104].mxu1 %vm1273_vm1, %v6838_v20  ;;  %4901 = vmatmul.mubr.msk.f32.gmra.mrb[104].mxu0 %vm1273_vm1, %v6838_v20 }
 0x205   : > { %v6936_v57 = vpop.f32.mrb[58].mxu1  ;;  %4806 = vmatprep.mubr.msk.f32.mxu1 %vm1273_vm1, %v6832_v45  ;;  %4902 = vmatprep.mubr.msk.f32.mxu0 %vm1273_vm1, %v6832_v45  ;;  %v6942_v41 = vpop.f32.mrb[74].mxu0 }
 0x206   : > { %9076 = vst [vmem:[#allocation87_spill] sm:$0xff] %v6936_v57  ;;  %v6944_v17 = vpop.f32.mrb[59].mxu1  ;;  %v6946_v31 = vpop.f32.mrb[75].mxu0  ;;  %5346 = vmatpush1.bf16.msra.mxu1 %v6271_v47 }
 0x207   : > { %9077 = vst [vmem:[#allocation88_spill] sm:$0xff] %v6944_v17  ;;  %5347 = vmatprep.subr.bf16.mxu1 %v9055_v21 }
 0x208   : > { %4807 = vmatmul.mubr.msk.f32.gmra.mrb[106].mxu1 %vm1273_vm1, %v6832_v45  ;;  %4903 = vmatmul.mubr.msk.f32.gmra.mrb[106].mxu0 %vm1273_vm1, %v6832_v45 }
 0x209   : > { %v6954_v20 = vpop.f32.mrb[60].mxu1  ;;  %4808 = vmatprep.mubr.msk.f32.mxu1 %vm1273_vm1, %v6852_v26  ;;  %4904 = vmatprep.mubr.msk.f32.mxu0 %vm1273_vm1, %v6852_v26  ;;  %v6960_v17 = vpop.f32.mrb[76].mxu0 }
 0x20a   : > { %9078 = vst [vmem:[#allocation89_spill] sm:$0xff] %v6954_v20  ;;  %v6962_v57 = vpop.f32.mrb[61].mxu1  ;;  %v6964_v47 = vpop.f32.mrb[77].mxu0  ;;  %5349 = vmatpush1.bf16.msra.mxu1 %v6365_v32 }
 0x20b   : > { %9079 = vst [vmem:[#allocation90_spill] sm:$0xff] %v6962_v57  ;;  %5350 = vmatprep.subr.bf16.mxu1 %v9055_v21 }
 0x20c   : > { %4809 = vmatmul.mubr.msk.f32.gmra.mrb[108].mxu1 %vm1273_vm1, %v6852_v26  ;;  %4905 = vmatmul.mubr.msk.f32.gmra.mrb[108].mxu0 %vm1273_vm1, %v6852_v26 }
 0x20d   : > { %v6972_v45 = vpop.f32.mrb[62].mxu1  ;;  %4810 = vmatprep.mubr.msk.f32.mxu1 %vm1273_vm1, %v6846_v3  ;;  %4906 = vmatprep.mubr.msk.f32.mxu0 %vm1273_vm1, %v6846_v3  ;;  %v6978_v57 = vpop.f32.mrb[78].mxu0 }
 0x20e   : > { %v6980_v20 = vpop.f32.mrb[63].mxu1  ;;  %v6982_v32 = vpop.f32.mrb[79].mxu0  ;;  %5352 = vmatpush1.bf16.msra.mxu1 %v6459_v40 }
 0x20f   : > { %9080 = vst [vmem:[#allocation91_spill] sm:$0xff] %v6980_v20  ;;  %5353 = vmatprep.subr.bf16.mxu1 %v9055_v21 }
 0x210   : > { %4811 = vmatmul.mubr.msk.f32.gmra.mrb[110].mxu1 %vm1273_vm1, %v6846_v3  ;;  %4907 = vmatmul.mubr.msk.f32.gmra.mrb[110].mxu0 %vm1273_vm1, %v6846_v3 }
 0x211   : > { %v6990_v26 = vpop.f32.mrb[64].mxu1  ;;  %4812 = vmatprep.mubr.msk.f32.mxu1 %vm1273_vm1, %v6866_v35  ;;  %4908 = vmatprep.mubr.msk.f32.mxu0 %vm1273_vm1, %v6866_v35 }
 0x212   : > { %v6996_v20 = vpop.f32.mrb[65].mxu1  ;;  %5355 = vmatpush1.bf16.msra.mxu1 %v6543_v30 }
 0x213   : > { %5356 = vmatprep.subr.bf16.mxu1 %v9055_v21 }
 0x214   : > { %4813 = vmatmul.mubr.msk.f32.gmra.mrb[112].mxu1 %vm1273_vm1, %v6866_v35  ;;  %4909 = vmatmul.mubr.msk.f32.gmra.mrb[112].mxu0 %vm1273_vm1, %v6866_v35 }
 0x215   : > { %v7004_v40 = vpop.f32.mrb[66].mxu1  ;;  %4814 = vmatprep.mubr.msk.f32.mxu1 %vm1273_vm1, %v6860_v58  ;;  %4910 = vmatprep.mubr.msk.f32.mxu0 %vm1273_vm1, %v6860_v58 }
 0x216   : > { %v7010_v3 = vpop.f32.mrb[67].mxu1 }
 0x217   : > { %9081 = vst [vmem:[#allocation92_spill] sm:$0xff] %v7010_v3 }
 0x218   : > { %4815 = vmatmul.mubr.msk.f32.gmra.mrb[114].mxu1 %vm1273_vm1, %v6860_v58  ;;  %4911 = vmatmul.mubr.msk.f32.gmra.mrb[114].mxu0 %vm1273_vm1, %v6860_v58 }
 0x219   : > { %v7016_v30 = vpop.f32.mrb[68].mxu1  ;;  %4816 = vmatprep.mubr.msk.f32.mxu1 %vm1273_vm1, %v6880_v52  ;;  %4912 = vmatprep.mubr.msk.f32.mxu0 %vm1273_vm1, %v6880_v52 }
 0x21a   : > { %v7022_v35 = vpop.f32.mrb[69].mxu1 }
 0x21b   : > { %9082 = vst [vmem:[#allocation93_spill] sm:$0xff] %v7022_v35 }
 0x21c   : > { %4817 = vmatmul.mubr.msk.f32.gmra.mrb[116].mxu1 %vm1273_vm1, %v6880_v52  ;;  %4913 = vmatmul.mubr.msk.f32.gmra.mrb[116].mxu0 %vm1273_vm1, %v6880_v52 }
 0x21d   : > { %v7028_v3 = vpop.f32.mrb[70].mxu1  ;;  %4818 = vmatprep.mubr.msk.f32.mxu1 %vm1273_vm1, %v6874_v56  ;;  %4914 = vmatprep.mubr.msk.f32.mxu0 %vm1273_vm1, %v6874_v56 }
 0x21e   : > { %v7034_v58 = vpop.f32.mrb[71].mxu1 }
 0x21f   : > { %9083 = vst [vmem:[#allocation94_spill] sm:$0xff] %v7034_v58 }
 0x220   : > { %4819 = vmatmul.mubr.msk.f32.gmra.mrb[118].mxu1 %vm1273_vm1, %v6874_v56  ;;  %4915 = vmatmul.mubr.msk.f32.gmra.mrb[118].mxu0 %vm1273_vm1, %v6874_v56 }
 0x221   : > { %v7040_v35 = vpop.f32.mrb[72].mxu1  ;;  %4820 = vmatprep.mubr.msk.f32.mxu1 %vm1273_vm1, %v6894_v14  ;;  %4916 = vmatprep.mubr.msk.f32.mxu0 %vm1273_vm1, %v6894_v14 }
 0x222   : > { %v7046_v52 = vpop.f32.mrb[73].mxu1 }
 0x223   : > { %9084 = vst [vmem:[#allocation95_spill] sm:$0xff] %v7046_v52 }
 0x224   : > { %4821 = vmatmul.mubr.msk.f32.gmra.mrb[120].mxu1 %vm1273_vm1, %v6894_v14  ;;  %4917 = vmatmul.mubr.msk.f32.gmra.mrb[120].mxu0 %vm1273_vm1, %v6894_v14 }
 0x225   : > { %v7052_v58 = vpop.f32.mrb[74].mxu1  ;;  %4822 = vmatprep.mubr.msk.f32.mxu1 %vm1273_vm1, %v6888_v4  ;;  %4918 = vmatprep.mubr.msk.f32.mxu0 %vm1273_vm1, %v6888_v4 }
 0x226   : > { %v7058_v56 = vpop.f32.mrb[75].mxu1 }
 0x227   : > { %9085 = vst [vmem:[#allocation96_spill] sm:$0xff] %v7058_v56 }
 0x228   : > { %4823 = vmatmul.mubr.msk.f32.gmra.mrb[122].mxu1 %vm1273_vm1, %v6888_v4  ;;  %4919 = vmatmul.mubr.msk.f32.gmra.mrb[122].mxu0 %vm1273_vm1, %v6888_v4 }
 0x229   : > { %v7064_v52 = vpop.f32.mrb[76].mxu1  ;;  %4824 = vmatprep.mubr.msk.f32.mxu1 %vm1273_vm1, %v6910_v46  ;;  %4920 = vmatprep.mubr.msk.f32.mxu0 %vm1273_vm1, %v6910_v46 }
 0x22a   : > { %v7070_v14 = vpop.f32.mrb[77].mxu1 }
 0x22c   : > { %4825 = vmatmul.mubr.msk.f32.gmra.mrb[124].mxu1 %vm1273_vm1, %v6910_v46  ;;  %4921 = vmatmul.mubr.msk.f32.gmra.mrb[124].mxu0 %vm1273_vm1, %v6910_v46 }
 0x22d   : > { %v7076_v56 = vpop.f32.mrb[78].mxu1  ;;  %4826 = vmatprep.mubr.msk.f32.mxu1 %vm1273_vm1, %v6902_v50  ;;  %4922 = vmatprep.mubr.msk.f32.mxu0 %vm1273_vm1, %v6902_v50 }
 0x22e   : > { %v7082_v4 = vpop.f32.mrb[79].mxu1 }
 0x22f   : > { %9086 = vst [vmem:[#allocation97_spill] sm:$0xff] %v7082_v4 }
 0x230   : > { %4827 = vmatmul.mubr.msk.f32.gmra.mrb[126].mxu1 %vm1273_vm1, %v6902_v50  ;;  %4923 = vmatmul.mubr.msk.f32.gmra.mrb[126].mxu0 %vm1273_vm1, %v6902_v50 }
 0x231   : > { %4828 = vmatprep.mubr.msk.f32.mxu1 %vm1273_vm1, %v6928_v24  ;;  %4924 = vmatprep.mubr.msk.f32.mxu0 %vm1273_vm1, %v6928_v24 }
 0x234   : > { %4829 = vmatmul.mubr.msk.f32.gmra.mrb[128].mxu1 %vm1273_vm1, %v6928_v24  ;;  %4925 = vmatmul.mubr.msk.f32.gmra.mrb[128].mxu0 %vm1273_vm1, %v6928_v24 }
 0x235   : > { %4830 = vmatprep.mubr.msk.f32.mxu1 %vm1273_vm1, %v6924_v16  ;;  %4926 = vmatprep.mubr.msk.f32.mxu0 %vm1273_vm1, %v6924_v16 }
 0x238   : > { %4831 = vmatmul.mubr.msk.f32.gmra.mrb[130].mxu1 %vm1273_vm1, %v6924_v16  ;;  %4927 = vmatmul.mubr.msk.f32.gmra.mrb[130].mxu0 %vm1273_vm1, %v6924_v16 }
 0x239   : > { %4832 = vmatprep.mubr.msk.f32.mxu1 %vm1273_vm1, %v6946_v31  ;;  %4928 = vmatprep.mubr.msk.f32.mxu0 %vm1273_vm1, %v6946_v31 }
 0x23c   : > { %4833 = vmatmul.mubr.msk.f32.gmra.mrb[132].mxu1 %vm1273_vm1, %v6946_v31  ;;  %4929 = vmatmul.mubr.msk.f32.gmra.mrb[132].mxu0 %vm1273_vm1, %v6946_v31 }
 0x23d   : > { %4834 = vmatprep.mubr.msk.f32.mxu1 %vm1273_vm1, %v6942_v41  ;;  %4930 = vmatprep.mubr.msk.f32.mxu0 %vm1273_vm1, %v6942_v41 }
 0x240   : > { %4835 = vmatmul.mubr.msk.f32.gmra.mrb[134].mxu1 %vm1273_vm1, %v6942_v41  ;;  %4931 = vmatmul.mubr.msk.f32.gmra.mrb[134].mxu0 %vm1273_vm1, %v6942_v41 }
 0x241   : > { %4836 = vmatprep.mubr.msk.f32.mxu1 %vm1273_vm1, %v6964_v47  ;;  %4932 = vmatprep.mubr.msk.f32.mxu0 %vm1273_vm1, %v6964_v47 }
 0x244   : > { %4837 = vmatmul.mubr.msk.f32.gmra.mrb[136].mxu1 %vm1273_vm1, %v6964_v47  ;;  %4933 = vmatmul.mubr.msk.f32.gmra.mrb[136].mxu0 %vm1273_vm1, %v6964_v47 }
 0x245   : > { %4838 = vmatprep.mubr.msk.f32.mxu1 %vm1273_vm1, %v6960_v17  ;;  %4934 = vmatprep.mubr.msk.f32.mxu0 %vm1273_vm1, %v6960_v17 }
 0x248   : > { %4839 = vmatmul.mubr.msk.f32.gmra.mrb[138].mxu1 %vm1273_vm1, %v6960_v17  ;;  %4935 = vmatmul.mubr.msk.f32.gmra.mrb[138].mxu0 %vm1273_vm1, %v6960_v17 }
 0x249   : > { %4840 = vmatprep.mubr.msk.f32.mxu1 %vm1273_vm1, %v6982_v32  ;;  %4936 = vmatprep.mubr.msk.f32.mxu0 %vm1273_vm1, %v6982_v32 }
 0x24c   : > { %4841 = vmatmul.mubr.msk.f32.gmra.mrb[140].mxu1 %vm1273_vm1, %v6982_v32  ;;  %4937 = vmatmul.mubr.msk.f32.gmra.mrb[140].mxu0 %vm1273_vm1, %v6982_v32 }
 0x24d   : > { %4842 = vmatprep.mubr.msk.f32.mxu1 %vm1273_vm1, %v6978_v57  ;;  %4938 = vmatprep.mubr.msk.f32.mxu0 %vm1273_vm1, %v6978_v57 }
 0x250   : > { %4843 = vmatmul.mubr.msk.f32.gmra.mrb[142].mxu1 %vm1273_vm1, %v6978_v57  ;;  %4939 = vmatmul.mubr.msk.f32.gmra.mrb[142].mxu0 %vm1273_vm1, %v6978_v57 }
 0x2a7   : > { %v1628_v41 = vpop.f32.mrb[80].mxu1  ;;  %v1885_v46 = vpop.f32.mrb[80].mxu0 }
 0x2a8   : > { %v7153_v50 = vsub.f32 %v6609_v61, %v1628_v41  ;;  %v7156_v17 = vsub.f32 %v6708_v34, %v1885_v46  ;;  %v1630_v16 = vpop.f32.mrb[81].mxu1  ;;  %v1887_v24 = vpop.f32.mrb[81].mxu0 }
 0x2a9   : > { %v7159_v31 = vsub.f32 %v6611_v63, %v1630_v16  ;;  %v7162_v47 = vsub.f32 %v6712_v6, %v1887_v24 }
 0x2aa   : > { %9087 = vst [vmem:[#allocation98_spill] sm:$0xff] %v7153_v50  ;;  %v2204_v61 = vmul.f32 %v7153_v50, %v7153_v50 }
 0x2ab   : > { %9088 = vst [vmem:[#allocation99_spill] sm:$0xff] %v7159_v31  ;;  %v2205_v32 = vmul.f32 %v7159_v31, %v7159_v31  ;;  %v1634_v57 = vpop.f32.mrb[82].mxu1  ;;  %v1891_v4 = vpop.f32.mrb[82].mxu0 }
 0x2ac   : > { %v7169_v41 = vsub.f32 %v6613_v22, %v1634_v57  ;;  %v7172_v34 = vsub.f32 %v6716_v54, %v1891_v4  ;;  %v1636_v46 = vpop.f32.mrb[83].mxu1  ;;  %v1893_v63 = vpop.f32.mrb[83].mxu0 }
 0x2ad   : > { %v7175_v16 = vsub.f32 %v6615_v23, %v1636_v46  ;;  %v7178_v6 = vsub.f32 %v6720_v49, %v1893_v63  ;;  %2396 = vmatprep.mubr.f32.mxu1 %v2205_v32 }
 0x2ae   : > { %9089 = vst [vmem:[#allocation100_spill] sm:$0xff] %v7169_v41  ;;  %2397 = vmatmul.mubr.f32.vlgmr.msra.gmra.mrb[144].mxu1 %v2204_v61  ;;  %v2208_v54 = vmul.f32 %v7169_v41, %v7169_v41  ;;  %v9182_v41 = vld [vmem:[#allocation81_spill] sm:$0xff] }
 0x2af   : > { %9090 = vst [vmem:[#allocation101_spill] sm:$0xff] %v7175_v16  ;;  %v2209_v24 = vmul.f32 %v7175_v16, %v7175_v16  ;;  %5358 = vmatpush1.bf16.msra.mxu1 %v6287_v53  ;;  %v1640_v22 = vpop.f32.mrb[84].mxu1  ;;  %v1897_v57 = vpop.f32.mrb[84].mxu0 }
 0x2b0   : > { %v7186_v4 = vsub.f32 %v6617_v38, %v1640_v22  ;;  %v7189_v23 = vsub.f32 %v6724_v12, %v1897_v57  ;;  %v1642_v49 = vpop.f32.mrb[85].mxu1  ;;  %v1899_v46 = vpop.f32.mrb[85].mxu0  ;;  %5359 = vmatprep.subr.bf16.mxu1 %v9055_v21 }
 0x2b1   : > { %v7193_v32 = vsub.f32 %v6619_v1, %v1642_v49  ;;  %v7196_v53 = vsub.f32 %v6728_v0, %v1899_v46  ;;  %2401 = vmatprep.mubr.f32.mxu1 %v2209_v24 }
 0x2b2   : > { %9091 = vst [vmem:[#allocation102_spill] sm:$0xff] %v7186_v4  ;;  %2402 = vmatmul.mubr.f32.gmra.mrb[146].mxu1 %v2208_v54  ;;  %v2212_v12 = vmul.f32 %v7186_v4, %v7186_v4 }
 0x2b3   : > { %9092 = vst [vmem:[#allocation103_spill] sm:$0xff] %v7193_v32  ;;  %v2213_v61 = vmul.f32 %v7193_v32, %v7193_v32  ;;  %v1646_v38 = vpop.f32.mrb[86].mxu1  ;;  %v1903_v63 = vpop.f32.mrb[86].mxu0  ;;  %5361 = vmatpush1.bf16.msra.mxu1 %v6329_v62 }
 0x2b4   : > { %v7204_v22 = vsub.f32 %v6621_v25, %v1646_v38  ;;  %v7207_v1 = vsub.f32 %v6732_v48, %v1903_v63  ;;  %v1648_v0 = vpop.f32.mrb[87].mxu1  ;;  %v1905_v57 = vpop.f32.mrb[87].mxu0  ;;  %5362 = vmatprep.subr.bf16.mxu1 %v9055_v21 }
 0x2b5   : > { %v7211_v24 = vsub.f32 %v6623_v8, %v1648_v0  ;;  %v7214_v54 = vsub.f32 %v6736_v29, %v1905_v57  ;;  %2406 = vmatprep.mubr.f32.mxu1 %v2213_v61 }
 0x2b6   : > { %9093 = vst [vmem:[#allocation104_spill] sm:$0xff] %v7204_v22  ;;  %2407 = vmatmul.mubr.f32.gmra.mrb[148].mxu1 %v2212_v12  ;;  %v2216_v48 = vmul.f32 %v7204_v22, %v7204_v22 }
 0x2b7   : > { %9094 = vst [vmem:[#allocation105_spill] sm:$0xff] %v7211_v24  ;;  %v2217_v62 = vmul.f32 %v7211_v24, %v7211_v24  ;;  %v1652_v25 = vpop.f32.mrb[88].mxu1  ;;  %v1909_v49 = vpop.f32.mrb[88].mxu0  ;;  %5364 = vmatpush1.bf16.msra.mxu1 %v6381_v15 }
 0x2b8   : > { %v7222_v46 = vsub.f32 %v6625_v7, %v1652_v25  ;;  %v7225_v8 = vsub.f32 %v6740_v19, %v1909_v49  ;;  %v1654_v29 = vpop.f32.mrb[89].mxu1  ;;  %v1911_v38 = vpop.f32.mrb[89].mxu0  ;;  %5365 = vmatprep.subr.bf16.mxu1 %v9055_v21 }
 0x2b9   : > { %v7229_v61 = vsub.f32 %v6627_v27, %v1654_v29  ;;  %v7232_v63 = vsub.f32 %v6744_v2, %v1911_v38  ;;  %2411 = vmatprep.mubr.f32.mxu1 %v2217_v62 }
 0x2ba   : > { %9095 = vst [vmem:[#allocation106_spill] sm:$0xff] %v7222_v46  ;;  %2412 = vmatmul.mubr.f32.gmra.mrb[150].mxu1 %v2216_v48  ;;  %v2220_v19 = vmul.f32 %v7222_v46, %v7222_v46 }
 0x2bb   : > { %9096 = vst [vmem:[#allocation107_spill] sm:$0xff] %v7229_v61  ;;  %v2221_v15 = vmul.f32 %v7229_v61, %v7229_v61  ;;  %v1658_v7 = vpop.f32.mrb[90].mxu1  ;;  %v1915_v12 = vpop.f32.mrb[90].mxu0  ;;  %5367 = vmatpush1.bf16.msra.mxu1 %v6423_v36 }
 0x2bc   : > { %v7240_v0 = vsub.f32 %v6629_v10, %v1658_v7  ;;  %v7243_v27 = vsub.f32 %v6748_v59, %v1915_v12  ;;  %v1660_v2 = vpop.f32.mrb[91].mxu1  ;;  %v1917_v57 = vpop.f32.mrb[91].mxu0  ;;  %5368 = vmatprep.subr.bf16.mxu1 %v9055_v21 }
 0x2bd   : > { %v7247_v62 = vsub.f32 %v6631_v28, %v1660_v2  ;;  %v7250_v25 = vsub.f32 %v6752_v60, %v1917_v57  ;;  %2416 = vmatprep.mubr.f32.mxu1 %v2221_v15 }
 0x2be   : > { %9097 = vst [vmem:[#allocation108_spill] sm:$0xff] %v7240_v0  ;;  %2417 = vmatmul.mubr.f32.gmra.mrb[152].mxu1 %v2220_v19  ;;  %v2224_v59 = vmul.f32 %v7240_v0, %v7240_v0 }
 0x2bf   : > { %9098 = vst [vmem:[#allocation109_spill] sm:$0xff] %v7247_v62  ;;  %v2225_v36 = vmul.f32 %v7247_v62, %v7247_v62  ;;  %v1664_v10 = vpop.f32.mrb[92].mxu1  ;;  %v1921_v49 = vpop.f32.mrb[92].mxu0  ;;  %5370 = vmatpush1.bf16.msra.mxu1 %v6475_v43 }
 0x2c0   : > { %v7258_v48 = vsub.f32 %v6633_v33, %v1664_v10  ;;  %v7261_v28 = vsub.f32 %v6756_v51, %v1921_v49  ;;  %v1666_v60 = vpop.f32.mrb[93].mxu1  ;;  %v1923_v29 = vpop.f32.mrb[93].mxu0  ;;  %5371 = vmatprep.subr.bf16.mxu1 %v9055_v21  ;;  %v9103_v10 = vld [vmem:[#allocation15_spill] sm:$0xff] }
 0x2c1   : > { %v7265_v38 = vsub.f32 %v6635_v37, %v1666_v60  ;;  %v7268_v15 = vsub.f32 %v6760_v9, %v1923_v29  ;;  %2421 = vmatprep.mubr.f32.mxu1 %v2225_v36  ;;  %v9106_v29 = vld [vmem:[#allocation17_spill] sm:$0xff] }
 0x2c2   : > { %9099 = vst [vmem:[#allocation110_spill] sm:$0xff] %v7258_v48  ;;  %2422 = vmatmul.mubr.f32.gmra.mrb[154].mxu1 %v2224_v59  ;;  %v2228_v51 = vmul.f32 %v7258_v48, %v7258_v48 }
 0x2c3   : > { %9100 = vst [vmem:[#allocation111_spill] sm:$0xff] %v7265_v38  ;;  %v2229_v43 = vmul.f32 %v7265_v38, %v7265_v38  ;;  %v1670_v33 = vpop.f32.mrb[94].mxu1  ;;  %v1927_v7 = vpop.f32.mrb[94].mxu0  ;;  %5373 = vmatpush1.bf16.msra.mxu1 %v6515_v44 }
 0x2c4   : > { %v7276_v12 = vsub.f32 %v6637_v39, %v1670_v33  ;;  %v7279_v37 = vsub.f32 %v6764_v18, %v1927_v7  ;;  %v1672_v9 = vpop.f32.mrb[95].mxu1  ;;  %v1929_v19 = vpop.f32.mrb[95].mxu0  ;;  %5374 = vmatprep.subr.bf16.mxu1 %v9055_v21  ;;  %v9108_v33 = vld [vmem:[#allocation64_spill] sm:$0xff] }
 0x2c5   : > { %v7283_v2 = vsub.f32 %v6639_v42, %v1672_v9  ;;  %v7286_v57 = vsub.f32 %v6768_v13, %v1929_v19  ;;  %2426 = vmatprep.mubr.f32.mxu1 %v2229_v43  ;;  %v9105_v42 = vld [vmem:[#allocation63_spill] sm:$0xff]  ;;  %v9109_v19 = vld [vmem:[#allocation14_spill] sm:$0xff] }
 0x2c6   : > { %9101 = vst [vmem:[#allocation112_spill] sm:$0xff] %v7276_v12  ;;  %2427 = vmatmul.mubr.f32.gmra.mrb[156].mxu1 %v2228_v51  ;;  %v2232_v18 = vmul.f32 %v7276_v12, %v7276_v12 }
 0x2c7   : > { %9102 = vst [vmem:[#allocation113_spill] sm:$0xff] %v7283_v2  ;;  %v2233_v44 = vmul.f32 %v7283_v2, %v7283_v2  ;;  %v1676_v39 = vpop.f32.mrb[96].mxu1  ;;  %v1933_v36 = vpop.f32.mrb[96].mxu0  ;;  %5376 = vmatpush1.bf16.msra.mxu1 %v6559_v11 }
 0x2c8   : > { %v7294_v49 = vsub.f32 %v9103_v10, %v1676_v39  ;;  %v7297_v59 = vsub.f32 %v9105_v42, %v1933_v36  ;;  %v1678_v13 = vpop.f32.mrb[97].mxu1  ;;  %v1935_v60 = vpop.f32.mrb[97].mxu0  ;;  %5377 = vmatprep.subr.bf16.mxu1 %v9055_v21  ;;  %v9110_v36 = vld [vmem:[#allocation19_spill] sm:$0xff]  ;;  %v9112_v42 = vld [vmem:[#allocation65_spill] sm:$0xff] }
 0x2c9   : > { %v7301_v43 = vsub.f32 %v9106_v29, %v1678_v13  ;;  %v7304_v7 = vsub.f32 %v9108_v33, %v1935_v60  ;;  %2431 = vmatprep.mubr.f32.mxu1 %v2233_v44  ;;  %v9113_v44 = vld [vmem:[#allocation21_spill] sm:$0xff]  ;;  %v9115_v33 = vld [vmem:[#allocation66_spill] sm:$0xff] }
 0x2ca   : > { %9104 = vst [vmem:[#allocation15_spill] sm:$0xff] %v7294_v49  ;;  %2432 = vmatmul.mubr.f32.gmra.mrb[158].mxu1 %v2232_v18  ;;  %v2236_v39 = vmul.f32 %v7294_v49, %v7294_v49  ;;  %v9116_v49 = vld [vmem:[#allocation6_spill] sm:$0xff] }
 0x2cb   : > { %9107 = vst [vmem:[#allocation63_spill] sm:$0xff] %v7301_v43  ;;  %v2237_v11 = vmul.f32 %v7301_v43, %v7301_v43  ;;  %v1682_v51 = vpop.f32.mrb[98].mxu1  ;;  %v1939_v9 = vpop.f32.mrb[98].mxu0  ;;  %5379 = vmatpush1.bf16.msra.mxu1 %v9109_v19 }
 0x2cc   : > { %v7312_v10 = vsub.f32 %v9110_v36, %v1682_v51  ;;  %v7315_v13 = vsub.f32 %v9112_v42, %v1939_v9  ;;  %v1684_v60 = vpop.f32.mrb[99].mxu1  ;;  %v1941_v29 = vpop.f32.mrb[99].mxu0  ;;  %5380 = vmatprep.subr.bf16.mxu1 %v9055_v21  ;;  %v9117_v42 = vld [vmem:[#allocation23_spill] sm:$0xff] }
 0x2cd   : > { %v7319_v18 = vsub.f32 %v9113_v44, %v1684_v60  ;;  %v7322_v43 = vsub.f32 %v9115_v33, %v1941_v29  ;;  %2436 = vmatprep.mubr.f32.mxu1 %v2237_v11  ;;  %v9119_v60 = vld [vmem:[#allocation67_spill] sm:$0xff]  ;;  %v9120_v11 = vld [vmem:[#allocation25_spill] sm:$0xff] }
 0x2ce   : > { %9111 = vst [vmem:[#allocation17_spill] sm:$0xff] %v7312_v10  ;;  %2437 = vmatmul.mubr.f32.gmra.mrb[160].mxu1 %v2236_v39  ;;  %v2240_v9 = vmul.f32 %v7312_v10, %v7312_v10  ;;  %v9123_v10 = vld [vmem:[#allocation7_spill] sm:$0xff] }
 0x2cf   : > { %9114 = vst [vmem:[#allocation64_spill] sm:$0xff] %v7319_v18  ;;  %v2241_v19 = vmul.f32 %v7319_v18, %v7319_v18  ;;  %v1688_v51 = vpop.f32.mrb[100].mxu1  ;;  %v1945_v36 = vpop.f32.mrb[100].mxu0  ;;  %5382 = vmatpush1.bf16.msra.mxu1 %v9116_v49  ;;  %v9122_v18 = vld [vmem:[#allocation68_spill] sm:$0xff] }
 0x2d0   : > { %v7330_v2 = vsub.f32 %v9117_v42, %v1688_v51  ;;  %v7333_v44 = vsub.f32 %v9119_v60, %v1945_v36  ;;  %v1690_v29 = vpop.f32.mrb[101].mxu1  ;;  %v1947_v33 = vpop.f32.mrb[101].mxu0  ;;  %5383 = vmatprep.subr.bf16.mxu1 %v9055_v21  ;;  %v9124_v60 = vld [vmem:[#allocation27_spill] sm:$0xff] }
 0x2d1   : > { %v7337_v39 = vsub.f32 %v9120_v11, %v1690_v29  ;;  %v7340_v12 = vsub.f32 %v9122_v18, %v1947_v33  ;;  %2441 = vmatprep.mubr.f32.mxu1 %v2241_v19  ;;  %v9126_v29 = vld [vmem:[#allocation69_spill] sm:$0xff] }
 0x2d2   : > { %9118 = vst [vmem:[#allocation14_spill] sm:$0xff] %v7330_v2  ;;  %2442 = vmatmul.mubr.f32.gmra.mrb[162].mxu1 %v2240_v9  ;;  %v2244_v36 = vmul.f32 %v7330_v2, %v7330_v2  ;;  %v9127_v19 = vld [vmem:[#allocation29_spill] sm:$0xff]  ;;  %v9130_v2 = vld [vmem:[#allocation8_spill] sm:$0xff] }
 0x2d3   : > { %9121 = vst [vmem:[#allocation19_spill] sm:$0xff] %v7337_v39  ;;  %v2245_v49 = vmul.f32 %v7337_v39, %v7337_v39  ;;  %v1694_v51 = vpop.f32.mrb[102].mxu1  ;;  %v1951_v42 = vpop.f32.mrb[102].mxu0  ;;  %5385 = vmatpush1.bf16.msra.mxu1 %v9123_v10 }
 0x2d4   : > { %v7348_v38 = vsub.f32 %v9124_v60, %v1694_v51  ;;  %v7351_v11 = vsub.f32 %v9126_v29, %v1951_v42  ;;  %v1696_v18 = vpop.f32.mrb[103].mxu1  ;;  %v1953_v33 = vpop.f32.mrb[103].mxu0  ;;  %5386 = vmatprep.subr.bf16.mxu1 %v9055_v21  ;;  %v9131_v29 = vld [vmem:[#allocation31_spill] sm:$0xff] }
 0x2d5   : > { %v7355_v9 = vsub.f32 %v9127_v19, %v1696_v18  ;;  %v7358_v39 = vsub.f32 %v6802_v55, %v1953_v33  ;;  %2446 = vmatprep.mubr.f32.mxu1 %v2245_v49  ;;  %v9133_v18 = vld [vmem:[#allocation70_spill] sm:$0xff]  ;;  %v9135_v49 = vld [vmem:[#allocation33_spill] sm:$0xff] }
 0x2d6   : > { %9125 = vst [vmem:[#allocation65_spill] sm:$0xff] %v7348_v38  ;;  %2447 = vmatmul.mubr.f32.gmra.mrb[164].mxu1 %v2244_v36  ;;  %v2248_v42 = vmul.f32 %v7348_v38, %v7348_v38  ;;  %v9139_v38 = vld [vmem:[#allocation9_spill] sm:$0xff] }
 0x2d7   : > { %9128 = vst [vmem:[#allocation21_spill] sm:$0xff] %v7355_v9  ;;  %9129 = vst [vmem:[#allocation66_spill] sm:$0xff] %v7358_v39  ;;  %v2249_v10 = vmul.f32 %v7355_v9, %v7355_v9  ;;  %v1700_v51 = vpop.f32.mrb[104].mxu1  ;;  %v1957_v60 = vpop.f32.mrb[104].mxu0  ;;  %5388 = vmatpush1.bf16.msra.mxu1 %v9130_v2  ;;  %v9137_v9 = vld [vmem:[#allocation71_spill] sm:$0xff] }
 0x2d8   : > { %v7366_v48 = vsub.f32 %v9131_v29, %v1700_v51  ;;  %v7369_v19 = vsub.f32 %v9133_v18, %v1957_v60  ;;  %v1702_v55 = vpop.f32.mrb[105].mxu1  ;;  %v1959_v33 = vpop.f32.mrb[105].mxu0  ;;  %5389 = vmatprep.subr.bf16.mxu1 %v9055_v21  ;;  %v9140_v18 = vld [vmem:[#allocation35_spill] sm:$0xff] }
 0x2d9   : > { %v7373_v36 = vsub.f32 %v9135_v49, %v1702_v55  ;;  %v7376_v62 = vsub.f32 %v9137_v9, %v1959_v33  ;;  %2451 = vmatprep.mubr.f32.mxu1 %v2249_v10  ;;  %v9142_v55 = vld [vmem:[#allocation72_spill] sm:$0xff]  ;;  %v9144_v10 = vld [vmem:[#allocation37_spill] sm:$0xff] }
 0x2da   : > { %9132 = vst [vmem:[#allocation6_spill] sm:$0xff] %v7366_v48  ;;  %9134 = vst [vmem:[#allocation23_spill] sm:$0xff] %v7369_v19  ;;  %2452 = vmatmul.mubr.f32.gmra.mrb[166].mxu1 %v2248_v42  ;;  %v2252_v60 = vmul.f32 %v7366_v48, %v7366_v48  ;;  %v9148_v48 = vld [vmem:[#allocation10_spill] sm:$0xff] }
 0x2db   : > { %9136 = vst [vmem:[#allocation67_spill] sm:$0xff] %v7373_v36  ;;  %9138 = vst [vmem:[#allocation25_spill] sm:$0xff] %v7376_v62  ;;  %v2253_v2 = vmul.f32 %v7373_v36, %v7373_v36  ;;  %v1706_v51 = vpop.f32.mrb[106].mxu1  ;;  %v1963_v29 = vpop.f32.mrb[106].mxu0  ;;  %5391 = vmatpush1.bf16.msra.mxu1 %v9139_v38  ;;  %v9146_v36 = vld [vmem:[#allocation73_spill] sm:$0xff] }
 0x2dc   : > { %v7384_v0 = vsub.f32 %v9140_v18, %v1706_v51  ;;  %v7387_v49 = vsub.f32 %v9142_v55, %v1963_v29  ;;  %v1708_v9 = vpop.f32.mrb[107].mxu1  ;;  %v1965_v33 = vpop.f32.mrb[107].mxu0  ;;  %5392 = vmatprep.subr.bf16.mxu1 %v9055_v21  ;;  %v9149_v55 = vld [vmem:[#allocation39_spill] sm:$0xff] }
 0x2dd   : > { %v7391_v42 = vsub.f32 %v9144_v10, %v1708_v9  ;;  %v7394_v61 = vsub.f32 %v9146_v36, %v1965_v33  ;;  %2456 = vmatprep.mubr.f32.mxu1 %v2253_v2  ;;  %v9151_v9 = vld [vmem:[#allocation74_spill] sm:$0xff]  ;;  %v9153_v2 = vld [vmem:[#allocation41_spill] sm:$0xff] }
 0x2de   : > { %9141 = vst [vmem:[#allocation68_spill] sm:$0xff] %v7384_v0  ;;  %9143 = vst [vmem:[#allocation7_spill] sm:$0xff] %v7387_v49  ;;  %2457 = vmatmul.mubr.f32.gmra.mrb[168].mxu1 %v2252_v60  ;;  %v2256_v29 = vmul.f32 %v7384_v0, %v7384_v0  ;;  %v9157_v0 = vld [vmem:[#allocation11_spill] sm:$0xff] }
 0x2df   : > { %9145 = vst [vmem:[#allocation27_spill] sm:$0xff] %v7391_v42  ;;  %9147 = vst [vmem:[#allocation69_spill] sm:$0xff] %v7394_v61  ;;  %v2257_v38 = vmul.f32 %v7391_v42, %v7391_v42  ;;  %v1712_v51 = vpop.f32.mrb[108].mxu1  ;;  %v1969_v18 = vpop.f32.mrb[108].mxu0  ;;  %5394 = vmatpush1.bf16.msra.mxu1 %v9148_v48  ;;  %v9155_v42 = vld [vmem:[#allocation75_spill] sm:$0xff] }
 0x2e0   : > { %v7402_v46 = vsub.f32 %v9149_v55, %v1712_v51  ;;  %v7405_v10 = vsub.f32 %v9151_v9, %v1969_v18  ;;  %v1714_v36 = vpop.f32.mrb[109].mxu1  ;;  %v1971_v33 = vpop.f32.mrb[109].mxu0  ;;  %5395 = vmatprep.subr.bf16.mxu1 %v9055_v21  ;;  %v9158_v9 = vld [vmem:[#allocation43_spill] sm:$0xff] }
 0x2e1   : > { %v7409_v60 = vsub.f32 %v9153_v2, %v1714_v36  ;;  %v7412_v24 = vsub.f32 %v9155_v42, %v1971_v33  ;;  %2461 = vmatprep.mubr.f32.mxu1 %v2257_v38  ;;  %v9160_v36 = vld [vmem:[#allocation76_spill] sm:$0xff]  ;;  %v9162_v38 = vld [vmem:[#allocation45_spill] sm:$0xff] }
 0x2e2   : > { %9150 = vst [vmem:[#allocation29_spill] sm:$0xff] %v7402_v46  ;;  %9152 = vst [vmem:[#allocation8_spill] sm:$0xff] %v7405_v10  ;;  %2462 = vmatmul.mubr.f32.gmra.mrb[170].mxu1 %v2256_v29  ;;  %v2260_v18 = vmul.f32 %v7402_v46, %v7402_v46  ;;  %v9166_v46 = vld [vmem:[#allocation12_spill] sm:$0xff] }
 0x2e3   : > { %9154 = vst [vmem:[#allocation31_spill] sm:$0xff] %v7409_v60  ;;  %9156 = vst [vmem:[#allocation70_spill] sm:$0xff] %v7412_v24  ;;  %v2261_v48 = vmul.f32 %v7409_v60, %v7409_v60  ;;  %v1718_v51 = vpop.f32.mrb[110].mxu1  ;;  %v1975_v55 = vpop.f32.mrb[110].mxu0  ;;  %5397 = vmatpush1.bf16.msra.mxu1 %v9157_v0  ;;  %v9164_v60 = vld [vmem:[#allocation77_spill] sm:$0xff] }
 0x2e4   : > { %v7420_v22 = vsub.f32 %v9158_v9, %v1718_v51  ;;  %v7423_v2 = vsub.f32 %v9160_v36, %v1975_v55  ;;  %v1720_v42 = vpop.f32.mrb[111].mxu1  ;;  %v1977_v33 = vpop.f32.mrb[111].mxu0  ;;  %5398 = vmatprep.subr.bf16.mxu1 %v9055_v21  ;;  %v9167_v36 = vld [vmem:[#allocation47_spill] sm:$0xff] }
 0x2e5   : > { %v7427_v29 = vsub.f32 %v9162_v38, %v1720_v42  ;;  %v7430_v32 = vsub.f32 %v9164_v60, %v1977_v33  ;;  %2466 = vmatprep.mubr.f32.mxu1 %v2261_v48  ;;  %v9169_v42 = vld [vmem:[#allocation78_spill] sm:$0xff]  ;;  %v9171_v48 = vld [vmem:[#allocation48_spill] sm:$0xff] }
 0x2e6   : > { %9159 = vst [vmem:[#allocation33_spill] sm:$0xff] %v7420_v22  ;;  %9161 = vst [vmem:[#allocation71_spill] sm:$0xff] %v7423_v2  ;;  %2467 = vmatmul.mubr.f32.gmra.mrb[172].mxu1 %v2260_v18  ;;  %v2264_v55 = vmul.f32 %v7420_v22, %v7420_v22  ;;  %v9175_v22 = vld [vmem:[#allocation13_spill] sm:$0xff] }
 0x2e7   : > { %9163 = vst [vmem:[#allocation9_spill] sm:$0xff] %v7427_v29  ;;  %9165 = vst [vmem:[#allocation35_spill] sm:$0xff] %v7430_v32  ;;  %v2265_v0 = vmul.f32 %v7427_v29, %v7427_v29  ;;  %v1724_v51 = vpop.f32.mrb[112].mxu1  ;;  %v1981_v9 = vpop.f32.mrb[112].mxu0  ;;  %5400 = vmatpush1.bf16.msra.mxu1 %v9166_v46  ;;  %v9173_v29 = vld [vmem:[#allocation79_spill] sm:$0xff] }
 0x2e8   : > { %v7438_v4 = vsub.f32 %v9167_v36, %v1724_v51  ;;  %v7441_v38 = vsub.f32 %v9169_v42, %v1981_v9  ;;  %v1726_v60 = vpop.f32.mrb[113].mxu1  ;;  %v1983_v33 = vpop.f32.mrb[113].mxu0  ;;  %5401 = vmatprep.subr.bf16.mxu1 %v9055_v21  ;;  %v9176_v42 = vld [vmem:[#allocation49_spill] sm:$0xff] }
 0x2e9   : > { %v7445_v18 = vsub.f32 %v9171_v48, %v1726_v60  ;;  %v7448_v16 = vsub.f32 %v9173_v29, %v1983_v33  ;;  %2471 = vmatprep.mubr.f32.mxu1 %v2265_v0  ;;  %v9178_v60 = vld [vmem:[#allocation80_spill] sm:$0xff]  ;;  %v9180_v0 = vld [vmem:[#allocation50_spill] sm:$0xff] }
 0x2ea   : > { %9168 = vst [vmem:[#allocation72_spill] sm:$0xff] %v7438_v4  ;;  %9170 = vst [vmem:[#allocation37_spill] sm:$0xff] %v7441_v38  ;;  %2472 = vmatmul.mubr.f32.gmra.mrb[174].mxu1 %v2264_v55  ;;  %v2268_v9 = vmul.f32 %v7438_v4, %v7438_v4 }
 0x2eb   : > { %9172 = vst [vmem:[#allocation73_spill] sm:$0xff] %v7445_v18  ;;  %9174 = vst [vmem:[#allocation10_spill] sm:$0xff] %v7448_v16  ;;  %v2269_v46 = vmul.f32 %v7445_v18, %v7445_v18  ;;  %v1730_v51 = vpop.f32.mrb[114].mxu1  ;;  %v1987_v36 = vpop.f32.mrb[114].mxu0  ;;  %5403 = vmatpush1.bf16.msra.mxu1 %v9175_v22 }
 0x2ec   : > { %v7456_v21 = vsub.f32 %v9176_v42, %v1730_v51  ;;  %v7459_v48 = vsub.f32 %v9178_v60, %v1987_v36  ;;  %v1732_v29 = vpop.f32.mrb[115].mxu1  ;;  %v1989_v33 = vpop.f32.mrb[115].mxu0  ;;  %v9184_v36 = vld [vmem:[#allocation51_spill] sm:$0xff]  ;;  %v9186_v60 = vld [vmem:[#allocation82_spill] sm:$0xff] }
 0x2ed   : > { %v7462_v55 = vsub.f32 %v9180_v0, %v1732_v29  ;;  %v7465_v18 = vsub.f32 %v9182_v41, %v1989_v33  ;;  %2476 = vmatprep.mubr.f32.mxu1 %v2269_v46  ;;  %v9188_v41 = vld [vmem:[#allocation52_spill] sm:$0xff]  ;;  %v9190_v46 = vld [vmem:[#allocation83_spill] sm:$0xff] }
 0x2ee   : > { %9177 = vst [vmem:[#allocation39_spill] sm:$0xff] %v7456_v21  ;;  %9179 = vst [vmem:[#allocation74_spill] sm:$0xff] %v7459_v48  ;;  %2477 = vmatmul.mubr.f32.gmra.mrb[176].mxu1 %v2268_v9  ;;  %v2272_v51 = vmul.f32 %v7456_v21, %v7456_v21 }
 0x2ef   : > { %9181 = vst [vmem:[#allocation41_spill] sm:$0xff] %v7462_v55  ;;  %9183 = vst [vmem:[#allocation75_spill] sm:$0xff] %v7465_v18  ;;  %v2273_v22 = vmul.f32 %v7462_v55, %v7462_v55  ;;  %v1736_v4 = vpop.f32.mrb[116].mxu1  ;;  %v1993_v31 = vpop.f32.mrb[116].mxu0 }
 0x2f0   : > { %v7472_v42 = vsub.f32 %v9184_v36, %v1736_v4  ;;  %v7475_v50 = vsub.f32 %v9186_v60, %v1993_v31  ;;  %v1738_v29 = vpop.f32.mrb[117].mxu1  ;;  %v1995_v0 = vpop.f32.mrb[117].mxu0  ;;  %v9192_v31 = vld [vmem:[#allocation53_spill] sm:$0xff] }
 0x2f1   : > { %v7478_v33 = vsub.f32 %v9188_v41, %v1738_v29  ;;  %v7481_v9 = vsub.f32 %v9190_v46, %v1995_v0  ;;  %2481 = vmatprep.mubr.f32.mxu1 %v2273_v22  ;;  %v9195_v0 = vld [vmem:[#allocation54_spill] sm:$0xff]  ;;  %v9197_v22 = vld [vmem:[#allocation84_spill] sm:$0xff] }
 0x2f2   : > { %9185 = vst [vmem:[#allocation11_spill] sm:$0xff] %v7472_v42  ;;  %9187 = vst [vmem:[#allocation43_spill] sm:$0xff] %v7475_v50  ;;  %2482 = vmatmul.mubr.f32.gmra.mrb[178].mxu1 %v2272_v51  ;;  %v2276_v4 = vmul.f32 %v7472_v42, %v7472_v42 }
 0x2f3   : > { %9189 = vst [vmem:[#allocation76_spill] sm:$0xff] %v7478_v33  ;;  %9191 = vst [vmem:[#allocation45_spill] sm:$0xff] %v7481_v9  ;;  %v2277_v55 = vmul.f32 %v7478_v33, %v7478_v33  ;;  %v1742_v21 = vpop.f32.mrb[118].mxu1  ;;  %v1999_v48 = vpop.f32.mrb[118].mxu0 }
 0x2f4   : > { %v7488_v36 = vsub.f32 %v9192_v31, %v1742_v21  ;;  %v7491_v60 = vsub.f32 %v6900_v5, %v1999_v48  ;;  %v1744_v29 = vpop.f32.mrb[119].mxu1  ;;  %v2001_v41 = vpop.f32.mrb[119].mxu0  ;;  %v9199_v5 = vld [vmem:[#allocation55_spill] sm:$0xff]  ;;  %v9201_v31 = vld [vmem:[#allocation85_spill] sm:$0xff] }
 0x2f5   : > { %v7494_v46 = vsub.f32 %v9195_v0, %v1744_v29  ;;  %v7497_v51 = vsub.f32 %v9197_v22, %v2001_v41  ;;  %2486 = vmatprep.mubr.f32.mxu1 %v2277_v55  ;;  %v9203_v41 = vld [vmem:[#allocation56_spill] sm:$0xff]  ;;  %v9205_v55 = vld [vmem:[#allocation86_spill] sm:$0xff] }
 0x2f6   : > { %9193 = vst [vmem:[#allocation77_spill] sm:$0xff] %v7488_v36  ;;  %9194 = vst [vmem:[#allocation12_spill] sm:$0xff] %v7491_v60  ;;  %2487 = vmatmul.mubr.f32.gmra.mrb[180].mxu1 %v2276_v4  ;;  %v2280_v21 = vmul.f32 %v7488_v36, %v7488_v36 }
 0x2f7   : > { %9196 = vst [vmem:[#allocation47_spill] sm:$0xff] %v7494_v46  ;;  %9198 = vst [vmem:[#allocation78_spill] sm:$0xff] %v7497_v51  ;;  %v2281_v33 = vmul.f32 %v7494_v46, %v7494_v46  ;;  %v1748_v42 = vpop.f32.mrb[120].mxu1  ;;  %v2005_v50 = vpop.f32.mrb[120].mxu0 }
 0x2f8   : > { %v7504_v48 = vsub.f32 %v9199_v5, %v1748_v42  ;;  %v7507_v60 = vsub.f32 %v9201_v31, %v2005_v50  ;;  %v1750_v29 = vpop.f32.mrb[121].mxu1  ;;  %v2007_v0 = vpop.f32.mrb[121].mxu0  ;;  %v9207_v50 = vld [vmem:[#allocation57_spill] sm:$0xff]  ;;  %v9209_v31 = vld [vmem:[#allocation87_spill] sm:$0xff] }
 0x2f9   : > { %v7510_v22 = vsub.f32 %v9203_v41, %v1750_v29  ;;  %v7513_v4 = vsub.f32 %v9205_v55, %v2007_v0  ;;  %2491 = vmatprep.mubr.f32.mxu1 %v2281_v33  ;;  %v9211_v0 = vld [vmem:[#allocation58_spill] sm:$0xff]  ;;  %v9213_v33 = vld [vmem:[#allocation88_spill] sm:$0xff] }
 0x2fa   : > { %9200 = vst [vmem:[#allocation48_spill] sm:$0xff] %v7504_v48  ;;  %9202 = vst [vmem:[#allocation79_spill] sm:$0xff] %v7507_v60  ;;  %2492 = vmatmul.mubr.f32.gmra.mrb[182].mxu1 %v2280_v21  ;;  %v2284_v42 = vmul.f32 %v7504_v48, %v7504_v48 }
 0x2fb   : > { %9204 = vst [vmem:[#allocation13_spill] sm:$0xff] %v7510_v22  ;;  %9206 = vst [vmem:[#allocation49_spill] sm:$0xff] %v7513_v4  ;;  %v2285_v46 = vmul.f32 %v7510_v22, %v7510_v22  ;;  %v1754_v36 = vpop.f32.mrb[122].mxu1  ;;  %v2011_v51 = vpop.f32.mrb[122].mxu0 }
 0x2fc   : > { %v7520_v5 = vsub.f32 %v9207_v50, %v1754_v36  ;;  %v7523_v60 = vsub.f32 %v9209_v31, %v2011_v51  ;;  %v1756_v29 = vpop.f32.mrb[123].mxu1  ;;  %v2013_v41 = vpop.f32.mrb[123].mxu0  ;;  %v9215_v51 = vld [vmem:[#allocation59_spill] sm:$0xff]  ;;  %v9217_v31 = vld [vmem:[#allocation89_spill] sm:$0xff] }
 0x2fd   : > { %v7526_v55 = vsub.f32 %v9211_v0, %v1756_v29  ;;  %v7529_v21 = vsub.f32 %v9213_v33, %v2013_v41  ;;  %2496 = vmatprep.mubr.f32.mxu1 %v2285_v46  ;;  %v9219_v41 = vld [vmem:[#allocation60_spill] sm:$0xff]  ;;  %v9221_v46 = vld [vmem:[#allocation90_spill] sm:$0xff] }
 0x2fe   : > { %9208 = vst [vmem:[#allocation80_spill] sm:$0xff] %v7520_v5  ;;  %9210 = vst [vmem:[#allocation50_spill] sm:$0xff] %v7523_v60  ;;  %2497 = vmatmul.mubr.f32.gmra.mrb[184].mxu1 %v2284_v42  ;;  %v2288_v36 = vmul.f32 %v7520_v5, %v7520_v5 }
 0x2ff   : > { %9212 = vst [vmem:[#allocation81_spill] sm:$0xff] %v7526_v55  ;;  %9214 = vst [vmem:[#allocation51_spill] sm:$0xff] %v7529_v21  ;;  %v2289_v22 = vmul.f32 %v7526_v55, %v7526_v55  ;;  %v1760_v48 = vpop.f32.mrb[124].mxu1  ;;  %v2017_v4 = vpop.f32.mrb[124].mxu0 }
 0x300   : > { %v7536_v50 = vsub.f32 %v9215_v51, %v1760_v48  ;;  %v7539_v60 = vsub.f32 %v9217_v31, %v2017_v4  ;;  %v1762_v29 = vpop.f32.mrb[125].mxu1  ;;  %v2019_v0 = vpop.f32.mrb[125].mxu0  ;;  %v9223_v4 = vld [vmem:[#allocation61_spill] sm:$0xff] }
 0x301   : > { %v7542_v33 = vsub.f32 %v9219_v41, %v1762_v29  ;;  %v7545_v42 = vsub.f32 %v9221_v46, %v2019_v0  ;;  %2501 = vmatprep.mubr.f32.mxu1 %v2289_v22  ;;  %v9226_v0 = vld [vmem:[#allocation62_spill] sm:$0xff]  ;;  %v9228_v22 = vld [vmem:[#allocation91_spill] sm:$0xff] }
 0x302   : > { %9216 = vst [vmem:[#allocation82_spill] sm:$0xff] %v7536_v50  ;;  %9218 = vst [vmem:[#allocation52_spill] sm:$0xff] %v7539_v60  ;;  %2502 = vmatmul.mubr.f32.gmra.mrb[186].mxu1 %v2288_v36  ;;  %v2292_v48 = vmul.f32 %v7536_v50, %v7536_v50 }
 0x303   : > { %9220 = vst [vmem:[#allocation83_spill] sm:$0xff] %v7542_v33  ;;  %9222 = vst [vmem:[#allocation53_spill] sm:$0xff] %v7545_v42  ;;  %v2293_v55 = vmul.f32 %v7542_v33, %v7542_v33  ;;  %v1766_v5 = vpop.f32.mrb[126].mxu1  ;;  %v2023_v21 = vpop.f32.mrb[126].mxu0 }
 0x304   : > { %v7552_v51 = vsub.f32 %v9223_v4, %v1766_v5  ;;  %v7555_v31 = vsub.f32 %v6972_v45, %v2023_v21  ;;  %v1768_v29 = vpop.f32.mrb[127].mxu1  ;;  %v2025_v41 = vpop.f32.mrb[127].mxu0  ;;  %v9230_v45 = vld [vmem:[#allocation16_spill] sm:$0xff] }
 0x305   : > { %v7558_v46 = vsub.f32 %v9226_v0, %v1768_v29  ;;  %v7561_v36 = vsub.f32 %v9228_v22, %v2025_v41  ;;  %2506 = vmatprep.mubr.f32.mxu1 %v2293_v55  ;;  %v9233_v41 = vld [vmem:[#allocation18_spill] sm:$0xff] }
 0x306   : > { %9224 = vst [vmem:[#allocation54_spill] sm:$0xff] %v7552_v51  ;;  %9225 = vst [vmem:[#allocation84_spill] sm:$0xff] %v7555_v31  ;;  %2507 = vmatmul.mubr.f32.gmra.mrb[188].mxu1 %v2292_v48  ;;  %v2296_v5 = vmul.f32 %v7552_v51, %v7552_v51 }
 0x307   : > { %9227 = vst [vmem:[#allocation55_spill] sm:$0xff] %v7558_v46  ;;  %9229 = vst [vmem:[#allocation85_spill] sm:$0xff] %v7561_v36  ;;  %v2297_v33 = vmul.f32 %v7558_v46, %v7558_v46  ;;  %v1772_v50 = vpop.f32.mrb[128].mxu1  ;;  %v2029_v60 = vpop.f32.mrb[128].mxu0 }
 0x308   : > { %v7568_v21 = vsub.f32 %v9230_v45, %v1772_v50  ;;  %v7571_v4 = vsub.f32 %v6990_v26, %v2029_v60  ;;  %v1774_v29 = vpop.f32.mrb[129].mxu1  ;;  %v2031_v0 = vpop.f32.mrb[129].mxu0  ;;  %v9236_v26 = vld [vmem:[#allocation20_spill] sm:$0xff] }
 0x309   : > { %v7574_v22 = vsub.f32 %v9233_v41, %v1774_v29  ;;  %v7577_v55 = vsub.f32 %v6996_v20, %v2031_v0  ;;  %2511 = vmatprep.mubr.f32.mxu1 %v2297_v33  ;;  %v9239_v20 = vld [vmem:[#allocation22_spill] sm:$0xff]  ;;  %v9241_v33 = vld [vmem:[#allocation92_spill] sm:$0xff] }
 0x30a   : > { %9231 = vst [vmem:[#allocation56_spill] sm:$0xff] %v7568_v21  ;;  %9232 = vst [vmem:[#allocation86_spill] sm:$0xff] %v7571_v4  ;;  %2512 = vmatmul.mubr.f32.gmra.mrb[190].mxu1 %v2296_v5  ;;  %v2300_v50 = vmul.f32 %v7568_v21, %v7568_v21 }
 0x30b   : > { %9234 = vst [vmem:[#allocation57_spill] sm:$0xff] %v7574_v22  ;;  %9235 = vst [vmem:[#allocation87_spill] sm:$0xff] %v7577_v55  ;;  %v2301_v48 = vmul.f32 %v7574_v22, %v7574_v22  ;;  %v1778_v46 = vpop.f32.mrb[130].mxu1  ;;  %v2035_v51 = vpop.f32.mrb[130].mxu0 }
 0x30c   : > { %v7584_v60 = vsub.f32 %v9236_v26, %v1778_v46  ;;  %v7587_v45 = vsub.f32 %v7004_v40, %v2035_v51  ;;  %v1780_v29 = vpop.f32.mrb[131].mxu1  ;;  %v2037_v41 = vpop.f32.mrb[131].mxu0  ;;  %v2894_v40 = vld [vmem:[%s8871_s3 + $0x80] sm:$0xff]  ;;  %v2895_v51 = vld [vmem:[%s8871_s3 + $0x88] sm:$0xff]  ;;  %v9243_v26 = vld [vmem:[#allocation24_spill] sm:$0xff] }
 0x30d   : > { %v7590_v0 = vsub.f32 %v9239_v20, %v1780_v29  ;;  %v7593_v5 = vsub.f32 %v9241_v33, %v2037_v41  ;;  %2516 = vmatprep.mubr.f32.mxu1 %v2301_v48  ;;  %v5404_v20 = vpack.c.bf16 %v2895_v51, %v2894_v40  ;;  %v9246_v33 = vld [vmem:[#allocation26_spill] sm:$0xff] }
 0x30e   : > { %9237 = vst [vmem:[#allocation58_spill] sm:$0xff] %v7584_v60  ;;  %9238 = vst [vmem:[#allocation88_spill] sm:$0xff] %v7587_v45  ;;  %2517 = vmatmul.mubr.f32.gmra.mrb[192].mxu1 %v2300_v50  ;;  %v2304_v46 = vmul.f32 %v7584_v60, %v7584_v60  ;;  %v9248_v45 = vld [vmem:[#allocation93_spill] sm:$0xff] }
 0x30f   : > { %9240 = vst [vmem:[#allocation59_spill] sm:$0xff] %v7590_v0  ;;  %9242 = vst [vmem:[#allocation89_spill] sm:$0xff] %v7593_v5  ;;  %v2305_v22 = vmul.f32 %v7590_v0, %v7590_v0  ;;  %v1784_v21 = vpop.f32.mrb[132].mxu1  ;;  %v2041_v4 = vpop.f32.mrb[132].mxu0  ;;  %5406 = vmatprep.subr.msk.bf16.mxu0 %vm6059_vm2, %v5404_v20 }
 0x310   : > { %v7606_v29 = vsub.f32 %v9243_v26, %v1784_v21  ;;  %v7609_v48 = vsub.f32 %v7016_v30, %v2041_v4  ;;  %v1786_v50 = vpop.f32.mrb[133].mxu1  ;;  %v2043_v41 = vpop.f32.mrb[133].mxu0  ;;  %v2878_v21 = vld [vmem:[%s8871_s3] sm:$0xff]  ;;  %v2879_v30 = vld [vmem:[%s8871_s3 + $0x8] sm:$0xff] }
 0x311   : > { %v7612_v0 = vsub.f32 %v9246_v33, %v1786_v50  ;;  %v7615_v5 = vsub.f32 %v9248_v45, %v2043_v41  ;;  %2521 = vmatprep.mubr.f32.mxu1 %v2305_v22  ;;  %v5407_v45 = vpack.c.bf16 %v2879_v30, %v2878_v21  ;;  %v9254_v33 = vld [vmem:[#allocation30_spill] sm:$0xff] }
 0x312   : > { %9244 = vst [vmem:[#allocation60_spill] sm:$0xff] %v7606_v29  ;;  %9245 = vst [vmem:[#allocation90_spill] sm:$0xff] %v7609_v48  ;;  %2522 = vmatmul.mubr.f32.gmra.mrb[194].mxu1 %v2304_v46  ;;  %v2308_v22 = vmul.f32 %v7606_v29, %v7606_v29  ;;  %v9251_v46 = vld [vmem:[#allocation28_spill] sm:$0xff]  ;;  %v9256_v48 = vld [vmem:[#allocation94_spill] sm:$0xff] }
 0x313   : > { %9247 = vst [vmem:[#allocation61_spill] sm:$0xff] %v7612_v0  ;;  %9249 = vst [vmem:[#allocation62_spill] sm:$0xff] %v7615_v5  ;;  %v2309_v4 = vmul.f32 %v7612_v0, %v7612_v0  ;;  %v1790_v40 = vpop.f32.mrb[134].mxu1  ;;  %v2047_v51 = vpop.f32.mrb[134].mxu0  ;;  %5409 = vmatpush3.bf16.xpose.msk.msra.mxu0 %vm6059_vm2, %v5407_v45  ;;  %v9263_v45 = vld [vmem:[#allocation95_spill] sm:$0xff] }
 0x314   : > { %v7630_v26 = vsub.f32 %v9251_v46, %v1790_v40  ;;  %v7633_v50 = vsub.f32 %v7028_v3, %v2047_v51  ;;  %v1792_v41 = vpop.f32.mrb[135].mxu1  ;;  %v2049_v20 = vpop.f32.mrb[135].mxu0  ;;  %v9258_v51 = vld [vmem:[#allocation32_spill] sm:$0xff] }
 0x315   : > { %v7636_v60 = vsub.f32 %v9254_v33, %v1792_v41  ;;  %v7639_v5 = vsub.f32 %v9256_v48, %v2049_v20  ;;  %2526 = vmatprep.mubr.f32.mxu1 %v2309_v4  ;;  %v9261_v20 = vld [vmem:[#allocation34_spill] sm:$0xff] }
 0x316   : > { %9252 = vst [vmem:[#allocation91_spill] sm:$0xff] %v7630_v26  ;;  %9253 = vst [vmem:[#allocation16_spill] sm:$0xff] %v7633_v50  ;;  %2527 = vmatmul.mubr.f32.gmra.mrb[196].mxu1 %v2308_v22  ;;  %v2312_v3 = vmul.f32 %v7630_v26, %v7630_v26 }
 0x317   : > { %9255 = vst [vmem:[#allocation18_spill] sm:$0xff] %v7636_v60  ;;  %9257 = vst [vmem:[#allocation20_spill] sm:$0xff] %v7639_v5  ;;  %v2313_v21 = vmul.f32 %v7636_v60, %v7636_v60  ;;  %v1796_v30 = vpop.f32.mrb[136].mxu1  ;;  %v2053_v40 = vpop.f32.mrb[136].mxu0 }
 0x318   : > { %v7648_v46 = vsub.f32 %v9258_v51, %v1796_v30  ;;  %v7651_v41 = vsub.f32 %v7040_v35, %v2053_v40  ;;  %v1798_v48 = vpop.f32.mrb[137].mxu1  ;;  %v2055_v4 = vpop.f32.mrb[137].mxu0  ;;  %v9265_v35 = vld [vmem:[#allocation36_spill] sm:$0xff] }
 0x319   : > { %v7654_v33 = vsub.f32 %v9261_v20, %v1798_v48  ;;  %v7657_v22 = vsub.f32 %v9263_v45, %v2055_v4  ;;  %2531 = vmatprep.mubr.f32.mxu1 %v2313_v21  ;;  %v9268_v4 = vld [vmem:[#allocation38_spill] sm:$0xff]  ;;  %v9270_v21 = vld [vmem:[#allocation96_spill] sm:$0xff] }
 0x31a   : > { %9259 = vst [vmem:[#allocation22_spill] sm:$0xff] %v7648_v46  ;;  %9260 = vst [vmem:[#allocation92_spill] sm:$0xff] %v7651_v41  ;;  %2532 = vmatmul.mubr.f32.gmra.mrb[198].mxu1 %v2312_v3  ;;  %v2316_v30 = vmul.f32 %v7648_v46, %v7648_v46 }
 0x31b   : > { %9262 = vst [vmem:[#allocation24_spill] sm:$0xff] %v7654_v33  ;;  %9264 = vst [vmem:[#allocation26_spill] sm:$0xff] %v7657_v22  ;;  %v2317_v60 = vmul.f32 %v7654_v33, %v7654_v33  ;;  %v1802_v26 = vpop.f32.mrb[138].mxu1  ;;  %v2059_v0 = vpop.f32.mrb[138].mxu0 }
 0x31c   : > { %v7664_v40 = vsub.f32 %v9265_v35, %v1802_v26  ;;  %v7667_v51 = vsub.f32 %v7052_v58, %v2059_v0  ;;  %v1804_v48 = vpop.f32.mrb[139].mxu1  ;;  %v2061_v20 = vpop.f32.mrb[139].mxu0  ;;  %v2896_v58 = vld [vmem:[%s8871_s3 + $0x90] sm:$0xff]  ;;  %v2897_v0 = vld [vmem:[%s8871_s3 + $0x98] sm:$0xff] }
 0x31d   : > { %v7670_v45 = vsub.f32 %v9268_v4, %v1804_v48  ;;  %v7673_v3 = vsub.f32 %v9270_v21, %v2061_v20  ;;  %2536 = vmatprep.mubr.f32.mxu1 %v2317_v60  ;;  %v9272_v35 = vld [vmem:[#allocation40_spill] sm:$0xff]  ;;  %v5410_v4 = vpack.c.bf16 %v2897_v0, %v2896_v58  ;;  %v9274_v21 = vld [vmem:[#allocation42_spill] sm:$0xff] }
 0x31e   : > { %9266 = vst [vmem:[#allocation93_spill] sm:$0xff] %v7664_v40  ;;  %9267 = vst [vmem:[#allocation5_spill] sm:$0xff] %v7667_v51  ;;  %2537 = vmatmul.mubr.f32.gmra.mrb[200].mxu1 %v2316_v30  ;;  %v2320_v26 = vmul.f32 %v7664_v40, %v7664_v40 }
 0x31f   : > { %9269 = vst [vmem:[#allocation28_spill] sm:$0xff] %v7670_v45  ;;  %9271 = vst [vmem:[#allocation30_spill] sm:$0xff] %v7673_v3  ;;  %v2321_v33 = vmul.f32 %v7670_v45, %v7670_v45  ;;  %v1808_v46 = vpop.f32.mrb[140].mxu1  ;;  %v2065_v29 = vpop.f32.mrb[140].mxu0  ;;  %5412 = vmatprep.subr.msk.bf16.mxu0 %vm6059_vm2, %v5410_v4 }
 0x320   : > { %v7686_v48 = vsub.f32 %v9272_v35, %v1808_v46  ;;  %v7689_v60 = vsub.f32 %v7064_v52, %v2065_v29  ;;  %v1810_v30 = vpop.f32.mrb[141].mxu1  ;;  %v2067_v20 = vpop.f32.mrb[141].mxu0  ;;  %v2880_v46 = vld [vmem:[%s8871_s3 + $0x10] sm:$0xff]  ;;  %v2881_v52 = vld [vmem:[%s8871_s3 + $0x18] sm:$0xff] }
 0x321   : > { %v7692_v45 = vsub.f32 %v9274_v21, %v1810_v30  ;;  %v7695_v51 = vsub.f32 %v7070_v14, %v2067_v20  ;;  %2541 = vmatprep.mubr.f32.mxu1 %v2321_v33  ;;  %v5413_v14 = vpack.c.bf16 %v2881_v52, %v2880_v46  ;;  %v9278_v21 = vld [vmem:[#allocation46_spill] sm:$0xff]  ;;  %v2207_v52 = vmul.f32 %v7162_v47, %v7162_v47 }
 0x322   : > { %9273 = vst [vmem:[#allocation94_spill] sm:$0xff] %v7689_v60  ;;  %2542 = vmatmul.mubr.f32.gmra.mrb[202].mxu1 %v2320_v26  ;;  %v2324_v33 = vmul.f32 %v7686_v48, %v7686_v48  ;;  %v9276_v26 = vld [vmem:[#allocation44_spill] sm:$0xff]  ;;  %v9279_v60 = vld [vmem:[#allocation97_spill] sm:$0xff] }
 0x323   : > { %9275 = vst [vmem:[#allocation32_spill] sm:$0xff] %v7695_v51  ;;  %v2325_v29 = vmul.f32 %v7692_v45, %v7692_v45  ;;  %v1814_v58 = vpop.f32.mrb[142].mxu1  ;;  %v2071_v0 = vpop.f32.mrb[142].mxu0  ;;  %5415 = vmatpush3.bf16.xpose.msk.msra.mxu0 %vm6059_vm2, %v5413_v14  ;;  %v2883_v14 = vld [vmem:[%s8871_s3 + $0x28] sm:$0xff] }
 0x324   : > { %v7710_v35 = vsub.f32 %v9276_v26, %v1814_v58  ;;  %v7713_v30 = vsub.f32 %v7076_v56, %v2071_v0  ;;  %v1816_v20 = vpop.f32.mrb[143].mxu1  ;;  %v2073_v4 = vpop.f32.mrb[143].mxu0  ;;  %v2882_v58 = vld [vmem:[%s8871_s3 + $0x20] sm:$0xff]  ;;  %v2901_v26 = vld [vmem:[%s8871_s3 + $0xb8] sm:$0xff] }
 0x325   : > { %v7716_v40 = vsub.f32 %v9278_v21, %v1816_v20  ;;  %v7719_v51 = vsub.f32 %v9279_v60, %v2073_v4  ;;  %2546 = vmatprep.mubr.f32.mxu1 %v2325_v29  ;;  %v2898_v60 = vld [vmem:[%s8871_s3 + $0xa0] sm:$0xff]  ;;  %v2899_v29 = vld [vmem:[%s8871_s3 + $0xa8] sm:$0xff]  ;;  %v2206_v20 = vmul.f32 %v7156_v17, %v7156_v17  ;;  %v5419_v4 = vpack.c.bf16 %v2883_v14, %v2882_v58 }
 0x326   : > { %9277 = vst [vmem:[#allocation34_spill] sm:$0xff] %v7713_v30  ;;  %2547 = vmatmul.mubr.f32.gmra.mrb[204].mxu1 %v2324_v33  ;;  %v2328_v56 = vmul.f32 %v7710_v35, %v7710_v35  ;;  %v5416_v0 = vpack.c.bf16 %v2899_v29, %v2898_v60  ;;  %v2900_v33 = vld [vmem:[%s8871_s3 + $0xb0] sm:$0xff]  ;;  %v2210_v60 = vmul.f32 %v7172_v34, %v7172_v34  ;;  %v2902_v29 = vld [vmem:[%s8871_s3 + $0xc0] sm:$0xff]  ;;  %v2903_v58 = vld [vmem:[%s8871_s3 + $0xc8] sm:$0xff] }
 0x327   : > { %9280 = vst [vmem:[#allocation95_spill] sm:$0xff] %v7719_v51  ;;  %v2329_v46 = vmul.f32 %v7716_v40, %v7716_v40  ;;  %v5422_v21 = vpack.c.bf16 %v2901_v26, %v2900_v33  ;;  %v5428_v33 = vpack.c.bf16 %v2903_v58, %v2902_v29  ;;  %v2214_v26 = vmul.f32 %v7189_v23, %v7189_v23 }
 0x328   : > { %5418 = vmatprep.subr.msk.bf16.mxu0 %vm6059_vm2, %v5416_v0  ;;  %v2215_v0 = vmul.f32 %v7196_v53, %v7196_v53 }
 0x329   : > { %2551 = vmatprep.mubr.f32.mxu1 %v2329_v46  ;;  %v2211_v46 = vmul.f32 %v7178_v6, %v7178_v6 }
 0x32a   : > { %2552 = vmatmul.mubr.f32.gmra.mrb[206].mxu1 %v2328_v56  ;;  %v2884_v56 = vld [vmem:[%s8871_s3 + $0x30] sm:$0xff] }
 0x32b   : > { %2621 = vmatprep.mubr.f32.mxu1 %v2207_v52  ;;  %5421 = vmatpush3.bf16.xpose.msk.msra.mxu0 %vm6059_vm2, %v5419_v4  ;;  %v2885_v52 = vld [vmem:[%s8871_s3 + $0x38] sm:$0xff]  ;;  %v2886_v4 = vld [vmem:[%s8871_s3 + $0x40] sm:$0xff] }
 0x32c   : > { %5424 = vmatprep.subr.msk.bf16.mxu0 %vm6059_vm2, %v5422_v21  ;;  %v5425_v14 = vpack.c.bf16 %v2885_v52, %v2884_v56  ;;  %v2887_v21 = vld [vmem:[%s8871_s3 + $0x48] sm:$0xff]  ;;  %v2904_v56 = vld [vmem:[%s8871_s3 + $0xd0] sm:$0xff]  ;;  %v2905_v52 = vld [vmem:[%s8871_s3 + $0xd8] sm:$0xff] }
 0x32d   : > { %v5431_v29 = vpack.c.bf16 %v2887_v21, %v2886_v4  ;;  %v5434_v58 = vpack.c.bf16 %v2905_v52, %v2904_v56  ;;  %v2906_v4 = vld [vmem:[%s8871_s3 + $0xe0] sm:$0xff]  ;;  %v2907_v21 = vld [vmem:[%s8871_s3 + $0xe8] sm:$0xff] }
 0x32e   : > { %2622 = vmatmul.mubr.f32.vlgmr.msra.gmra.mrb[144].mxu1 %v2206_v20  ;;  %v2219_v20 = vmul.f32 %v7214_v54, %v7214_v54  ;;  %v5440_v52 = vpack.c.bf16 %v2907_v21, %v2906_v4  ;;  %v2243_v4 = vmul.f32 %v7322_v43, %v7322_v43  ;;  %v2242_v21 = vmul.f32 %v7315_v13, %v7315_v13 }
 0x32f   : > { %2626 = vmatprep.mubr.f32.mxu1 %v2211_v46  ;;  %v2218_v46 = vmul.f32 %v7207_v1, %v7207_v1 }
 0x332   : > { %2627 = vmatmul.mubr.f32.gmra.mrb[146].mxu1 %v2210_v60  ;;  %v2223_v60 = vmul.f32 %v7232_v63, %v7232_v63 }
 0x333   : > { %2631 = vmatprep.mubr.f32.mxu1 %v2215_v0  ;;  %5427 = vmatpush3.bf16.xpose.msk.msra.mxu0 %vm6059_vm2, %v5425_v14  ;;  %v2222_v0 = vmul.f32 %v7225_v8, %v7225_v8  ;;  %v2227_v14 = vmul.f32 %v7250_v25, %v7250_v25 }
 0x334   : > { %5430 = vmatprep.subr.msk.bf16.mxu0 %vm6059_vm2, %v5428_v33  ;;  %v2888_v33 = vld [vmem:[%s8871_s3 + $0x50] sm:$0xff] }
 0x336   : > { %2632 = vmatmul.mubr.f32.gmra.mrb[148].mxu1 %v2214_v26  ;;  %v2889_v26 = vld [vmem:[%s8871_s3 + $0x58] sm:$0xff] }
 0x337   : > { %2636 = vmatprep.mubr.f32.mxu1 %v2219_v20  ;;  %v2226_v20 = vmul.f32 %v7243_v27, %v7243_v27  ;;  %v5437_v56 = vpack.c.bf16 %v2889_v26, %v2888_v33  ;;  %v2239_v33 = vmul.f32 %v7304_v7, %v7304_v7 }
 0x33a   : > { %2637 = vmatmul.mubr.f32.gmra.mrb[150].mxu1 %v2218_v46  ;;  %v2231_v46 = vmul.f32 %v7268_v15, %v7268_v15 }
 0x33b   : > { %2641 = vmatprep.mubr.f32.mxu1 %v2223_v60  ;;  %5433 = vmatpush3.bf16.xpose.msk.msra.mxu0 %vm6059_vm2, %v5431_v29  ;;  %v2230_v60 = vmul.f32 %v7261_v28, %v7261_v28  ;;  %v2235_v29 = vmul.f32 %v7286_v57, %v7286_v57 }
 0x33c   : > { %5436 = vmatprep.subr.msk.bf16.mxu0 %vm6059_vm2, %v5434_v58  ;;  %v2890_v58 = vld [vmem:[%s8871_s3 + $0x60] sm:$0xff] }
 0x33e   : > { %2642 = vmatmul.mubr.f32.gmra.mrb[152].mxu1 %v2222_v0  ;;  %v2891_v0 = vld [vmem:[%s8871_s3 + $0x68] sm:$0xff] }
 0x33f   : > { %2646 = vmatprep.mubr.f32.mxu1 %v2227_v14  ;;  %v2234_v14 = vmul.f32 %v7279_v37, %v7279_v37  ;;  %v5443_v26 = vpack.c.bf16 %v2891_v0, %v2890_v58  ;;  %v2254_v58 = vmul.f32 %v7369_v19, %v7369_v19  ;;  %v2259_v0 = vmul.f32 %v7394_v61, %v7394_v61 }
 0x342   : > { %2647 = vmatmul.mubr.f32.gmra.mrb[154].mxu1 %v2226_v20  ;;  %v2238_v20 = vmul.f32 %v7297_v59, %v7297_v59 }
 0x343   : > { %2651 = vmatprep.mubr.f32.mxu1 %v2231_v46  ;;  %5439 = vmatpush3.bf16.xpose.msk.msra.mxu0 %vm6059_vm2, %v5437_v56  ;;  %v2247_v46 = vmul.f32 %v7340_v12, %v7340_v12  ;;  %v2246_v56 = vmul.f32 %v7333_v44, %v7333_v44 }
 0x344   : > { %5442 = vmatprep.subr.msk.bf16.mxu0 %vm6059_vm2, %v5440_v52  ;;  %v2251_v52 = vmul.f32 %v7358_v39, %v7358_v39 }
 0x346   : > { %2652 = vmatmul.mubr.f32.gmra.mrb[156].mxu1 %v2230_v60  ;;  %v2250_v60 = vmul.f32 %v7351_v11, %v7351_v11 }
 0x347   : > { %2656 = vmatprep.mubr.f32.mxu1 %v2235_v29  ;;  %v2255_v29 = vmul.f32 %v7376_v62, %v7376_v62 }
 0x34a   : > { %2657 = vmatmul.mubr.f32.gmra.mrb[158].mxu1 %v2234_v14  ;;  %v2258_v14 = vmul.f32 %v7387_v49, %v7387_v49 }
 0x34b   : > { %2661 = vmatprep.mubr.f32.mxu1 %v2239_v33  ;;  %5445 = vmatpush3.bf16.xpose.msk.msra.mxu0 %vm6059_vm2, %v5443_v26  ;;  %v2263_v33 = vmul.f32 %v7412_v24, %v7412_v24  ;;  %v2262_v26 = vmul.f32 %v7405_v10, %v7405_v10 }
 0x34e   : > { %2662 = vmatmul.mubr.f32.gmra.mrb[160].mxu1 %v2238_v20  ;;  %v2267_v20 = vmul.f32 %v7430_v32, %v7430_v32 }
 0x34f   : > { %2666 = vmatprep.mubr.f32.mxu1 %v2243_v4  ;;  %v2266_v4 = vmul.f32 %v7423_v2, %v7423_v2 }
 0x352   : > { %2667 = vmatmul.mubr.f32.gmra.mrb[162].mxu1 %v2242_v21  ;;  %v2271_v21 = vmul.f32 %v7448_v16, %v7448_v16 }
 0x353   : > { %2671 = vmatprep.mubr.f32.mxu1 %v2247_v46  ;;  %v2270_v46 = vmul.f32 %v7441_v38, %v7441_v38 }
 0x356   : > { %2672 = vmatmul.mubr.f32.gmra.mrb[164].mxu1 %v2246_v56  ;;  %v2275_v56 = vmul.f32 %v7465_v18, %v7465_v18 }
 0x357   : > { %2676 = vmatprep.mubr.f32.mxu1 %v2251_v52  ;;  %v9281_v52 = vld [vmem:[#allocation74_spill] sm:$0xff] }
 0x35a   : > { %2677 = vmatmul.mubr.f32.gmra.mrb[166].mxu1 %v2250_v60  ;;  %v2274_v60 = vmul.f32 %v9281_v52, %v9281_v52 }
 0x35b   : > { %2681 = vmatprep.mubr.f32.mxu1 %v2255_v29  ;;  %v2279_v29 = vmul.f32 %v7481_v9, %v7481_v9  ;;  %v9288_v9 = vld [vmem:[#allocation50_spill] sm:$0xff] }
 0x35e   : > { %2682 = vmatmul.mubr.f32.gmra.mrb[168].mxu1 %v2254_v58  ;;  %v9282_v58 = vld [vmem:[#allocation43_spill] sm:$0xff] }
 0x35f   : > { %2686 = vmatprep.mubr.f32.mxu1 %v2259_v0  ;;  %v2278_v0 = vmul.f32 %v9282_v58, %v9282_v58 }
 0x362   : > { %2687 = vmatmul.mubr.f32.gmra.mrb[170].mxu1 %v2258_v14  ;;  %v9283_v14 = vld [vmem:[#allocation78_spill] sm:$0xff] }
 0x363   : > { %2691 = vmatprep.mubr.f32.mxu1 %v2263_v33  ;;  %v2283_v33 = vmul.f32 %v9283_v14, %v9283_v14  ;;  %v9289_v14 = vld [vmem:[#allocation52_spill] sm:$0xff] }
 0x366   : > { %2692 = vmatmul.mubr.f32.gmra.mrb[172].mxu1 %v2262_v26  ;;  %v9284_v26 = vld [vmem:[#allocation12_spill] sm:$0xff] }
 0x367   : > { %2696 = vmatprep.mubr.f32.mxu1 %v2267_v20  ;;  %v2282_v20 = vmul.f32 %v9284_v26, %v9284_v26 }
 0x36a   : > { %2697 = vmatmul.mubr.f32.gmra.mrb[174].mxu1 %v2266_v4  ;;  %v9285_v4 = vld [vmem:[#allocation49_spill] sm:$0xff] }
 0x36b   : > { %2701 = vmatprep.mubr.f32.mxu1 %v2271_v21  ;;  %v2287_v21 = vmul.f32 %v9285_v4, %v9285_v4 }
 0x36e   : > { %2702 = vmatmul.mubr.f32.gmra.mrb[176].mxu1 %v2270_v46  ;;  %v9286_v46 = vld [vmem:[#allocation79_spill] sm:$0xff] }
 0x36f   : > { %2706 = vmatprep.mubr.f32.mxu1 %v2275_v56  ;;  %v2286_v56 = vmul.f32 %v9286_v46, %v9286_v46 }
 0x372   : > { %2707 = vmatmul.mubr.f32.gmra.mrb[178].mxu1 %v2274_v60  ;;  %v9287_v60 = vld [vmem:[#allocation51_spill] sm:$0xff] }
 0x373   : > { %2711 = vmatprep.mubr.f32.mxu1 %v2279_v29  ;;  %v2291_v29 = vmul.f32 %v9287_v60, %v9287_v60 }
 0x376   : > { %2712 = vmatmul.mubr.f32.gmra.mrb[180].mxu1 %v2278_v0  ;;  %v2290_v0 = vmul.f32 %v9288_v9, %v9288_v9 }
 0x377   : > { %2716 = vmatprep.mubr.f32.mxu1 %v2283_v33  ;;  %v2295_v33 = vmul.f32 %v7545_v42, %v7545_v42  ;;  %v2893_v42 = vld [vmem:[%s8871_s3 + $0x78] sm:$0xff] }
 0x37a   : > { %2717 = vmatmul.mubr.f32.gmra.mrb[182].mxu1 %v2282_v20  ;;  %v2294_v20 = vmul.f32 %v9289_v14, %v9289_v14  ;;  %v9290_v14 = vld [vmem:[#allocation87_spill] sm:$0xff] }
 0x37b   : > { %2721 = vmatprep.mubr.f32.mxu1 %v2287_v21  ;;  %v2299_v21 = vmul.f32 %v7561_v36, %v7561_v36  ;;  %v2303_v60 = vmul.f32 %v9290_v14, %v9290_v14  ;;  %v9294_v14 = vld [vmem:[#allocation62_spill] sm:$0xff] }
 0x37e   : > { %2722 = vmatmul.mubr.f32.gmra.mrb[184].mxu1 %v2286_v56  ;;  %v2908_v56 = vld [vmem:[%s8871_s3 + $0xf0] sm:$0xff] }
 0x37f   : > { %2726 = vmatprep.mubr.f32.mxu1 %v2291_v29  ;;  %v2909_v29 = vld [vmem:[%s8871_s3 + $0xf8] sm:$0xff] }
 0x382   : > { %2727 = vmatmul.mubr.f32.gmra.mrb[186].mxu1 %v2290_v0  ;;  %v2892_v0 = vld [vmem:[%s8871_s3 + $0x70] sm:$0xff] }
 0x383   : > { %2731 = vmatprep.mubr.f32.mxu1 %v2295_v33  ;;  %v5446_v33 = vpack.c.bf16 %v2909_v29, %v2908_v56  ;;  %v5449_v36 = vpack.c.bf16 %v2893_v42, %v2892_v0  ;;  %v9292_v29 = vld [vmem:[#allocation89_spill] sm:$0xff]  ;;  %v9293_v42 = vld [vmem:[#allocation88_spill] sm:$0xff] }
 0x384   : > { %v2307_v9 = vmul.f32 %v9292_v29, %v9292_v29  ;;  %v2306_v0 = vmul.f32 %v9293_v42, %v9293_v42 }
 0x385   : > { %5448 = vmatprep.subr.msk.bf16.mxu0 %vm6059_vm2, %v5446_v33  ;;  %v9295_v33 = vld [vmem:[#allocation90_spill] sm:$0xff] }
 0x386   : > { %2732 = vmatmul.mubr.f32.gmra.mrb[188].mxu1 %v2294_v20  ;;  %v2298_v20 = vmul.f32 %v7555_v31, %v7555_v31  ;;  %5451 = vmatpush3.bf16.xpose.msk.msra.mxu0 %vm6059_vm2, %v5449_v36  ;;  %v2311_v31 = vmul.f32 %v9294_v14, %v9294_v14  ;;  %v2310_v36 = vmul.f32 %v9295_v33, %v9295_v33 }
 0x387   : > { %2736 = vmatprep.mubr.f32.mxu1 %v2299_v21  ;;  %v9291_v21 = vld [vmem:[#allocation86_spill] sm:$0xff] }
 0x388   : > { %v2302_v56 = vmul.f32 %v9291_v21, %v9291_v21 }
 0x38a   : > { %2737 = vmatmul.mubr.f32.gmra.mrb[190].mxu1 %v2298_v20  ;;  %v2926_v20 = vld [vmem:[%s8871_s3 + $0x180] sm:$0xff] }
 0x38b   : > { %2741 = vmatprep.mubr.f32.mxu1 %v2303_v60  ;;  %v2315_v60 = vmul.f32 %v7639_v5, %v7639_v5  ;;  %v2323_v5 = vmul.f32 %v7673_v3, %v7673_v3 }
 0x38e   : > { %2742 = vmatmul.mubr.f32.gmra.mrb[192].mxu1 %v2302_v56 }
 0x38f   : > { %2746 = vmatprep.mubr.f32.mxu1 %v2307_v9  ;;  %v2927_v9 = vld [vmem:[%s8871_s3 + $0x188] sm:$0xff] }
 0x390   : > { %v5452_v56 = vpack.c.bf16 %v2927_v9, %v2926_v20  ;;  %v9297_v9 = vld [vmem:[#allocation32_spill] sm:$0xff] }
 0x392   : > { %2747 = vmatmul.mubr.f32.gmra.mrb[194].mxu1 %v2306_v0  ;;  %v2319_v0 = vmul.f32 %v7657_v22, %v7657_v22  ;;  %5454 = vmatprep.subr.msk.bf16.mxu0 %vm6059_vm2, %v5452_v56  ;;  %v9298_v22 = vld [vmem:[#allocation94_spill] sm:$0xff] }
 0x393   : > { %2751 = vmatprep.mubr.f32.mxu1 %v2311_v31  ;;  %v2314_v31 = vmul.f32 %v7633_v50, %v7633_v50  ;;  %v2327_v50 = vmul.f32 %v9297_v9, %v9297_v9  ;;  %v2326_v56 = vmul.f32 %v9298_v22, %v9298_v22 }
 0x396   : > { %2752 = vmatmul.mubr.f32.gmra.mrb[196].mxu1 %v2310_v36  ;;  %v2318_v36 = vmul.f32 %v7651_v41, %v7651_v41 }
 0x397   : > { %2756 = vmatprep.mubr.f32.mxu1 %v2315_v60  ;;  %v9296_v60 = vld [vmem:[#allocation5_spill] sm:$0xff] }
 0x398   : > { %v2322_v20 = vmul.f32 %v9296_v60, %v9296_v60 }
 0x39a   : > { %2757 = vmatmul.mubr.f32.gmra.mrb[198].mxu1 %v2314_v31  ;;  %v2331_v31 = vmul.f32 %v7719_v51, %v7719_v51 }
 0x39b   : > { %2761 = vmatprep.mubr.f32.mxu1 %v2319_v0  ;;  %v2330_v0 = vmul.f32 %v7713_v30, %v7713_v30 }
 0x39e   : > { %2762 = vmatmul.mubr.f32.gmra.mrb[200].mxu1 %v2318_v36 }
 0x39f   : > { %2766 = vmatprep.mubr.f32.mxu1 %v2323_v5 }
 0x3a2   : > { %2767 = vmatmul.mubr.f32.gmra.mrb[202].mxu1 %v2322_v20 }
 0x3a3   : > { %2771 = vmatprep.mubr.f32.mxu1 %v2327_v50 }
 0x3a6   : > { %2772 = vmatmul.mubr.f32.gmra.mrb[204].mxu1 %v2326_v56  ;;  %v2910_v56 = vld [vmem:[%s8871_s3 + $0x100] sm:$0xff] }
 0x3a7   : > { %2776 = vmatprep.mubr.f32.mxu1 %v2331_v31  ;;  %v2911_v31 = vld [vmem:[%s8871_s3 + $0x108] sm:$0xff] }
 0x3aa   : > { %2777 = vmatmul.mubr.f32.gmra.mrb[206].mxu1 %v2330_v0 }
 0x401   : > { %v2623_v5 = vpop.f32.mrb[144].mxu1 }
 0x402   : > { %v2782_v36 = vmul.f32 0.03125, %v2623_v5  ;;  %v2625_v3 = vpop.f32.mrb[145].mxu1 }
 0x404   : > { %v2814_v60 = vadd.f32 1e-05, %v2782_v36 }
 0x405   : > { %v2628_v41 = vpop.f32.mrb[146].mxu1 }
 0x406   : > { %5627 = vrsqrt.f32 %v2814_v60  ;;  %v2783_v20 = vmul.f32 0.03125, %v2628_v41  ;;  %v2630_v50 = vpop.f32.mrb[147].mxu1  ;;  %v2928_v41 = vld [vmem:[%s8871_s3 + $0x190] sm:$0xff]  ;;  %v2929_v60 = vld [vmem:[%s8871_s3 + $0x198] sm:$0xff] }
 0x407   : > { %v5458_v5 = vpack.c.bf16 %v2929_v60, %v2928_v41  ;;  %v2930_v60 = vld [vmem:[%s8871_s3 + $0x1a0] sm:$0xff] }
 0x408   : > { %v2815_v9 = vadd.f32 1e-05, %v2783_v20 }
 0x409   : > { %v2633_v14 = vpop.f32.mrb[148].mxu1 }
 0x40a   : > { %5629 = vrsqrt.f32 %v2815_v9  ;;  %v2784_v22 = vmul.f32 0.03125, %v2633_v14  ;;  %v2635_v33 = vpop.f32.mrb[149].mxu1 }
 0x40b   : > { %v5455_v33 = vpack.c.bf16 %v2911_v31, %v2910_v56  ;;  %v2912_v31 = vld [vmem:[%s8871_s3 + $0x110] sm:$0xff] }
 0x40c   : > { %v2816_v51 = vadd.f32 1e-05, %v2784_v22 }
 0x40d   : > { %v2638_v3 = vpop.f32.mrb[150].mxu1 }
 0x40e   : > { %5631 = vrsqrt.f32 %v2816_v51  ;;  %v2785_v14 = vmul.f32 0.03125, %v2638_v3  ;;  %v2640_v22 = vpop.f32.mrb[151].mxu1  ;;  %v2913_v3 = vld [vmem:[%s8871_s3 + $0x118] sm:$0xff] }
 0x410   : > { %v7971_v9 = vpop.eup %5627  ;;  %v2817_v0 = vadd.f32 1e-05, %v2785_v14  ;;  %v2931_v14 = vld [vmem:[%s8871_s3 + $0x1a8] sm:$0xff] }
 0x411   : > { %v2643_v36 = vpop.f32.mrb[152].mxu1  ;;  %4972 = vmatprep.mubr.msk.f32.mxu0 %vm1273_vm1, %v7971_v9 }
 0x412   : > { %5633 = vrsqrt.f32 %v2817_v0  ;;  %v2786_v20 = vmul.f32 0.03125, %v2643_v36  ;;  %v2645_v50 = vpop.f32.mrb[153].mxu1  ;;  %4973 = vmatmul.mubr.msk.f32.vlgmr.msra.gmra.mrb[144].mxu0 %vm1273_vm1, %v7971_v9  ;;  %v5461_v0 = vpack.c.bf16 %v2913_v3, %v2912_v31  ;;  %v2914_v3 = vld [vmem:[%s8871_s3 + $0x120] sm:$0xff] }
 0x413   : > { %5457 = vmatpush3.bf16.xpose.msk.msra.mxu0 %vm6059_vm2, %v5455_v33 }
 0x414   : > { %v7979_v51 = vpop.eup %5629  ;;  %v2818_v56 = vadd.f32 1e-05, %v2786_v20  ;;  %5460 = vmatprep.subr.msk.bf16.mxu0 %vm6059_vm2, %v5458_v5  ;;  %v5464_v20 = vpack.c.bf16 %v2931_v14, %v2930_v60  ;;  %v2932_v60 = vld [vmem:[%s8871_s3 + $0x1b0] sm:$0xff] }
 0x415   : > { %v2648_v41 = vpop.f32.mrb[154].mxu1  ;;  %4974 = vmatprep.mubr.msk.f32.mxu0 %vm1273_vm1, %v7979_v51 }
 0x416   : > { %5635 = vrsqrt.f32 %v2818_v56  ;;  %v2787_v22 = vmul.f32 0.03125, %v2648_v41  ;;  %v2650_v33 = vpop.f32.mrb[155].mxu1  ;;  %4975 = vmatmul.mubr.msk.f32.gmra.mrb[146].mxu0 %vm1273_vm1, %v7979_v51 }
 0x418   : > { %v7999_v5 = vpop.eup %5631  ;;  %v2819_v36 = vadd.f32 1e-05, %v2787_v22 }
 0x419   : > { %v2653_v50 = vpop.f32.mrb[156].mxu1  ;;  %4976 = vmatprep.mubr.msk.f32.mxu0 %vm1273_vm1, %v7999_v5 }
 0x41a   : > { %5637 = vrsqrt.f32 %v2819_v36  ;;  %v2788_v30 = vmul.f32 0.03125, %v2653_v50  ;;  %v2655_v29 = vpop.f32.mrb[157].mxu1  ;;  %4977 = vmatmul.mubr.msk.f32.gmra.mrb[148].mxu0 %vm1273_vm1, %v7999_v5 }
 0x41b   : > { %5463 = vmatpush3.bf16.xpose.msk.msra.mxu0 %vm6059_vm2, %v5461_v0  ;;  %v2915_v29 = vld [vmem:[%s8871_s3 + $0x128] sm:$0xff] }
 0x41c   : > { %v8007_v56 = vpop.eup %5633  ;;  %v2820_v31 = vadd.f32 1e-05, %v2788_v30  ;;  %5466 = vmatprep.subr.msk.bf16.mxu0 %vm6059_vm2, %v5464_v20  ;;  %v2933_v30 = vld [vmem:[%s8871_s3 + $0x1b8] sm:$0xff]  ;;  %v5467_v33 = vpack.c.bf16 %v2915_v29, %v2914_v3  ;;  %v2916_v29 = vld [vmem:[%s8871_s3 + $0x130] sm:$0xff] }
 0x41d   : > { %v2658_v41 = vpop.f32.mrb[158].mxu1  ;;  %4978 = vmatprep.mubr.msk.f32.mxu0 %vm1273_vm1, %v8007_v56  ;;  %v5470_v20 = vpack.c.bf16 %v2933_v30, %v2932_v60  ;;  %v2934_v60 = vld [vmem:[%s8871_s3 + $0x1c0] sm:$0xff] }
 0x41e   : > { %5639 = vrsqrt.f32 %v2820_v31  ;;  %v2789_v14 = vmul.f32 0.03125, %v2658_v41  ;;  %v2660_v22 = vpop.f32.mrb[159].mxu1  ;;  %4979 = vmatmul.mubr.msk.f32.gmra.mrb[150].mxu0 %vm1273_vm1, %v8007_v56 }
 0x420   : > { %v8027_v0 = vpop.eup %5635  ;;  %v2821_v36 = vadd.f32 1e-05, %v2789_v14 }
 0x421   : > { %v2663_v50 = vpop.f32.mrb[160].mxu1  ;;  %4980 = vmatprep.mubr.msk.f32.mxu0 %vm1273_vm1, %v8027_v0 }
 0x422   : > { %5641 = vrsqrt.f32 %v2821_v36  ;;  %v2790_v42 = vmul.f32 0.03125, %v2663_v50  ;;  %v2665_v21 = vpop.f32.mrb[161].mxu1  ;;  %4981 = vmatmul.mubr.msk.f32.gmra.mrb[152].mxu0 %vm1273_vm1, %v8027_v0 }
 0x423   : > { %5469 = vmatpush3.bf16.xpose.msk.msra.mxu0 %vm6059_vm2, %v5467_v33  ;;  %v2917_v21 = vld [vmem:[%s8871_s3 + $0x138] sm:$0xff] }
 0x424   : > { %v8035_v31 = vpop.eup %5637  ;;  %v2822_v3 = vadd.f32 1e-05, %v2790_v42  ;;  %5472 = vmatprep.subr.msk.bf16.mxu0 %vm6059_vm2, %v5470_v20  ;;  %v2935_v42 = vld [vmem:[%s8871_s3 + $0x1c8] sm:$0xff]  ;;  %v5473_v22 = vpack.c.bf16 %v2917_v21, %v2916_v29  ;;  %v2918_v21 = vld [vmem:[%s8871_s3 + $0x140] sm:$0xff] }
 0x425   : > { %v2668_v41 = vpop.f32.mrb[162].mxu1  ;;  %4982 = vmatprep.mubr.msk.f32.mxu0 %vm1273_vm1, %v8035_v31  ;;  %v5476_v20 = vpack.c.bf16 %v2935_v42, %v2934_v60  ;;  %v2936_v60 = vld [vmem:[%s8871_s3 + $0x1d0] sm:$0xff] }
 0x426   : > { %5643 = vrsqrt.f32 %v2822_v3  ;;  %v2791_v30 = vmul.f32 0.03125, %v2668_v41  ;;  %v2670_v14 = vpop.f32.mrb[163].mxu1  ;;  %4983 = vmatmul.mubr.msk.f32.gmra.mrb[154].mxu0 %vm1273_vm1, %v8035_v31 }
 0x428   : > { %v8055_v33 = vpop.eup %5639  ;;  %v2823_v36 = vadd.f32 1e-05, %v2791_v30 }
 0x429   : > { %v2673_v50 = vpop.f32.mrb[164].mxu1  ;;  %4984 = vmatprep.mubr.msk.f32.mxu0 %vm1273_vm1, %v8055_v33 }
 0x42a   : > { %5645 = vrsqrt.f32 %v2823_v36  ;;  %v2792_v4 = vmul.f32 0.03125, %v2673_v50  ;;  %v2675_v46 = vpop.f32.mrb[165].mxu1  ;;  %4985 = vmatmul.mubr.msk.f32.gmra.mrb[156].mxu0 %vm1273_vm1, %v8055_v33 }
 0x42b   : > { %5475 = vmatpush3.bf16.xpose.msk.msra.mxu0 %vm6059_vm2, %v5473_v22  ;;  %v2919_v46 = vld [vmem:[%s8871_s3 + $0x148] sm:$0xff] }
 0x42c   : > { %v8063_v3 = vpop.eup %5641  ;;  %v2824_v29 = vadd.f32 1e-05, %v2792_v4  ;;  %5478 = vmatprep.subr.msk.bf16.mxu0 %vm6059_vm2, %v5476_v20  ;;  %v2937_v4 = vld [vmem:[%s8871_s3 + $0x1d8] sm:$0xff]  ;;  %v5479_v14 = vpack.c.bf16 %v2919_v46, %v2918_v21  ;;  %v2920_v46 = vld [vmem:[%s8871_s3 + $0x150] sm:$0xff] }
 0x42d   : > { %v2678_v41 = vpop.f32.mrb[166].mxu1  ;;  %4986 = vmatprep.mubr.msk.f32.mxu0 %vm1273_vm1, %v8063_v3  ;;  %v5482_v20 = vpack.c.bf16 %v2937_v4, %v2936_v60  ;;  %v2938_v60 = vld [vmem:[%s8871_s3 + $0x1e0] sm:$0xff] }
 0x42e   : > { %5647 = vrsqrt.f32 %v2824_v29  ;;  %v2793_v42 = vmul.f32 0.03125, %v2678_v41  ;;  %v2680_v30 = vpop.f32.mrb[167].mxu1  ;;  %4987 = vmatmul.mubr.msk.f32.gmra.mrb[158].mxu0 %vm1273_vm1, %v8063_v3 }
 0x430   : > { %v8083_v22 = vpop.eup %5643  ;;  %v2825_v36 = vadd.f32 1e-05, %v2793_v42 }
 0x431   : > { %v2683_v50 = vpop.f32.mrb[168].mxu1  ;;  %4988 = vmatprep.mubr.msk.f32.mxu0 %vm1273_vm1, %v8083_v22 }
 0x432   : > { %5649 = vrsqrt.f32 %v2825_v36  ;;  %v2794_v26 = vmul.f32 0.03125, %v2683_v50  ;;  %v2685_v58 = vpop.f32.mrb[169].mxu1  ;;  %4989 = vmatmul.mubr.msk.f32.gmra.mrb[160].mxu0 %vm1273_vm1, %v8083_v22 }
 0x433   : > { %5481 = vmatpush3.bf16.xpose.msk.msra.mxu0 %vm6059_vm2, %v5479_v14  ;;  %v2921_v58 = vld [vmem:[%s8871_s3 + $0x158] sm:$0xff] }
 0x434   : > { %v8091_v29 = vpop.eup %5645  ;;  %v2826_v21 = vadd.f32 1e-05, %v2794_v26  ;;  %5484 = vmatprep.subr.msk.bf16.mxu0 %vm6059_vm2, %v5482_v20  ;;  %v2939_v26 = vld [vmem:[%s8871_s3 + $0x1e8] sm:$0xff]  ;;  %v5485_v30 = vpack.c.bf16 %v2921_v58, %v2920_v46  ;;  %v2922_v58 = vld [vmem:[%s8871_s3 + $0x160] sm:$0xff] }
 0x435   : > { %v2688_v41 = vpop.f32.mrb[170].mxu1  ;;  %4990 = vmatprep.mubr.msk.f32.mxu0 %vm1273_vm1, %v8091_v29  ;;  %v5488_v20 = vpack.c.bf16 %v2939_v26, %v2938_v60  ;;  %v2940_v60 = vld [vmem:[%s8871_s3 + $0x1f0] sm:$0xff] }
 0x436   : > { %5651 = vrsqrt.f32 %v2826_v21  ;;  %v2795_v4 = vmul.f32 0.03125, %v2688_v41  ;;  %v2690_v42 = vpop.f32.mrb[171].mxu1  ;;  %4991 = vmatmul.mubr.msk.f32.gmra.mrb[162].mxu0 %vm1273_vm1, %v8091_v29 }
 0x438   : > { %v8111_v14 = vpop.eup %5647  ;;  %v2827_v36 = vadd.f32 1e-05, %v2795_v4 }
 0x439   : > { %v2693_v50 = vpop.f32.mrb[172].mxu1  ;;  %4992 = vmatprep.mubr.msk.f32.mxu0 %vm1273_vm1, %v8111_v14 }
 0x43a   : > { %5653 = vrsqrt.f32 %v2827_v36  ;;  %v2796_v18 = vmul.f32 0.03125, %v2693_v50  ;;  %v2695_v52 = vpop.f32.mrb[173].mxu1  ;;  %4993 = vmatmul.mubr.msk.f32.gmra.mrb[164].mxu0 %vm1273_vm1, %v8111_v14 }
 0x43b   : > { %5487 = vmatpush3.bf16.xpose.msk.msra.mxu0 %vm6059_vm2, %v5485_v30  ;;  %v2923_v52 = vld [vmem:[%s8871_s3 + $0x168] sm:$0xff] }
 0x43c   : > { %v8119_v21 = vpop.eup %5649  ;;  %v2828_v46 = vadd.f32 1e-05, %v2796_v18  ;;  %5490 = vmatprep.subr.msk.bf16.mxu0 %vm6059_vm2, %v5488_v20  ;;  %v2941_v18 = vld [vmem:[%s8871_s3 + $0x1f8] sm:$0xff]  ;;  %v5491_v42 = vpack.c.bf16 %v2923_v52, %v2922_v58  ;;  %v2924_v52 = vld [vmem:[%s8871_s3 + $0x170] sm:$0xff] }
 0x43d   : > { %v2698_v41 = vpop.f32.mrb[174].mxu1  ;;  %4994 = vmatprep.mubr.msk.f32.mxu0 %vm1273_vm1, %v8119_v21  ;;  %v5494_v20 = vpack.c.bf16 %v2941_v18, %v2940_v60 }
 0x43e   : > { %5655 = vrsqrt.f32 %v2828_v46  ;;  %v2797_v26 = vmul.f32 0.03125, %v2698_v41  ;;  %v2700_v4 = vpop.f32.mrb[175].mxu1  ;;  %4995 = vmatmul.mubr.msk.f32.gmra.mrb[166].mxu0 %vm1273_vm1, %v8119_v21 }
 0x440   : > { %v8139_v30 = vpop.eup %5651  ;;  %v2829_v36 = vadd.f32 1e-05, %v2797_v26 }
 0x441   : > { %v2703_v50 = vpop.f32.mrb[176].mxu1  ;;  %4996 = vmatprep.mubr.msk.f32.mxu0 %vm1273_vm1, %v8139_v30 }
 0x442   : > { %5657 = vrsqrt.f32 %v2829_v36  ;;  %v2798_v16 = vmul.f32 0.03125, %v2703_v50  ;;  %v2705_v38 = vpop.f32.mrb[177].mxu1  ;;  %4997 = vmatmul.mubr.msk.f32.gmra.mrb[168].mxu0 %vm1273_vm1, %v8139_v30 }
 0x443   : > { %5493 = vmatpush3.bf16.xpose.msk.msra.mxu0 %vm6059_vm2, %v5491_v42  ;;  %v2925_v38 = vld [vmem:[%s8871_s3 + $0x178] sm:$0xff] }
 0x444   : > { %v8147_v46 = vpop.eup %5653  ;;  %v2830_v58 = vadd.f32 1e-05, %v2798_v16  ;;  %5496 = vmatprep.subr.msk.bf16.mxu0 %vm6059_vm2, %v5494_v20  ;;  %v5497_v16 = vpack.c.bf16 %v2925_v38, %v2924_v52 }
 0x445   : > { %v2708_v41 = vpop.f32.mrb[178].mxu1  ;;  %4998 = vmatprep.mubr.msk.f32.mxu0 %vm1273_vm1, %v8147_v46 }
 0x446   : > { %5659 = vrsqrt.f32 %v2830_v58  ;;  %v2799_v60 = vmul.f32 0.03125, %v2708_v41  ;;  %v2710_v18 = vpop.f32.mrb[179].mxu1  ;;  %4999 = vmatmul.mubr.msk.f32.gmra.mrb[170].mxu0 %vm1273_vm1, %v8147_v46 }
 0x448   : > { %v8161_v26 = vpop.eup %5655  ;;  %v2831_v4 = vadd.f32 1e-05, %v2799_v60 }
 0x449   : > { %v2713_v42 = vpop.f32.mrb[180].mxu1  ;;  %5000 = vmatprep.mubr.msk.f32.mxu0 %vm1273_vm1, %v8161_v26 }
 0x44a   : > { %5661 = vrsqrt.f32 %v2831_v4  ;;  %v2800_v36 = vmul.f32 0.03125, %v2713_v42  ;;  %v2715_v20 = vpop.f32.mrb[181].mxu1  ;;  %5001 = vmatmul.mubr.msk.f32.gmra.mrb[172].mxu0 %vm1273_vm1, %v8161_v26 }
 0x44b   : > { %5499 = vmatpush3.bf16.xpose.msk.msra.mxu0 %vm6059_vm2, %v5497_v16 }
 0x44c   : > { %v8169_v50 = vpop.eup %5657  ;;  %v2832_v58 = vadd.f32 1e-05, %v2800_v36 }
 0x44d   : > { %v2718_v52 = vpop.f32.mrb[182].mxu1  ;;  %5002 = vmatprep.mubr.msk.f32.mxu0 %vm1273_vm1, %v8169_v50 }
 0x44e   : > { %5663 = vrsqrt.f32 %v2832_v58  ;;  %v2801_v38 = vmul.f32 0.03125, %v2718_v52  ;;  %v2720_v41 = vpop.f32.mrb[183].mxu1  ;;  %5003 = vmatmul.mubr.msk.f32.gmra.mrb[174].mxu0 %vm1273_vm1, %v8169_v50 }
 0x450   : > { %v8175_v60 = vpop.eup %5659  ;;  %v2833_v18 = vadd.f32 1e-05, %v2801_v38 }
 0x451   : > { %v2723_v4 = vpop.f32.mrb[184].mxu1  ;;  %5004 = vmatprep.mubr.msk.f32.mxu0 %vm1273_vm1, %v8175_v60 }
 0x452   : > { %5665 = vrsqrt.f32 %v2833_v18  ;;  %v2802_v55 = vmul.f32 0.03125, %v2723_v4  ;;  %v2725_v16 = vpop.f32.mrb[185].mxu1  ;;  %5005 = vmatmul.mubr.msk.f32.gmra.mrb[176].mxu0 %vm1273_vm1, %v8175_v60 }
 0x454   : > { %v8181_v42 = vpop.eup %5661  ;;  %v2834_v36 = vadd.f32 1e-05, %v2802_v55 }
 0x455   : > { %v2728_v20 = vpop.f32.mrb[186].mxu1  ;;  %5006 = vmatprep.mubr.msk.f32.mxu0 %vm1273_vm1, %v8181_v42 }
 0x456   : > { %5667 = vrsqrt.f32 %v2834_v36  ;;  %v2803_v58 = vmul.f32 0.03125, %v2728_v20  ;;  %v2730_v52 = vpop.f32.mrb[187].mxu1  ;;  %5007 = vmatmul.mubr.msk.f32.gmra.mrb[178].mxu0 %vm1273_vm1, %v8181_v42 }
 0x458   : > { %v8187_v38 = vpop.eup %5663  ;;  %v2835_v41 = vadd.f32 1e-05, %v2803_v58 }
 0x459   : > { %v2733_v18 = vpop.f32.mrb[188].mxu1  ;;  %5008 = vmatprep.mubr.msk.f32.mxu0 %vm1273_vm1, %v8187_v38 }
 0x45a   : > { %5669 = vrsqrt.f32 %v2835_v41  ;;  %v2804_v4 = vmul.f32 0.03125, %v2733_v18  ;;  %v2735_v55 = vpop.f32.mrb[189].mxu1  ;;  %5009 = vmatmul.mubr.msk.f32.gmra.mrb[180].mxu0 %vm1273_vm1, %v8187_v38 }
 0x45c   : > { %v8193_v16 = vpop.eup %5665  ;;  %v2836_v36 = vadd.f32 1e-05, %v2804_v4 }
 0x45d   : > { %v2738_v20 = vpop.f32.mrb[190].mxu1  ;;  %5010 = vmatprep.mubr.msk.f32.mxu0 %vm1273_vm1, %v8193_v16 }
 0x45e   : > { %5671 = vrsqrt.f32 %v2836_v36  ;;  %v2805_v52 = vmul.f32 0.03125, %v2738_v20  ;;  %v2740_v58 = vpop.f32.mrb[191].mxu1  ;;  %5011 = vmatmul.mubr.msk.f32.gmra.mrb[182].mxu0 %vm1273_vm1, %v8193_v16 }
 0x460   : > { %v8199_v32 = vpop.eup %5667  ;;  %v2837_v41 = vadd.f32 1e-05, %v2805_v52 }
 0x461   : > { %v2743_v18 = vpop.f32.mrb[192].mxu1  ;;  %5012 = vmatprep.mubr.msk.f32.mxu0 %vm1273_vm1, %v8199_v32 }
 0x462   : > { %5673 = vrsqrt.f32 %v2837_v41  ;;  %v2806_v55 = vmul.f32 0.03125, %v2743_v18  ;;  %v2745_v4 = vpop.f32.mrb[193].mxu1  ;;  %5013 = vmatmul.mubr.msk.f32.gmra.mrb[184].mxu0 %vm1273_vm1, %v8199_v32 }
 0x464   : > { %v8205_v2 = vpop.eup %5669  ;;  %v2838_v36 = vadd.f32 1e-05, %v2806_v55 }
 0x465   : > { %v2748_v20 = vpop.f32.mrb[194].mxu1  ;;  %5014 = vmatprep.mubr.msk.f32.mxu0 %vm1273_vm1, %v8205_v2 }
 0x466   : > { %5675 = vrsqrt.f32 %v2838_v36  ;;  %v2807_v58 = vmul.f32 0.03125, %v2748_v20  ;;  %v2750_v52 = vpop.f32.mrb[195].mxu1  ;;  %5015 = vmatmul.mubr.msk.f32.gmra.mrb[186].mxu0 %vm1273_vm1, %v8205_v2 }
 0x468   : > { %v8211_v24 = vpop.eup %5671  ;;  %v2839_v41 = vadd.f32 1e-05, %v2807_v58 }
 0x469   : > { %v2753_v18 = vpop.f32.mrb[196].mxu1  ;;  %5016 = vmatprep.mubr.msk.f32.mxu0 %vm1273_vm1, %v8211_v24 }
 0x46a   : > { %5677 = vrsqrt.f32 %v2839_v41  ;;  %v2808_v4 = vmul.f32 0.03125, %v2753_v18  ;;  %v2755_v55 = vpop.f32.mrb[197].mxu1  ;;  %5017 = vmatmul.mubr.msk.f32.gmra.mrb[188].mxu0 %vm1273_vm1, %v8211_v24 }
 0x46c   : > { %v8217_v10 = vpop.eup %5673  ;;  %v2840_v36 = vadd.f32 1e-05, %v2808_v4 }
 0x46d   : > { %v2758_v20 = vpop.f32.mrb[198].mxu1  ;;  %5018 = vmatprep.mubr.msk.f32.mxu0 %vm1273_vm1, %v8217_v10 }
 0x46e   : > { %5679 = vrsqrt.f32 %v2840_v36  ;;  %v2809_v52 = vmul.f32 0.03125, %v2758_v20  ;;  %v2760_v58 = vpop.f32.mrb[199].mxu1  ;;  %5019 = vmatmul.mubr.msk.f32.gmra.mrb[190].mxu0 %vm1273_vm1, %v8217_v10 }
 0x470   : > { %v8223_v61 = vpop.eup %5675  ;;  %v2841_v41 = vadd.f32 1e-05, %v2809_v52 }
 0x471   : > { %v2763_v18 = vpop.f32.mrb[200].mxu1  ;;  %5020 = vmatprep.mubr.msk.f32.mxu0 %vm1273_vm1, %v8223_v61 }
 0x472   : > { %5681 = vrsqrt.f32 %v2841_v41  ;;  %v2810_v55 = vmul.f32 0.03125, %v2763_v18  ;;  %v2765_v4 = vpop.f32.mrb[201].mxu1  ;;  %5021 = vmatmul.mubr.msk.f32.gmra.mrb[192].mxu0 %vm1273_vm1, %v8223_v61 }
 0x474   : > { %v8229_v49 = vpop.eup %5677  ;;  %v2842_v36 = vadd.f32 1e-05, %v2810_v55 }
 0x475   : > { %v2768_v20 = vpop.f32.mrb[202].mxu1  ;;  %5022 = vmatprep.mubr.msk.f32.mxu0 %vm1273_vm1, %v8229_v49 }
 0x476   : > { %5683 = vrsqrt.f32 %v2842_v36  ;;  %v2811_v58 = vmul.f32 0.03125, %v2768_v20  ;;  %v2770_v52 = vpop.f32.mrb[203].mxu1  ;;  %5023 = vmatmul.mubr.msk.f32.gmra.mrb[194].mxu0 %vm1273_vm1, %v8229_v49 }
 0x478   : > { %v8235_v62 = vpop.eup %5679  ;;  %v2843_v41 = vadd.f32 1e-05, %v2811_v58 }
 0x479   : > { %v2773_v18 = vpop.f32.mrb[204].mxu1  ;;  %5024 = vmatprep.mubr.msk.f32.mxu0 %vm1273_vm1, %v8235_v62 }
 0x47a   : > { %5685 = vrsqrt.f32 %v2843_v41  ;;  %v2812_v4 = vmul.f32 0.03125, %v2773_v18  ;;  %v2775_v55 = vpop.f32.mrb[205].mxu1  ;;  %5025 = vmatmul.mubr.msk.f32.gmra.mrb[196].mxu0 %vm1273_vm1, %v8235_v62 }
 0x47c   : > { %v8241_v19 = vpop.eup %5681  ;;  %v2844_v36 = vadd.f32 1e-05, %v2812_v4 }
 0x47d   : > { %v2778_v20 = vpop.f32.mrb[206].mxu1  ;;  %5026 = vmatprep.mubr.msk.f32.mxu0 %vm1273_vm1, %v8241_v19 }
 0x47e   : > { %5687 = vrsqrt.f32 %v2844_v36  ;;  %v2813_v52 = vmul.f32 0.03125, %v2778_v20  ;;  %v2780_v58 = vpop.f32.mrb[207].mxu1  ;;  %5027 = vmatmul.mubr.msk.f32.gmra.mrb[198].mxu0 %vm1273_vm1, %v8241_v19 }
 0x480   : > { %v8247_v39 = vpop.eup %5683  ;;  %v2845_v41 = vadd.f32 1e-05, %v2813_v52  ;;  %v9303_v52 = vld [vmem:[#allocation102_spill] sm:$0xff] }
 0x481   : > { %5028 = vmatprep.mubr.msk.f32.mxu0 %vm1273_vm1, %v8247_v39 }
 0x482   : > { %5689 = vrsqrt.f32 %v2845_v41  ;;  %5029 = vmatmul.mubr.msk.f32.gmra.mrb[200].mxu0 %vm1273_vm1, %v8247_v39 }
 0x484   : > { %v8253_v18 = vpop.eup %5685 }
 0x485   : > { %5030 = vmatprep.mubr.msk.f32.mxu0 %vm1273_vm1, %v8253_v18 }
 0x486   : > { %5031 = vmatmul.mubr.msk.f32.gmra.mrb[202].mxu0 %vm1273_vm1, %v8253_v18 }
 0x488   : > { %v8259_v4 = vpop.eup %5687 }
 0x489   : > { %5032 = vmatprep.mubr.msk.f32.mxu0 %vm1273_vm1, %v8259_v4 }
 0x48a   : > { %5033 = vmatmul.mubr.msk.f32.gmra.mrb[204].mxu0 %vm1273_vm1, %v8259_v4 }
 0x48c   : > { %v8265_v55 = vpop.eup %5689 }
 0x48d   : > { %5034 = vmatprep.mubr.msk.f32.mxu0 %vm1273_vm1, %v8265_v55 }
 0x48e   : > { %5035 = vmatmul.mubr.msk.f32.gmra.mrb[206].mxu0 %vm1273_vm1, %v8265_v55 }
 0x48f   : > { %5068 = vmatprep.mubr.msk.f32.mxu0 %vm1273_vm1, %v7971_v9 }
 0x492   : > { %5069 = vmatmul.mubr.msk.f32.vlgmr.msra.gmra.mrb[208].mxu0 %vm1273_vm1, %v7971_v9  ;;  %v3874_v9 = vlaneseq }
 0x493   : > { %5070 = vmatprep.mubr.msk.f32.mxu0 %vm1273_vm1, %v7979_v51 }
 0x496   : > { %5071 = vmatmul.mubr.msk.f32.gmra.mrb[210].mxu0 %vm1273_vm1, %v7979_v51  ;;  %v8349_v51 = vshrl.u32 %v3874_v9, 7 }
 0x497   : > { %5072 = vmatprep.mubr.msk.f32.mxu0 %vm1273_vm1, %v7999_v5 }
 0x49a   : > { %5073 = vmatmul.mubr.msk.f32.gmra.mrb[212].mxu0 %vm1273_vm1, %v7999_v5  ;;  %v3876_v5 = vsub.s32 0, %v8349_v51 }
 0x49b   : > { %5074 = vmatprep.mubr.msk.f32.mxu0 %vm1273_vm1, %v8007_v56 }
 0x49e   : > { %5075 = vmatmul.mubr.msk.f32.gmra.mrb[214].mxu0 %vm1273_vm1, %v8007_v56  ;;  %v8360_v56 = vld [vmem:[%s8873_s5] sm:$0xf] }
 0x49f   : > { %5076 = vmatprep.mubr.msk.f32.mxu0 %vm1273_vm1, %v8027_v0 }
 0x4a2   : > { %5077 = vmatmul.mubr.msk.f32.gmra.mrb[216].mxu0 %vm1273_vm1, %v8027_v0  ;;  %v3880_v0 = vsub.s32 1, %v8349_v51 }
 0x4a3   : > { %5078 = vmatprep.mubr.msk.f32.mxu0 %vm1273_vm1, %v8035_v31 }
 0x4a6   : > { %5079 = vmatmul.mubr.msk.f32.gmra.mrb[218].mxu0 %vm1273_vm1, %v8035_v31  ;;  %v8370_v31 = vrot.slane %v8360_v56, %v3876_v5 }
 0x4a7   : > { %5080 = vmatprep.mubr.msk.f32.mxu0 %vm1273_vm1, %v8055_v33 }
 0x4aa   : > { %5081 = vmatmul.mubr.msk.f32.gmra.mrb[220].mxu0 %vm1273_vm1, %v8055_v33 }
 0x4ab   : > { %5082 = vmatprep.mubr.msk.f32.mxu0 %vm1273_vm1, %v8063_v3 }
 0x4ae   : > { %5083 = vmatmul.mubr.msk.f32.gmra.mrb[222].mxu0 %vm1273_vm1, %v8063_v3  ;;  %v8373_v3 = vrot.slane %v8360_v56, %v3880_v0 }
 0x4af   : > { %5084 = vmatprep.mubr.msk.f32.mxu0 %vm1273_vm1, %v8083_v22 }
 0x4b2   : > { %5085 = vmatmul.mubr.msk.f32.gmra.mrb[224].mxu0 %vm1273_vm1, %v8083_v22  ;;  %v9299_v22 = vld [vmem:[#allocation98_spill] sm:$0xff] }
 0x4b3   : > { %5086 = vmatprep.mubr.msk.f32.mxu0 %vm1273_vm1, %v8091_v29 }
 0x4b6   : > { %5087 = vmatmul.mubr.msk.f32.gmra.mrb[226].mxu0 %vm1273_vm1, %v8091_v29 }
 0x4b7   : > { %5088 = vmatprep.mubr.msk.f32.mxu0 %vm1273_vm1, %v8111_v14 }
 0x4ba   : > { %5089 = vmatmul.mubr.msk.f32.gmra.mrb[228].mxu0 %vm1273_vm1, %v8111_v14 }
 0x4bb   : > { %5090 = vmatprep.mubr.msk.f32.mxu0 %vm1273_vm1, %v8119_v21 }
 0x4be   : > { %5091 = vmatmul.mubr.msk.f32.gmra.mrb[230].mxu0 %vm1273_vm1, %v8119_v21  ;;  %v9300_v21 = vld [vmem:[#allocation99_spill] sm:$0xff] }
 0x4bf   : > { %5092 = vmatprep.mubr.msk.f32.mxu0 %vm1273_vm1, %v8139_v30 }
 0x4c2   : > { %5093 = vmatmul.mubr.msk.f32.gmra.mrb[232].mxu0 %vm1273_vm1, %v8139_v30 }
 0x4c3   : > { %5094 = vmatprep.mubr.msk.f32.mxu0 %vm1273_vm1, %v8147_v46 }
 0x4c6   : > { %5095 = vmatmul.mubr.msk.f32.gmra.mrb[234].mxu0 %vm1273_vm1, %v8147_v46 }
 0x4c7   : > { %5096 = vmatprep.mubr.msk.f32.mxu0 %vm1273_vm1, %v8161_v26 }
 0x4ca   : > { %5097 = vmatmul.mubr.msk.f32.gmra.mrb[236].mxu0 %vm1273_vm1, %v8161_v26 }
 0x4cb   : > { %5098 = vmatprep.mubr.msk.f32.mxu0 %vm1273_vm1, %v8169_v50 }
 0x4ce   : > { %5099 = vmatmul.mubr.msk.f32.gmra.mrb[238].mxu0 %vm1273_vm1, %v8169_v50  ;;  %v9301_v50 = vld [vmem:[#allocation100_spill] sm:$0xff] }
 0x4cf   : > { %5100 = vmatprep.mubr.msk.f32.mxu0 %vm1273_vm1, %v8175_v60 }
 0x4d2   : > { %5101 = vmatmul.mubr.msk.f32.gmra.mrb[240].mxu0 %vm1273_vm1, %v8175_v60 }
 0x4d3   : > { %5102 = vmatprep.mubr.msk.f32.mxu0 %vm1273_vm1, %v8181_v42 }
 0x4d6   : > { %5103 = vmatmul.mubr.msk.f32.gmra.mrb[242].mxu0 %vm1273_vm1, %v8181_v42  ;;  %v9302_v42 = vld [vmem:[#allocation101_spill] sm:$0xff] }
 0x4d7   : > { %5104 = vmatprep.mubr.msk.f32.mxu0 %vm1273_vm1, %v8187_v38 }
 0x4da   : > { %5105 = vmatmul.mubr.msk.f32.gmra.mrb[244].mxu0 %vm1273_vm1, %v8187_v38 }
 0x4db   : > { %5106 = vmatprep.mubr.msk.f32.mxu0 %vm1273_vm1, %v8193_v16 }
 0x4de   : > { %5107 = vmatmul.mubr.msk.f32.gmra.mrb[246].mxu0 %vm1273_vm1, %v8193_v16 }
 0x4df   : > { %5108 = vmatprep.mubr.msk.f32.mxu0 %vm1273_vm1, %v8199_v32 }
 0x4e2   : > { %5109 = vmatmul.mubr.msk.f32.gmra.mrb[248].mxu0 %vm1273_vm1, %v8199_v32 }
 0x4e3   : > { %5110 = vmatprep.mubr.msk.f32.mxu0 %vm1273_vm1, %v8205_v2 }
 0x4e5   : > { %v3296_v33 = vpop.f32.mrb[144].mxu0 }
 0x4e6   : > { %v3744_v29 = vmul.f32 %v3296_v33, %v9299_v22  ;;  %v3298_v14 = vpop.f32.mrb[145].mxu0  ;;  %5111 = vmatmul.mubr.msk.f32.gmra.mrb[250].mxu0 %vm1273_vm1, %v8205_v2  ;;  %v9305_v22 = vld [vmem:[#allocation104_spill] sm:$0xff] }
 0x4e7   : > { %v3745_v32 = vmul.f32 %v3298_v14, %v9300_v21  ;;  %5112 = vmatprep.mubr.msk.f32.mxu0 %vm1273_vm1, %v8211_v24 }
 0x4e8   : > { %v3894_v30 = vadd.f32 %v8370_v31, %v3744_v29 }
 0x4e9   : > { %v3895_v46 = vadd.f32 %v8373_v3, %v3745_v32  ;;  %v3302_v26 = vpop.f32.mrb[146].mxu0 }
 0x4ea   : > { %4022 = vst [vmem:[%s8383_s28] sm:$0xff] %v3894_v30  ;;  %v3748_v60 = vmul.f32 %v3302_v26, %v9301_v50  ;;  %v3304_v2 = vpop.f32.mrb[147].mxu0  ;;  %5113 = vmatmul.mubr.msk.f32.gmra.mrb[252].mxu0 %vm1273_vm1, %v8211_v24  ;;  %v9304_v24 = vld [vmem:[#allocation103_spill] sm:$0xff]  ;;  %v9307_v26 = vld [vmem:[#allocation106_spill] sm:$0xff] }
 0x4eb   : > { %4609 = vst [vmem:[%s8383_s28 + $0x10] sm:$0xff] %v3895_v46  ;;  %v3749_v38 = vmul.f32 %v3304_v2, %v9302_v42  ;;  %5114 = vmatprep.mubr.msk.f32.mxu0 %vm1273_vm1, %v8217_v10 }
 0x4ec   : > { %v3898_v16 = vadd.f32 %v8370_v31, %v3748_v60 }
 0x4ed   : > { %v3899_v36 = vadd.f32 %v8373_v3, %v3749_v38  ;;  %v3308_v20 = vpop.f32.mrb[148].mxu0 }
 0x4ee   : > { %4023 = vst [vmem:[%s8383_s28 + $0x8] sm:$0xff] %v3898_v16  ;;  %v3752_v58 = vmul.f32 %v3308_v20, %v9303_v52  ;;  %v3310_v41 = vpop.f32.mrb[149].mxu0  ;;  %5115 = vmatmul.mubr.msk.f32.gmra.mrb[254].mxu0 %vm1273_vm1, %v8217_v10  ;;  %v9306_v10 = vld [vmem:[#allocation105_spill] sm:$0xff] }
 0x4ef   : > { %4610 = vst [vmem:[%s8383_s28 + $0x18] sm:$0xff] %v3899_v36  ;;  %v3753_v9 = vmul.f32 %v3310_v41, %v9304_v24  ;;  %5116 = vmatprep.mubr.msk.f32.mxu0 %vm1273_vm1, %v8223_v61  ;;  %v9309_v36 = vld [vmem:[#allocation108_spill] sm:$0xff] }
 0x4f0   : > { %v3902_v5 = vadd.f32 %v8370_v31, %v3752_v58 }
 0x4f1   : > { %v3903_v0 = vadd.f32 %v8373_v3, %v3753_v9  ;;  %v3314_v33 = vpop.f32.mrb[150].mxu0 }
 0x4f2   : > { %4024 = vst [vmem:[%s8383_s28 + $0x40] sm:$0xff] %v3902_v5  ;;  %v3756_v29 = vmul.f32 %v3314_v33, %v9305_v22  ;;  %v3316_v14 = vpop.f32.mrb[151].mxu0  ;;  %5117 = vmatmul.mubr.msk.f32.gmra.mrb[0].mxu0 %vm1273_vm1, %v8223_v61  ;;  %v9308_v61 = vld [vmem:[#allocation107_spill] sm:$0xff]  ;;  %v9311_v5 = vld [vmem:[#allocation110_spill] sm:$0xff] }
 0x4f3   : > { %4611 = vst [vmem:[%s8383_s28 + $0x50] sm:$0xff] %v3903_v0  ;;  %v3757_v21 = vmul.f32 %v3316_v14, %v9306_v10  ;;  %5118 = vmatprep.mubr.msk.f32.mxu0 %vm1273_vm1, %v8229_v49 }
 0x4f4   : > { %v3906_v32 = vadd.f32 %v8370_v31, %v3756_v29 }
 0x4f5   : > { %v3907_v30 = vadd.f32 %v8373_v3, %v3757_v21  ;;  %v3320_v46 = vpop.f32.mrb[152].mxu0  ;;  %v9313_v21 = vld [vmem:[#allocation112_spill] sm:$0xff] }
 0x4f6   : > { %4025 = vst [vmem:[%s8383_s28 + $0x48] sm:$0xff] %v3906_v32  ;;  %v3760_v50 = vmul.f32 %v3320_v46, %v9307_v26  ;;  %v3322_v60 = vpop.f32.mrb[153].mxu0  ;;  %5119 = vmatmul.mubr.msk.f32.gmra.mrb[2].mxu0 %vm1273_vm1, %v8229_v49  ;;  %v9310_v49 = vld [vmem:[#allocation109_spill] sm:$0xff] }
 0x4f7   : > { %4612 = vst [vmem:[%s8383_s28 + $0x58] sm:$0xff] %v3907_v30  ;;  %v3761_v2 = vmul.f32 %v3322_v60, %v9308_v61  ;;  %5120 = vmatprep.mubr.msk.f32.mxu0 %vm1273_vm1, %v8235_v62  ;;  %v9315_v61 = vld [vmem:[#allocation15_spill] sm:$0xff] }
 0x4f8   : > { %v3910_v42 = vadd.f32 %v8370_v31, %v3760_v50 }
 0x4f9   : > { %v3911_v38 = vadd.f32 %v8373_v3, %v3761_v2  ;;  %v3326_v16 = vpop.f32.mrb[154].mxu0 }
 0x4fa   : > { %4026 = vst [vmem:[%s8383_s28 + $0x80] sm:$0xff] %v3910_v42  ;;  %v3764_v20 = vmul.f32 %v3326_v16, %v9309_v36  ;;  %v3328_v52 = vpop.f32.mrb[155].mxu0  ;;  %5121 = vmatmul.mubr.msk.f32.gmra.mrb[4].mxu0 %vm1273_vm1, %v8235_v62  ;;  %v9312_v62 = vld [vmem:[#allocation111_spill] sm:$0xff] }
 0x4fb   : > { %4613 = vst [vmem:[%s8383_s28 + $0x90] sm:$0xff] %v3911_v38  ;;  %v3765_v58 = vmul.f32 %v3328_v52, %v9310_v49  ;;  %5122 = vmatprep.mubr.msk.f32.mxu0 %vm1273_vm1, %v8241_v19  ;;  %v9317_v52 = vld [vmem:[#allocation17_spill] sm:$0xff] }
 0x4fc   : > { %v3914_v41 = vadd.f32 %v8370_v31, %v3764_v20 }
 0x4fd   : > { %v3915_v24 = vadd.f32 %v8373_v3, %v3765_v58  ;;  %v3332_v9 = vpop.f32.mrb[156].mxu0 }
 0x4fe   : > { %4027 = vst [vmem:[%s8383_s28 + $0x88] sm:$0xff] %v3914_v41  ;;  %v3768_v0 = vmul.f32 %v3332_v9, %v9311_v5  ;;  %v3334_v33 = vpop.f32.mrb[157].mxu0  ;;  %5123 = vmatmul.mubr.msk.f32.gmra.mrb[6].mxu0 %vm1273_vm1, %v8241_v19  ;;  %v9314_v19 = vld [vmem:[#allocation113_spill] sm:$0xff] }
 0x4ff   : > { %4614 = vst [vmem:[%s8383_s28 + $0x98] sm:$0xff] %v3915_v24  ;;  %v3769_v22 = vmul.f32 %v3334_v33, %v9312_v62  ;;  %5124 = vmatprep.mubr.msk.f32.mxu0 %vm1273_vm1, %v8247_v39 }
 0x500   : > { %v3918_v29 = vadd.f32 %v8370_v31, %v3768_v0  ;;  %v9319_v0 = vld [vmem:[#allocation14_spill] sm:$0xff] }
 0x501   : > { %v3919_v14 = vadd.f32 %v8373_v3, %v3769_v22  ;;  %v3338_v10 = vpop.f32.mrb[158].mxu0 }
 0x502   : > { %4028 = vst [vmem:[%s8383_s28 + $0xc0] sm:$0xff] %v3918_v29  ;;  %v3772_v32 = vmul.f32 %v3338_v10, %v9313_v21  ;;  %v3340_v30 = vpop.f32.mrb[159].mxu0  ;;  %5125 = vmatmul.mubr.msk.f32.gmra.mrb[8].mxu0 %vm1273_vm1, %v8247_v39  ;;  %v9316_v39 = vld [vmem:[#allocation63_spill] sm:$0xff]  ;;  %v9321_v21 = vld [vmem:[#allocation65_spill] sm:$0xff] }
 0x503   : > { %4615 = vst [vmem:[%s8383_s28 + $0xd0] sm:$0xff] %v3919_v14  ;;  %v3773_v46 = vmul.f32 %v3340_v30, %v9314_v19  ;;  %5126 = vmatprep.mubr.msk.f32.mxu0 %vm1273_vm1, %v8253_v18  ;;  %v9322_v19 = vld [vmem:[#allocation21_spill] sm:$0xff] }
 0x504   : > { %v3922_v26 = vadd.f32 %v8370_v31, %v3772_v32 }
 0x505   : > { %v3923_v50 = vadd.f32 %v8373_v3, %v3773_v46  ;;  %v3344_v60 = vpop.f32.mrb[160].mxu0 }
 0x506   : > { %4029 = vst [vmem:[%s8383_s28 + $0xc8] sm:$0xff] %v3922_v26  ;;  %v3776_v2 = vmul.f32 %v3344_v60, %v9315_v61  ;;  %v3346_v42 = vpop.f32.mrb[161].mxu0  ;;  %5127 = vmatmul.mubr.msk.f32.gmra.mrb[10].mxu0 %vm1273_vm1, %v8253_v18  ;;  %v9318_v18 = vld [vmem:[#allocation64_spill] sm:$0xff]  ;;  %v9323_v60 = vld [vmem:[#allocation6_spill] sm:$0xff] }
 0x507   : > { %4616 = vst [vmem:[%s8383_s28 + $0xd8] sm:$0xff] %v3923_v50  ;;  %v3777_v38 = vmul.f32 %v3346_v42, %v9316_v39  ;;  %5128 = vmatprep.mubr.msk.f32.mxu0 %vm1273_vm1, %v8259_v4  ;;  %v9324_v42 = vld [vmem:[#allocation67_spill] sm:$0xff] }
 0x508   : > { %v3926_v16 = vadd.f32 %v8370_v31, %v3776_v2 }
 0x509   : > { %v3927_v36 = vadd.f32 %v8373_v3, %v3777_v38  ;;  %v3350_v20 = vpop.f32.mrb[162].mxu0 }
 0x50a   : > { %4030 = vst [vmem:[%s8383_s28 + $0x100] sm:$0xff] %v3926_v16  ;;  %v3780_v49 = vmul.f32 %v3350_v20, %v9317_v52  ;;  %v3352_v58 = vpop.f32.mrb[163].mxu0  ;;  %5129 = vmatmul.mubr.msk.f32.gmra.mrb[12].mxu0 %vm1273_vm1, %v8259_v4  ;;  %v9320_v4 = vld [vmem:[#allocation19_spill] sm:$0xff]  ;;  %v9325_v20 = vld [vmem:[#allocation68_spill] sm:$0xff] }
 0x50b   : > { %4617 = vst [vmem:[%s8383_s28 + $0x110] sm:$0xff] %v3927_v36  ;;  %v3781_v41 = vmul.f32 %v3352_v58, %v9318_v18  ;;  %5130 = vmatprep.mubr.msk.f32.mxu0 %vm1273_vm1, %v8265_v55  ;;  %v9326_v58 = vld [vmem:[#allocation27_spill] sm:$0xff] }
 0x50c   : > { %v3930_v24 = vadd.f32 %v8370_v31, %v3780_v49 }
 0x50d   : > { %v3931_v9 = vadd.f32 %v8373_v3, %v3781_v41  ;;  %v3356_v5 = vpop.f32.mrb[164].mxu0 }
 0x50e   : > { %4031 = vst [vmem:[%s8383_s28 + $0x108] sm:$0xff] %v3930_v24  ;;  %v3784_v33 = vmul.f32 %v3356_v5, %v9319_v0  ;;  %v3358_v62 = vpop.f32.mrb[165].mxu0  ;;  %5131 = vmatmul.mubr.msk.f32.gmra.mrb[14].mxu0 %vm1273_vm1, %v8265_v55  ;;  %v9327_v5 = vld [vmem:[#allocation29_spill] sm:$0xff] }
 0x50f   : > { %4618 = vst [vmem:[%s8383_s28 + $0x118] sm:$0xff] %v3931_v9  ;;  %v3785_v22 = vmul.f32 %v3358_v62, %v9320_v4  ;;  %v9328_v62 = vld [vmem:[#allocation31_spill] sm:$0xff] }
 0x510   : > { %v3934_v29 = vadd.f32 %v8370_v31, %v3784_v33 }
 0x511   : > { %v3935_v14 = vadd.f32 %v8373_v3, %v3785_v22  ;;  %v3362_v10 = vpop.f32.mrb[166].mxu0 }
 0x512   : > { %4032 = vst [vmem:[%s8383_s28 + $0x140] sm:$0xff] %v3934_v29  ;;  %v3788_v32 = vmul.f32 %v3362_v10, %v9321_v21  ;;  %v3364_v30 = vpop.f32.mrb[167].mxu0  ;;  %v9329_v10 = vld [vmem:[#allocation33_spill] sm:$0xff] }
 0x513   : > { %4619 = vst [vmem:[%s8383_s28 + $0x150] sm:$0xff] %v3935_v14  ;;  %v3789_v46 = vmul.f32 %v3364_v30, %v9322_v19  ;;  %v9330_v30 = vld [vmem:[#allocation9_spill] sm:$0xff] }
 0x514   : > { %v3938_v55 = vadd.f32 %v8370_v31, %v3788_v32 }
 0x515   : > { %v3939_v26 = vadd.f32 %v8373_v3, %v3789_v46  ;;  %v3368_v50 = vpop.f32.mrb[168].mxu0 }
 0x516   : > { %4033 = vst [vmem:[%s8383_s28 + $0x148] sm:$0xff] %v3938_v55  ;;  %v3792_v61 = vmul.f32 %v3368_v50, %v9323_v60  ;;  %v3370_v2 = vpop.f32.mrb[169].mxu0  ;;  %v9331_v50 = vld [vmem:[#allocation72_spill] sm:$0xff] }
 0x517   : > { %4620 = vst [vmem:[%s8383_s28 + $0x158] sm:$0xff] %v3939_v26  ;;  %v3793_v39 = vmul.f32 %v3370_v2, %v9324_v42  ;;  %v9332_v2 = vld [vmem:[#allocation73_spill] sm:$0xff] }
 0x518   : > { %v3942_v38 = vadd.f32 %v8370_v31, %v3792_v61 }
 0x519   : > { %v3943_v16 = vadd.f32 %v8373_v3, %v3793_v39  ;;  %v3374_v36 = vpop.f32.mrb[170].mxu0 }
 0x51a   : > { %4034 = vst [vmem:[%s8383_s28 + $0x180] sm:$0xff] %v3942_v38  ;;  %v3796_v52 = vmul.f32 %v3374_v36, %v9325_v20  ;;  %v3376_v49 = vpop.f32.mrb[171].mxu0  ;;  %v9333_v36 = vld [vmem:[#allocation39_spill] sm:$0xff] }
 0x51b   : > { %4621 = vst [vmem:[%s8383_s28 + $0x190] sm:$0xff] %v3943_v16  ;;  %v3797_v18 = vmul.f32 %v3376_v49, %v9326_v58  ;;  %v9334_v49 = vld [vmem:[#allocation41_spill] sm:$0xff] }
 0x51c   : > { %v3946_v41 = vadd.f32 %v8370_v31, %v3796_v52 }
 0x51d   : > { %v3947_v24 = vadd.f32 %v8373_v3, %v3797_v18  ;;  %v3380_v9 = vpop.f32.mrb[172].mxu0 }
 0x51e   : > { %4035 = vst [vmem:[%s8383_s28 + $0x188] sm:$0xff] %v3946_v41  ;;  %v3800_v0 = vmul.f32 %v3380_v9, %v9327_v5  ;;  %v3382_v33 = vpop.f32.mrb[173].mxu0  ;;  %v9335_v9 = vld [vmem:[#allocation11_spill] sm:$0xff] }
 0x51f   : > { %4622 = vst [vmem:[%s8383_s28 + $0x198] sm:$0xff] %v3947_v24  ;;  %v3801_v4 = vmul.f32 %v3382_v33, %v9328_v62  ;;  %v9336_v33 = vld [vmem:[#allocation76_spill] sm:$0xff] }
 0x520   : > { %v3950_v22 = vadd.f32 %v8370_v31, %v3800_v0 }
 0x521   : > { %v3951_v29 = vadd.f32 %v8373_v3, %v3801_v4  ;;  %v3386_v14 = vpop.f32.mrb[174].mxu0 }
 0x522   : > { %4036 = vst [vmem:[%s8383_s28 + $0x1c0] sm:$0xff] %v3950_v22  ;;  %v3804_v21 = vmul.f32 %v3386_v14, %v9329_v10  ;;  %v3388_v32 = vpop.f32.mrb[175].mxu0  ;;  %v9337_v14 = vld [vmem:[#allocation77_spill] sm:$0xff] }
 0x523   : > { %4623 = vst [vmem:[%s8383_s28 + $0x1d0] sm:$0xff] %v3951_v29  ;;  %v3805_v19 = vmul.f32 %v3388_v32, %v9330_v30  ;;  %v9338_v32 = vld [vmem:[#allocation47_spill] sm:$0xff] }
 0x524   : > { %v3954_v46 = vadd.f32 %v8370_v31, %v3804_v21 }
 0x525   : > { %v3955_v55 = vadd.f32 %v8373_v3, %v3805_v19  ;;  %v3392_v26 = vpop.f32.mrb[176].mxu0 }
 0x526   : > { %4037 = vst [vmem:[%s8383_s28 + $0x1c8] sm:$0xff] %v3954_v46  ;;  %v3808_v60 = vmul.f32 %v3392_v26, %v9331_v50  ;;  %v3394_v61 = vpop.f32.mrb[177].mxu0  ;;  %v9339_v26 = vld [vmem:[#allocation48_spill] sm:$0xff] }
 0x527   : > { %4624 = vst [vmem:[%s8383_s28 + $0x1d8] sm:$0xff] %v3955_v55  ;;  %v3809_v42 = vmul.f32 %v3394_v61, %v9332_v2  ;;  %v9340_v61 = vld [vmem:[#allocation13_spill] sm:$0xff] }
 0x528   : > { %v3958_v39 = vadd.f32 %v8370_v31, %v3808_v60 }
 0x529   : > { %v3959_v38 = vadd.f32 %v8373_v3, %v3809_v42  ;;  %v3398_v16 = vpop.f32.mrb[178].mxu0 }
 0x52a   : > { %4038 = vst [vmem:[%s8383_s28 + $0x200] sm:$0xff] %v3958_v39  ;;  %v3812_v20 = vmul.f32 %v3398_v16, %v9333_v36  ;;  %v3400_v52 = vpop.f32.mrb[179].mxu0  ;;  %v9341_v16 = vld [vmem:[#allocation80_spill] sm:$0xff] }
 0x52b   : > { %4625 = vst [vmem:[%s8383_s28 + $0x210] sm:$0xff] %v3959_v38  ;;  %v3813_v58 = vmul.f32 %v3400_v52, %v9334_v49  ;;  %v9342_v52 = vld [vmem:[#allocation81_spill] sm:$0xff] }
 0x52c   : > { %v3962_v18 = vadd.f32 %v8370_v31, %v3812_v20 }
 0x52d   : > { %v3963_v41 = vadd.f32 %v8373_v3, %v3813_v58  ;;  %v3404_v24 = vpop.f32.mrb[180].mxu0 }
 0x52e   : > { %4039 = vst [vmem:[%s8383_s28 + $0x208] sm:$0xff] %v3962_v18  ;;  %v3816_v5 = vmul.f32 %v3404_v24, %v9335_v9  ;;  %v3406_v0 = vpop.f32.mrb[181].mxu0  ;;  %v9343_v24 = vld [vmem:[#allocation82_spill] sm:$0xff] }
 0x52f   : > { %4626 = vst [vmem:[%s8383_s28 + $0x218] sm:$0xff] %v3963_v41  ;;  %v3817_v62 = vmul.f32 %v3406_v0, %v9336_v33  ;;  %v9344_v0 = vld [vmem:[#allocation83_spill] sm:$0xff] }
 0x530   : > { %v3966_v4 = vadd.f32 %v8370_v31, %v3816_v5 }
 0x531   : > { %v3967_v22 = vadd.f32 %v8373_v3, %v3817_v62  ;;  %v3410_v29 = vpop.f32.mrb[182].mxu0 }
 0x532   : > { %4040 = vst [vmem:[%s8383_s28 + $0x240] sm:$0xff] %v3966_v4  ;;  %v3820_v10 = vmul.f32 %v3410_v29, %v9337_v14  ;;  %v3412_v21 = vpop.f32.mrb[183].mxu0  ;;  %v9345_v29 = vld [vmem:[#allocation54_spill] sm:$0xff] }
 0x533   : > { %4627 = vst [vmem:[%s8383_s28 + $0x250] sm:$0xff] %v3967_v22  ;;  %v3821_v30 = vmul.f32 %v3412_v21, %v9338_v32  ;;  %v9346_v21 = vld [vmem:[#allocation55_spill] sm:$0xff] }
 0x534   : > { %v3970_v19 = vadd.f32 %v8370_v31, %v3820_v10 }
 0x535   : > { %v3971_v46 = vadd.f32 %v8373_v3, %v3821_v30  ;;  %v3416_v55 = vpop.f32.mrb[184].mxu0 }
 0x536   : > { %4041 = vst [vmem:[%s8383_s28 + $0x248] sm:$0xff] %v3970_v19  ;;  %v3824_v50 = vmul.f32 %v3416_v55, %v9339_v26  ;;  %v3418_v60 = vpop.f32.mrb[185].mxu0  ;;  %v9347_v55 = vld [vmem:[#allocation56_spill] sm:$0xff] }
 0x537   : > { %4628 = vst [vmem:[%s8383_s28 + $0x258] sm:$0xff] %v3971_v46  ;;  %v3825_v2 = vmul.f32 %v3418_v60, %v9340_v61  ;;  %v9348_v60 = vld [vmem:[#allocation57_spill] sm:$0xff] }
 0x538   : > { %v3974_v42 = vadd.f32 %v8370_v31, %v3824_v50 }
 0x539   : > { %v3975_v39 = vadd.f32 %v8373_v3, %v3825_v2  ;;  %v3422_v38 = vpop.f32.mrb[186].mxu0 }
 0x53a   : > { %4042 = vst [vmem:[%s8383_s28 + $0x280] sm:$0xff] %v3974_v42  ;;  %v3828_v36 = vmul.f32 %v3422_v38, %v9341_v16  ;;  %v3424_v20 = vpop.f32.mrb[187].mxu0  ;;  %v9349_v38 = vld [vmem:[#allocation58_spill] sm:$0xff] }
 0x53b   : > { %4629 = vst [vmem:[%s8383_s28 + $0x290] sm:$0xff] %v3975_v39  ;;  %v3829_v49 = vmul.f32 %v3424_v20, %v9342_v52  ;;  %v9350_v20 = vld [vmem:[#allocation59_spill] sm:$0xff] }
 0x53c   : > { %v3978_v58 = vadd.f32 %v8370_v31, %v3828_v36 }
 0x53d   : > { %v3979_v18 = vadd.f32 %v8373_v3, %v3829_v49  ;;  %v3428_v41 = vpop.f32.mrb[188].mxu0 }
 0x53e   : > { %4043 = vst [vmem:[%s8383_s28 + $0x288] sm:$0xff] %v3978_v58  ;;  %v3832_v9 = vmul.f32 %v3428_v41, %v9343_v24  ;;  %v3430_v5 = vpop.f32.mrb[189].mxu0  ;;  %v9351_v41 = vld [vmem:[#allocation60_spill] sm:$0xff] }
 0x53f   : > { %4630 = vst [vmem:[%s8383_s28 + $0x298] sm:$0xff] %v3979_v18  ;;  %v3833_v33 = vmul.f32 %v3430_v5, %v9344_v0  ;;  %v9352_v5 = vld [vmem:[#allocation61_spill] sm:$0xff] }
 0x540   : > { %v3982_v62 = vadd.f32 %v8370_v31, %v3832_v9 }
 0x541   : > { %v3983_v4 = vadd.f32 %v8373_v3, %v3833_v33  ;;  %v3434_v22 = vpop.f32.mrb[190].mxu0 }
 0x542   : > { %4044 = vst [vmem:[%s8383_s28 + $0x2c0] sm:$0xff] %v3982_v62  ;;  %v3836_v14 = vmul.f32 %v3434_v22, %v9345_v29  ;;  %v3436_v10 = vpop.f32.mrb[191].mxu0  ;;  %v9353_v22 = vld [vmem:[#allocation91_spill] sm:$0xff] }
 0x543   : > { %4631 = vst [vmem:[%s8383_s28 + $0x2d0] sm:$0xff] %v3983_v4  ;;  %v3837_v32 = vmul.f32 %v3436_v10, %v9346_v21  ;;  %v9354_v10 = vld [vmem:[#allocation18_spill] sm:$0xff] }
 0x544   : > { %v3986_v30 = vadd.f32 %v8370_v31, %v3836_v14 }
 0x545   : > { %v3987_v19 = vadd.f32 %v8373_v3, %v3837_v32  ;;  %v3440_v46 = vpop.f32.mrb[192].mxu0 }
 0x546   : > { %4045 = vst [vmem:[%s8383_s28 + $0x2c8] sm:$0xff] %v3986_v30  ;;  %v3840_v26 = vmul.f32 %v3440_v46, %v9347_v55  ;;  %v3442_v50 = vpop.f32.mrb[193].mxu0  ;;  %v9355_v46 = vld [vmem:[#allocation22_spill] sm:$0xff] }
 0x547   : > { %4632 = vst [vmem:[%s8383_s28 + $0x2d8] sm:$0xff] %v3987_v19  ;;  %v3841_v61 = vmul.f32 %v3442_v50, %v9348_v60  ;;  %v9356_v50 = vld [vmem:[#allocation24_spill] sm:$0xff] }
 0x548   : > { %v3990_v2 = vadd.f32 %v8370_v31, %v3840_v26 }
 0x549   : > { %v3991_v42 = vadd.f32 %v8373_v3, %v3841_v61  ;;  %v3446_v39 = vpop.f32.mrb[194].mxu0 }
 0x54a   : > { %4046 = vst [vmem:[%s8383_s28 + $0x300] sm:$0xff] %v3990_v2  ;;  %v3844_v16 = vmul.f32 %v3446_v39, %v9349_v38  ;;  %v3448_v36 = vpop.f32.mrb[195].mxu0  ;;  %v9357_v39 = vld [vmem:[#allocation93_spill] sm:$0xff] }
 0x54b   : > { %4633 = vst [vmem:[%s8383_s28 + $0x310] sm:$0xff] %v3991_v42  ;;  %v3845_v52 = vmul.f32 %v3448_v36, %v9350_v20  ;;  %v9358_v36 = vld [vmem:[#allocation28_spill] sm:$0xff] }
 0x54c   : > { %v3994_v49 = vadd.f32 %v8370_v31, %v3844_v16 }
 0x54d   : > { %v3995_v58 = vadd.f32 %v8373_v3, %v3845_v52  ;;  %v3452_v18 = vpop.f32.mrb[196].mxu0 }
 0x54e   : > { %4047 = vst [vmem:[%s8383_s28 + $0x308] sm:$0xff] %v3994_v49  ;;  %v3848_v24 = vmul.f32 %v3452_v18, %v9351_v41  ;;  %v3454_v9 = vpop.f32.mrb[197].mxu0 }
 0x54f   : > { %4634 = vst [vmem:[%s8383_s28 + $0x318] sm:$0xff] %v3995_v58  ;;  %v3849_v0 = vmul.f32 %v3454_v9, %v9352_v5  ;;  %v3884_v5 = vsub.s32 2, %v8349_v51 }
 0x550   : > { %v3998_v33 = vadd.f32 %v8370_v31, %v3848_v24 }
 0x551   : > { %v3999_v62 = vadd.f32 %v8373_v3, %v3849_v0  ;;  %v3458_v4 = vpop.f32.mrb[198].mxu0 }
 0x552   : > { %4048 = vst [vmem:[%s8383_s28 + $0x340] sm:$0xff] %v3998_v33  ;;  %v3852_v29 = vmul.f32 %v3458_v4, %v9353_v22  ;;  %v3460_v14 = vpop.f32.mrb[199].mxu0 }
 0x553   : > { %4635 = vst [vmem:[%s8383_s28 + $0x350] sm:$0xff] %v3999_v62  ;;  %v3853_v21 = vmul.f32 %v3460_v14, %v9354_v10  ;;  %v3888_v62 = vsub.s32 3, %v8349_v51 }
 0x554   : > { %v4002_v32 = vadd.f32 %v8370_v31, %v3852_v29  ;;  %v8611_v29 = vrot.slane %v8360_v56, %v3884_v5 }
 0x555   : > { %v4003_v30 = vadd.f32 %v8373_v3, %v3853_v21  ;;  %v3464_v19 = vpop.f32.mrb[200].mxu0  ;;  %v8615_v21 = vrot.slane %v8360_v56, %v3888_v62 }
 0x556   : > { %4049 = vst [vmem:[%s8383_s28 + $0x348] sm:$0xff] %v4002_v32  ;;  %v3856_v55 = vmul.f32 %v3464_v19, %v9355_v46  ;;  %v3466_v26 = vpop.f32.mrb[201].mxu0 }
 0x557   : > { %4636 = vst [vmem:[%s8383_s28 + $0x358] sm:$0xff] %v4003_v30  ;;  %v3857_v60 = vmul.f32 %v3466_v26, %v9356_v50 }
 0x558   : > { %v4006_v61 = vadd.f32 %v8370_v31, %v3856_v55 }
 0x559   : > { %v4007_v2 = vadd.f32 %v8373_v3, %v3857_v60  ;;  %v3470_v42 = vpop.f32.mrb[202].mxu0 }
 0x55a   : > { %4050 = vst [vmem:[%s8383_s28 + $0x380] sm:$0xff] %v4006_v61  ;;  %v3860_v38 = vmul.f32 %v3470_v42, %v9357_v39  ;;  %v3472_v16 = vpop.f32.mrb[203].mxu0 }
 0x55b   : > { %4637 = vst [vmem:[%s8383_s28 + $0x390] sm:$0xff] %v4007_v2  ;;  %v3861_v20 = vmul.f32 %v3472_v16, %v9358_v36 }
 0x55c   : > { %v4010_v52 = vadd.f32 %v8370_v31, %v3860_v38 }
 0x55d   : > { %v4011_v49 = vadd.f32 %v8373_v3, %v3861_v20  ;;  %v3476_v58 = vpop.f32.mrb[204].mxu0 }
 0x55e   : > { %4051 = vst [vmem:[%s8383_s28 + $0x388] sm:$0xff] %v4010_v52  ;;  %v3864_v18 = vmul.f32 %v3476_v58, %v7686_v48  ;;  %v3478_v41 = vpop.f32.mrb[205].mxu0 }
 0x55f   : > { %4638 = vst [vmem:[%s8383_s28 + $0x398] sm:$0xff] %v4011_v49  ;;  %v3865_v24 = vmul.f32 %v3478_v41, %v7692_v45 }
 0x560   : > { %v4014_v9 = vadd.f32 %v8370_v31, %v3864_v18 }
 0x561   : > { %v4015_v0 = vadd.f32 %v8373_v3, %v3865_v24  ;;  %v3482_v33 = vpop.f32.mrb[206].mxu0 }
 0x562   : > { %4052 = vst [vmem:[%s8383_s28 + $0x3c0] sm:$0xff] %v4014_v9  ;;  %v3868_v4 = vmul.f32 %v3482_v33, %v7710_v35  ;;  %v3484_v22 = vpop.f32.mrb[207].mxu0 }
 0x563   : > { %4639 = vst [vmem:[%s8383_s28 + $0x3d0] sm:$0xff] %v4015_v0  ;;  %v3869_v48 = vmul.f32 %v3484_v22, %v7716_v40 }
 0x564   : > { %v4018_v45 = vadd.f32 %v8370_v31, %v3868_v4 }
 0x565   : > { %v4019_v14 = vadd.f32 %v8373_v3, %v3869_v48  ;;  %v3553_v10 = vpop.f32.mrb[208].mxu0 }
 0x566   : > { %4053 = vst [vmem:[%s8383_s28 + $0x3c8] sm:$0xff] %v4018_v45  ;;  %v3746_v35 = vmul.f32 %v3553_v10, %v7156_v17  ;;  %v3555_v51 = vpop.f32.mrb[209].mxu0 }
 0x567   : > { %4640 = vst [vmem:[%s8383_s28 + $0x3d8] sm:$0xff] %v4019_v14  ;;  %v3747_v40 = vmul.f32 %v3555_v51, %v7162_v47 }
 0x568   : > { %v3896_v31 = vadd.f32 %v8611_v29, %v3746_v35 }
 0x569   : > { %v3897_v32 = vadd.f32 %v8615_v21, %v3747_v40  ;;  %v3559_v30 = vpop.f32.mrb[210].mxu0 }
 0x56a   : > { %4641 = vst [vmem:[%s8383_s28 + $0x20] sm:$0xff] %v3896_v31  ;;  %v3750_v3 = vmul.f32 %v3559_v30, %v7172_v34  ;;  %v3561_v56 = vpop.f32.mrb[211].mxu0 }
 0x56b   : > { %4673 = vst [vmem:[%s8383_s28 + $0x30] sm:$0xff] %v3897_v32  ;;  %v3751_v19 = vmul.f32 %v3561_v56, %v7178_v6 }
 0x56c   : > { %v3900_v17 = vadd.f32 %v8611_v29, %v3750_v3 }
 0x56d   : > { %v3901_v46 = vadd.f32 %v8615_v21, %v3751_v19  ;;  %v3565_v55 = vpop.f32.mrb[212].mxu0 }
 0x56e   : > { %4642 = vst [vmem:[%s8383_s28 + $0x28] sm:$0xff] %v3900_v17  ;;  %v3754_v47 = vmul.f32 %v3565_v55, %v7189_v23  ;;  %v3567_v26 = vpop.f32.mrb[213].mxu0  ;;  %v9359_v17 = vld [vmem:[#allocation66_spill] sm:$0xff] }
 0x56f   : > { %4674 = vst [vmem:[%s8383_s28 + $0x38] sm:$0xff] %v3901_v46  ;;  %v3755_v50 = vmul.f32 %v3567_v26, %v7196_v53 }
 0x570   : > { %v3904_v34 = vadd.f32 %v8611_v29, %v3754_v47 }
 0x571   : > { %v3905_v60 = vadd.f32 %v8615_v21, %v3755_v50  ;;  %v3571_v61 = vpop.f32.mrb[214].mxu0 }
 0x572   : > { %4643 = vst [vmem:[%s8383_s28 + $0x60] sm:$0xff] %v3904_v34  ;;  %v3758_v6 = vmul.f32 %v3571_v61, %v7207_v1  ;;  %v3573_v2 = vpop.f32.mrb[215].mxu0  ;;  %v9361_v34 = vld [vmem:[#allocation25_spill] sm:$0xff] }
 0x573   : > { %4675 = vst [vmem:[%s8383_s28 + $0x70] sm:$0xff] %v3905_v60  ;;  %v3759_v42 = vmul.f32 %v3573_v2, %v7214_v54  ;;  %v9362_v2 = vld [vmem:[#allocation7_spill] sm:$0xff] }
 0x574   : > { %v3908_v23 = vadd.f32 %v8611_v29, %v3758_v6 }
 0x575   : > { %v3909_v39 = vadd.f32 %v8615_v21, %v3759_v42  ;;  %v3577_v38 = vpop.f32.mrb[216].mxu0 }
 0x576   : > { %4644 = vst [vmem:[%s8383_s28 + $0x68] sm:$0xff] %v3908_v23  ;;  %v3762_v53 = vmul.f32 %v3577_v38, %v7225_v8  ;;  %v3579_v16 = vpop.f32.mrb[217].mxu0 }
 0x577   : > { %4676 = vst [vmem:[%s8383_s28 + $0x78] sm:$0xff] %v3909_v39  ;;  %v3763_v36 = vmul.f32 %v3579_v16, %v7232_v63  ;;  %v9363_v39 = vld [vmem:[#allocation69_spill] sm:$0xff] }
 0x578   : > { %v3912_v1 = vadd.f32 %v8611_v29, %v3762_v53 }
 0x579   : > { %v3913_v20 = vadd.f32 %v8615_v21, %v3763_v36  ;;  %v3583_v52 = vpop.f32.mrb[218].mxu0 }
 0x57a   : > { %4645 = vst [vmem:[%s8383_s28 + $0xa0] sm:$0xff] %v3912_v1  ;;  %v3766_v54 = vmul.f32 %v3583_v52, %v7243_v27  ;;  %v3585_v49 = vpop.f32.mrb[219].mxu0  ;;  %v9364_v1 = vld [vmem:[#allocation8_spill] sm:$0xff] }
 0x57b   : > { %4677 = vst [vmem:[%s8383_s28 + $0xb0] sm:$0xff] %v3913_v20  ;;  %v3767_v58 = vmul.f32 %v3585_v49, %v7250_v25 }
 0x57c   : > { %v3916_v8 = vadd.f32 %v8611_v29, %v3766_v54  ;;  %v9365_v54 = vld [vmem:[#allocation70_spill] sm:$0xff] }
 0x57d   : > { %v3917_v18 = vadd.f32 %v8615_v21, %v3767_v58  ;;  %v3589_v41 = vpop.f32.mrb[220].mxu0 }
 0x57e   : > { %4646 = vst [vmem:[%s8383_s28 + $0xa8] sm:$0xff] %v3916_v8  ;;  %v3770_v63 = vmul.f32 %v3589_v41, %v7261_v28  ;;  %v3591_v24 = vpop.f32.mrb[221].mxu0  ;;  %v9366_v41 = vld [vmem:[#allocation71_spill] sm:$0xff] }
 0x57f   : > { %4678 = vst [vmem:[%s8383_s28 + $0xb8] sm:$0xff] %v3917_v18  ;;  %v3771_v9 = vmul.f32 %v3591_v24, %v7268_v15 }
 0x580   : > { %v3920_v27 = vadd.f32 %v8611_v29, %v3770_v63 }
 0x581   : > { %v3921_v5 = vadd.f32 %v8615_v21, %v3771_v9  ;;  %v3595_v0 = vpop.f32.mrb[222].mxu0  ;;  %v9367_v9 = vld [vmem:[#allocation35_spill] sm:$0xff] }
 0x582   : > { %4647 = vst [vmem:[%s8383_s28 + $0xe0] sm:$0xff] %v3920_v27  ;;  %v3774_v25 = vmul.f32 %v3595_v0, %v7279_v37  ;;  %v3597_v33 = vpop.f32.mrb[223].mxu0 }
 0x583   : > { %4679 = vst [vmem:[%s8383_s28 + $0xf0] sm:$0xff] %v3921_v5  ;;  %v3775_v62 = vmul.f32 %v3597_v33, %v7286_v57  ;;  %v9368_v33 = vld [vmem:[#allocation37_spill] sm:$0xff] }
 0x584   : > { %v3924_v28 = vadd.f32 %v8611_v29, %v3774_v25 }
 0x585   : > { %v3925_v4 = vadd.f32 %v8615_v21, %v3775_v62  ;;  %v3601_v22 = vpop.f32.mrb[224].mxu0 }
 0x586   : > { %4648 = vst [vmem:[%s8383_s28 + $0xe8] sm:$0xff] %v3924_v28  ;;  %v3778_v15 = vmul.f32 %v3601_v22, %v7297_v59  ;;  %v3603_v48 = vpop.f32.mrb[225].mxu0 }
 0x587   : > { %4680 = vst [vmem:[%s8383_s28 + $0xf8] sm:$0xff] %v3925_v4  ;;  %v3779_v45 = vmul.f32 %v3603_v48, %v7304_v7  ;;  %v9369_v4 = vld [vmem:[#allocation10_spill] sm:$0xff] }
 0x588   : > { %v3928_v37 = vadd.f32 %v8611_v29, %v3778_v15 }
 0x589   : > { %v3929_v14 = vadd.f32 %v8615_v21, %v3779_v45  ;;  %v3607_v10 = vpop.f32.mrb[226].mxu0 }
 0x58a   : > { %4649 = vst [vmem:[%s8383_s28 + $0x120] sm:$0xff] %v3928_v37  ;;  %v3782_v57 = vmul.f32 %v3607_v10, %v7315_v13  ;;  %v3609_v35 = vpop.f32.mrb[227].mxu0  ;;  %v9370_v37 = vld [vmem:[#allocation74_spill] sm:$0xff] }
 0x58b   : > { %4681 = vst [vmem:[%s8383_s28 + $0x130] sm:$0xff] %v3929_v14  ;;  %v3783_v51 = vmul.f32 %v3609_v35, %v7322_v43 }
 0x58c   : > { %v3932_v59 = vadd.f32 %v8611_v29, %v3782_v57  ;;  %v9371_v57 = vld [vmem:[#allocation75_spill] sm:$0xff] }
 0x58d   : > { %v3933_v40 = vadd.f32 %v8615_v21, %v3783_v51  ;;  %v3613_v31 = vpop.f32.mrb[228].mxu0 }
 0x58e   : > { %4650 = vst [vmem:[%s8383_s28 + $0x128] sm:$0xff] %v3932_v59  ;;  %v3786_v7 = vmul.f32 %v3613_v31, %v7333_v44  ;;  %v3615_v32 = vpop.f32.mrb[229].mxu0  ;;  %v9372_v31 = vld [vmem:[#allocation43_spill] sm:$0xff] }
 0x58f   : > { %4682 = vst [vmem:[%s8383_s28 + $0x138] sm:$0xff] %v3933_v40  ;;  %v3787_v30 = vmul.f32 %v3615_v32, %v7340_v12  ;;  %v9360_v12 = vld [vmem:[#allocation23_spill] sm:$0xff] }
 0x590   : > { %v3936_v13 = vadd.f32 %v8611_v29, %v3786_v7 }
 0x591   : > { %v3937_v3 = vadd.f32 %v8615_v21, %v3787_v30  ;;  %v3619_v56 = vpop.f32.mrb[230].mxu0  ;;  %v9373_v30 = vld [vmem:[#allocation45_spill] sm:$0xff] }
 0x592   : > { %4651 = vst [vmem:[%s8383_s28 + $0x160] sm:$0xff] %v3936_v13  ;;  %v3790_v43 = vmul.f32 %v3619_v56, %v7351_v11  ;;  %v3621_v19 = vpop.f32.mrb[231].mxu0 }
 0x593   : > { %4683 = vst [vmem:[%s8383_s28 + $0x170] sm:$0xff] %v3937_v3  ;;  %v3791_v46 = vmul.f32 %v3621_v19, %v9359_v17  ;;  %v9374_v19 = vld [vmem:[#allocation12_spill] sm:$0xff] }
 0x594   : > { %v3940_v44 = vadd.f32 %v8611_v29, %v3790_v43 }
 0x595   : > { %v3941_v55 = vadd.f32 %v8615_v21, %v3791_v46  ;;  %v3625_v47 = vpop.f32.mrb[232].mxu0 }
 0x596   : > { %4652 = vst [vmem:[%s8383_s28 + $0x168] sm:$0xff] %v3940_v44  ;;  %v3794_v26 = vmul.f32 %v3625_v47, %v9360_v12  ;;  %v3627_v50 = vpop.f32.mrb[233].mxu0  ;;  %v9375_v44 = vld [vmem:[#allocation78_spill] sm:$0xff] }
 0x597   : > { %4684 = vst [vmem:[%s8383_s28 + $0x178] sm:$0xff] %v3941_v55  ;;  %v3795_v60 = vmul.f32 %v3627_v50, %v9361_v34  ;;  %v9376_v50 = vld [vmem:[#allocation79_spill] sm:$0xff] }
 0x598   : > { %v3944_v11 = vadd.f32 %v8611_v29, %v3794_v26 }
 0x599   : > { %v3945_v61 = vadd.f32 %v8615_v21, %v3795_v60  ;;  %v3631_v6 = vpop.f32.mrb[234].mxu0 }
 0x59a   : > { %4653 = vst [vmem:[%s8383_s28 + $0x1a0] sm:$0xff] %v3944_v11  ;;  %v3798_v42 = vmul.f32 %v3631_v6, %v9362_v2  ;;  %v3633_v23 = vpop.f32.mrb[235].mxu0  ;;  %v9377_v11 = vld [vmem:[#allocation49_spill] sm:$0xff] }
 0x59b   : > { %4685 = vst [vmem:[%s8383_s28 + $0x1b0] sm:$0xff] %v3945_v61  ;;  %v3799_v38 = vmul.f32 %v3633_v23, %v9363_v39  ;;  %v9378_v23 = vld [vmem:[#allocation50_spill] sm:$0xff] }
 0x59c   : > { %v3948_v53 = vadd.f32 %v8611_v29, %v3798_v42 }
 0x59d   : > { %v3949_v16 = vadd.f32 %v8615_v21, %v3799_v38  ;;  %v3637_v36 = vpop.f32.mrb[236].mxu0 }
 0x59e   : > { %4654 = vst [vmem:[%s8383_s28 + $0x1a8] sm:$0xff] %v3948_v53  ;;  %v3802_v20 = vmul.f32 %v3637_v36, %v9364_v1  ;;  %v3639_v52 = vpop.f32.mrb[237].mxu0  ;;  %v9379_v53 = vld [vmem:[#allocation51_spill] sm:$0xff] }
 0x59f   : > { %4686 = vst [vmem:[%s8383_s28 + $0x1b8] sm:$0xff] %v3949_v16  ;;  %v3803_v49 = vmul.f32 %v3639_v52, %v9365_v54  ;;  %v9380_v52 = vld [vmem:[#allocation52_spill] sm:$0xff] }
 0x5a0   : > { %v3952_v58 = vadd.f32 %v8611_v29, %v3802_v20 }
 0x5a1   : > { %v3953_v8 = vadd.f32 %v8615_v21, %v3803_v49  ;;  %v3643_v18 = vpop.f32.mrb[238].mxu0 }
 0x5a2   : > { %4655 = vst [vmem:[%s8383_s28 + $0x1e0] sm:$0xff] %v3952_v58  ;;  %v3806_v63 = vmul.f32 %v3643_v18, %v9366_v41  ;;  %v3645_v24 = vpop.f32.mrb[239].mxu0  ;;  %v9381_v58 = vld [vmem:[#allocation53_spill] sm:$0xff] }
 0x5a3   : > { %4687 = vst [vmem:[%s8383_s28 + $0x1f0] sm:$0xff] %v3953_v8  ;;  %v3807_v27 = vmul.f32 %v3645_v24, %v9367_v9  ;;  %v9382_v24 = vld [vmem:[#allocation84_spill] sm:$0xff] }
 0x5a4   : > { %v3956_v5 = vadd.f32 %v8611_v29, %v3806_v63 }
 0x5a5   : > { %v3957_v0 = vadd.f32 %v8615_v21, %v3807_v27  ;;  %v3649_v25 = vpop.f32.mrb[240].mxu0 }
 0x5a6   : > { %4656 = vst [vmem:[%s8383_s28 + $0x1e8] sm:$0xff] %v3956_v5  ;;  %v3810_v62 = vmul.f32 %v3649_v25, %v9368_v33  ;;  %v3651_v28 = vpop.f32.mrb[241].mxu0  ;;  %v9383_v5 = vld [vmem:[#allocation85_spill] sm:$0xff] }
 0x5a7   : > { %4688 = vst [vmem:[%s8383_s28 + $0x1f8] sm:$0xff] %v3957_v0  ;;  %v3811_v22 = vmul.f32 %v3651_v28, %v9369_v4  ;;  %v9384_v28 = vld [vmem:[#allocation86_spill] sm:$0xff] }
 0x5a8   : > { %v3960_v15 = vadd.f32 %v8611_v29, %v3810_v62 }
 0x5a9   : > { %v3961_v48 = vadd.f32 %v8615_v21, %v3811_v22  ;;  %v3655_v45 = vpop.f32.mrb[242].mxu0 }
 0x5aa   : > { %4657 = vst [vmem:[%s8383_s28 + $0x220] sm:$0xff] %v3960_v15  ;;  %v3814_v14 = vmul.f32 %v3655_v45, %v9370_v37  ;;  %v3657_v10 = vpop.f32.mrb[243].mxu0  ;;  %v9385_v15 = vld [vmem:[#allocation87_spill] sm:$0xff] }
 0x5ab   : > { %4689 = vst [vmem:[%s8383_s28 + $0x230] sm:$0xff] %v3961_v48  ;;  %v3815_v35 = vmul.f32 %v3657_v10, %v9371_v57  ;;  %v9386_v10 = vld [vmem:[#allocation88_spill] sm:$0xff] }
 0x5ac   : > { %v3964_v51 = vadd.f32 %v8611_v29, %v3814_v14 }
 0x5ad   : > { %v3965_v59 = vadd.f32 %v8615_v21, %v3815_v35  ;;  %v3661_v40 = vpop.f32.mrb[244].mxu0 }
 0x5ae   : > { %4658 = vst [vmem:[%s8383_s28 + $0x228] sm:$0xff] %v3964_v51  ;;  %v3818_v7 = vmul.f32 %v3661_v40, %v9372_v31  ;;  %v3663_v32 = vpop.f32.mrb[245].mxu0  ;;  %v9387_v51 = vld [vmem:[#allocation89_spill] sm:$0xff] }
 0x5af   : > { %4690 = vst [vmem:[%s8383_s28 + $0x238] sm:$0xff] %v3965_v59  ;;  %v3819_v13 = vmul.f32 %v3663_v32, %v9373_v30  ;;  %v9388_v32 = vld [vmem:[#allocation90_spill] sm:$0xff] }
 0x5b0   : > { %v3968_v3 = vadd.f32 %v8611_v29, %v3818_v7 }
 0x5b1   : > { %v3969_v56 = vadd.f32 %v8615_v21, %v3819_v13  ;;  %v3667_v43 = vpop.f32.mrb[246].mxu0 }
 0x5b2   : > { %4659 = vst [vmem:[%s8383_s28 + $0x260] sm:$0xff] %v3968_v3  ;;  %v3822_v17 = vmul.f32 %v3667_v43, %v9374_v19  ;;  %v3669_v46 = vpop.f32.mrb[247].mxu0  ;;  %v9389_v3 = vld [vmem:[#allocation62_spill] sm:$0xff] }
 0x5b3   : > { %4691 = vst [vmem:[%s8383_s28 + $0x270] sm:$0xff] %v3969_v56  ;;  %v3823_v55 = vmul.f32 %v3669_v46, %v9375_v44  ;;  %v9390_v46 = vld [vmem:[#allocation16_spill] sm:$0xff] }
 0x5b4   : > { %v3972_v47 = vadd.f32 %v8611_v29, %v3822_v17 }
 0x5b5   : > { %v3973_v12 = vadd.f32 %v8615_v21, %v3823_v55  ;;  %v3673_v26 = vpop.f32.mrb[248].mxu0 }
 0x5b6   : > { %4660 = vst [vmem:[%s8383_s28 + $0x268] sm:$0xff] %v3972_v47  ;;  %v3826_v34 = vmul.f32 %v3673_v26, %v9376_v50  ;;  %v3675_v60 = vpop.f32.mrb[249].mxu0  ;;  %v9391_v47 = vld [vmem:[#allocation20_spill] sm:$0xff] }
 0x5b7   : > { %4692 = vst [vmem:[%s8383_s28 + $0x278] sm:$0xff] %v3973_v12  ;;  %v3827_v61 = vmul.f32 %v3675_v60, %v9377_v11  ;;  %v9392_v60 = vld [vmem:[#allocation92_spill] sm:$0xff] }
 0x5b8   : > { %v3976_v6 = vadd.f32 %v8611_v29, %v3826_v34 }
 0x5b9   : > { %v3977_v2 = vadd.f32 %v8615_v21, %v3827_v61  ;;  %v3679_v42 = vpop.f32.mrb[250].mxu0 }
 0x5ba   : > { %4661 = vst [vmem:[%s8383_s28 + $0x2a0] sm:$0xff] %v3976_v6  ;;  %v3830_v39 = vmul.f32 %v3679_v42, %v9378_v23  ;;  %v3681_v38 = vpop.f32.mrb[251].mxu0  ;;  %v9393_v6 = vld [vmem:[#allocation26_spill] sm:$0xff] }
 0x5bb   : > { %4693 = vst [vmem:[%s8383_s28 + $0x2b0] sm:$0xff] %v3977_v2  ;;  %v3831_v16 = vmul.f32 %v3681_v38, %v9379_v53  ;;  %v9394_v38 = vld [vmem:[#allocation5_spill] sm:$0xff] }
 0x5bc   : > { %v3980_v36 = vadd.f32 %v8611_v29, %v3830_v39 }
 0x5bd   : > { %v3981_v1 = vadd.f32 %v8615_v21, %v3831_v16  ;;  %v3685_v20 = vpop.f32.mrb[252].mxu0 }
 0x5be   : > { %4662 = vst [vmem:[%s8383_s28 + $0x2a8] sm:$0xff] %v3980_v36  ;;  %v3834_v54 = vmul.f32 %v3685_v20, %v9380_v52  ;;  %v3687_v49 = vpop.f32.mrb[253].mxu0  ;;  %v9395_v36 = vld [vmem:[#allocation30_spill] sm:$0xff] }
 0x5bf   : > { %4694 = vst [vmem:[%s8383_s28 + $0x2b8] sm:$0xff] %v3981_v1  ;;  %v3835_v8 = vmul.f32 %v3687_v49, %v9381_v58  ;;  %v9396_v49 = vld [vmem:[#allocation94_spill] sm:$0xff] }
 0x5c0   : > { %v3984_v18 = vadd.f32 %v8611_v29, %v3834_v54 }
 0x5c1   : > { %v3985_v41 = vadd.f32 %v8615_v21, %v3835_v8  ;;  %v3691_v63 = vpop.f32.mrb[254].mxu0 }
 0x5c2   : > { %4663 = vst [vmem:[%s8383_s28 + $0x2e0] sm:$0xff] %v3984_v18  ;;  %v3838_v9 = vmul.f32 %v3691_v63, %v9382_v24  ;;  %v3693_v27 = vpop.f32.mrb[255].mxu0  ;;  %v9397_v18 = vld [vmem:[#allocation32_spill] sm:$0xff] }
 0x5c3   : > { %4695 = vst [vmem:[%s8383_s28 + $0x2f0] sm:$0xff] %v3985_v41  ;;  %v3839_v0 = vmul.f32 %v3693_v27, %v9383_v5  ;;  %v9398_v27 = vld [vmem:[#allocation34_spill] sm:$0xff] }
 0x5c4   : > { %v3988_v25 = vadd.f32 %v8611_v29, %v3838_v9 }
 0x5c5   : > { %v3989_v33 = vadd.f32 %v8615_v21, %v3839_v0  ;;  %v3697_v62 = vpop.f32.mrb[0].mxu0 }
 0x5c6   : > { %4664 = vst [vmem:[%s8383_s28 + $0x2e8] sm:$0xff] %v3988_v25  ;;  %v3842_v4 = vmul.f32 %v3697_v62, %v9384_v28  ;;  %v3699_v22 = vpop.f32.mrb[1].mxu0  ;;  %v9399_v25 = vld [vmem:[#allocation95_spill] sm:$0xff] }
 0x5c7   : > { %4696 = vst [vmem:[%s8383_s28 + $0x2f8] sm:$0xff] %v3989_v33  ;;  %v3843_v48 = vmul.f32 %v3699_v22, %v9385_v15 }
 0x5c8   : > { %v3992_v45 = vadd.f32 %v8611_v29, %v3842_v4 }
 0x5c9   : > { %v3993_v37 = vadd.f32 %v8615_v21, %v3843_v48  ;;  %v3703_v14 = vpop.f32.mrb[2].mxu0 }
 0x5ca   : > { %4665 = vst [vmem:[%s8383_s28 + $0x320] sm:$0xff] %v3992_v45  ;;  %v3846_v57 = vmul.f32 %v3703_v14, %v9386_v10  ;;  %v3705_v35 = vpop.f32.mrb[3].mxu0 }
 0x5cb   : > { %4697 = vst [vmem:[%s8383_s28 + $0x330] sm:$0xff] %v3993_v37  ;;  %v3847_v59 = vmul.f32 %v3705_v35, %v9387_v51 }
 0x5cc   : > { %v3996_v40 = vadd.f32 %v8611_v29, %v3846_v57 }
 0x5cd   : > { %v3997_v31 = vadd.f32 %v8615_v21, %v3847_v59  ;;  %v3709_v7 = vpop.f32.mrb[4].mxu0 }
 0x5ce   : > { %4666 = vst [vmem:[%s8383_s28 + $0x328] sm:$0xff] %v3996_v40  ;;  %v3850_v30 = vmul.f32 %v3709_v7, %v9388_v32  ;;  %v3711_v13 = vpop.f32.mrb[5].mxu0 }
 0x5cf   : > { %4698 = vst [vmem:[%s8383_s28 + $0x338] sm:$0xff] %v3997_v31  ;;  %v3851_v56 = vmul.f32 %v3711_v13, %v9389_v3 }
 0x5d0   : > { %v4000_v43 = vadd.f32 %v8611_v29, %v3850_v30 }
 0x5d1   : > { %v4001_v19 = vadd.f32 %v8615_v21, %v3851_v56  ;;  %v3715_v17 = vpop.f32.mrb[6].mxu0 }
 0x5d2   : > { %4667 = vst [vmem:[%s8383_s28 + $0x360] sm:$0xff] %v4000_v43  ;;  %v3854_v44 = vmul.f32 %v3715_v17, %v9390_v46  ;;  %v3717_v55 = vpop.f32.mrb[7].mxu0 }
 0x5d3   : > { %4699 = vst [vmem:[%s8383_s28 + $0x370] sm:$0xff] %v4001_v19  ;;  %v3855_v12 = vmul.f32 %v3717_v55, %v9391_v47 }
 0x5d4   : > { %v4004_v26 = vadd.f32 %v8611_v29, %v3854_v44 }
 0x5d5   : > { %v4005_v50 = vadd.f32 %v8615_v21, %v3855_v12  ;;  %v3721_v34 = vpop.f32.mrb[8].mxu0 }
 0x5d6   : > { %4668 = vst [vmem:[%s8383_s28 + $0x368] sm:$0xff] %v4004_v26  ;;  %v3858_v11 = vmul.f32 %v3721_v34, %v9392_v60  ;;  %v3723_v61 = vpop.f32.mrb[9].mxu0 }
 0x5d7   : > { %4700 = vst [vmem:[%s8383_s28 + $0x378] sm:$0xff] %v4005_v50  ;;  %v3859_v2 = vmul.f32 %v3723_v61, %v9393_v6 }
 0x5d8   : > { %v4008_v42 = vadd.f32 %v8611_v29, %v3858_v11 }
 0x5d9   : > { %v4009_v23 = vadd.f32 %v8615_v21, %v3859_v2  ;;  %v3727_v39 = vpop.f32.mrb[10].mxu0 }
 0x5da   : > { %4669 = vst [vmem:[%s8383_s28 + $0x3a0] sm:$0xff] %v4008_v42  ;;  %v3862_v53 = vmul.f32 %v3727_v39, %v9394_v38  ;;  %v3729_v16 = vpop.f32.mrb[11].mxu0 }
 0x5db   : > { %4701 = vst [vmem:[%s8383_s28 + $0x3b0] sm:$0xff] %v4009_v23  ;;  %v3863_v1 = vmul.f32 %v3729_v16, %v9395_v36 }
 0x5dc   : > { %v4012_v20 = vadd.f32 %v8611_v29, %v3862_v53 }
 0x5dd   : > { %v4013_v52 = vadd.f32 %v8615_v21, %v3863_v1  ;;  %v3733_v54 = vpop.f32.mrb[12].mxu0 }
 0x5de   : > { %4670 = vst [vmem:[%s8383_s28 + $0x3a8] sm:$0xff] %v4012_v20  ;;  %v3866_v58 = vmul.f32 %v3733_v54, %v9396_v49  ;;  %v3735_v8 = vpop.f32.mrb[13].mxu0 }
 0x5df   : > { %4702 = vst [vmem:[%s8383_s28 + $0x3b8] sm:$0xff] %v4013_v52  ;;  %v3867_v41 = vmul.f32 %v3735_v8, %v9397_v18 }
 0x5e0   : > { %v4016_v63 = vadd.f32 %v8611_v29, %v3866_v58 }
 0x5e1   : > { %v4017_v24 = vadd.f32 %v8615_v21, %v3867_v41  ;;  %v3739_v9 = vpop.f32.mrb[14].mxu0 }
 0x5e2   : > { %4671 = vst [vmem:[%s8383_s28 + $0x3e0] sm:$0xff] %v4016_v63  ;;  %v3870_v5 = vmul.f32 %v3739_v9, %v9398_v27  ;;  %v3741_v0 = vpop.f32.mrb[15].mxu0 }
 0x5e3   : > { %4703 = vst [vmem:[%s8383_s28 + $0x3f0] sm:$0xff] %v4017_v24  ;;  %v3871_v33 = vmul.f32 %v3741_v0, %v9399_v25 }
 0x5e4   : > { %v4020_v62 = vadd.f32 %v8611_v29, %v3870_v5 }
 0x5e5   : > { %v4021_v28 = vadd.f32 %v8615_v21, %v3871_v33 }
 0x5e6   : > { %4672 = vst [vmem:[%s8383_s28 + $0x3e8] sm:$0xff] %v4020_v62 }
 0x5e7   : > { %4704 = vst [vmem:[%s8383_s28 + $0x3f8] sm:$0xff] %v4021_v28 }
 0x5e8   : > { %5704 = shalt.err (!%p5701_p5)
}
 0x5e9   : > { %s5705_s18 = scalar_lea.hbm %s8813_s13, 16384  ;;  %s5709_s27 = scalar_lea.hbm %s8874_s6, 32768 }
 0x5ea   : > { %p5706_p6 = scmp.ne.s32.totalorder %s8813_s13, %s5705_s18  ;;  %p5710_p10 = scmp.lt.u32.totalorder %s8813_s13, %s8874_s6 }
 0x5eb   : > { %p5711_p11 = scmp.lt.u32.totalorder %s5709_s27, %s5705_s18  ;;  %p5713_p13 = scmp.lt.u32.totalorder %s5705_s18, %s8813_s13 }
 0x5ec   : > { %p5707_p7 = pnand %p5706_p6, %p5851_p4 }
 0x5ed   : > { %p5712_p12 = por %p5711_p11, %p5710_p10 }
 0x5ee   : > { %p5708_p9 = pneg %p5707_p7 }
 0x5ef   : > { %p5714_p0 = por %p5713_p13, %p5712_p12 }
 0x5f1   : > { %p5715_p1 = pnand %p5714_p0, %p5708_p9 }
 0x5f3   : > { %5718 = shalt.err (!%p5715_p1)
}
 0x5f4   : > { %s5774_s11 = smov 128   ;;  %s5775_s12 = smov 8  }
 0x5f5   : > { %5568 = dma.vmem_to_hbm [thread:$0]  (%p5851_p4), %s8815_s8, 16384, %s8813_s13, %s8822_s24, %s5774_s11, %s5774_s11, %s5775_s12  }
 0x5f6 PF: > { %p5574_p2 = scmp.ge.s32.totalorder %s5769_s26, 2  ;;  %s4185_s14 = sand.u32 1, %s5749_s21  }
 0x5f7   : > { %s4186_s15 = scalar_lea.sflag [#allocation3], %s4185_s14 }
 0x5f8   : > { %p5571_p3 = pnand %p5574_p2, %p5858_p8 }
 0x5fa   : > { %5744 = dma.done.wait (!%p5571_p3), %s4186_s15, 16384  }
 0x5fb   : > { %5746 = vsyncadd (!%p5571_p3), %s4186_s15, 4294950912  ;;  %s19_s26 = sadd.s32 1, %s5769_s26   ;;  %s9400_s21 = smov %s5753_s22 }
 0x5fc   : > { %p16_p5 = scmp.ge.s32.totalorder %s19_s26, 4   ;;  %s9401_s22 = smov %s5757_s23 }
 0x5fd   : > { %s9402_s23 = smov %s5864_s10  ;;  %s9403_s24 = smov %s5765_s25 }
 0x5fe   : > { %s9404_s25 = smov %s9406_s29  ;;  %18 = sbr.rel (!%p16_p5) target bundleno = 4 (0x4), region = 82 }
 0x605   :  { %4191 = vsyncpa [#allocation3], 1 }
 0x606   :  { %4193 = vsyncpa [#allocation3 + $0x1], 1 }

</bundles_post_ra>
